<compile_context>
chip_gen: v5e
topology: v5e:2x2
jax: 0.10.0
libtpu: 0.0.40
codegen_flags: <defaults>
</compile_context>

<pallas_src>
import functools

import jax
import jax.numpy as jnp
from jax.experimental import pallas as pl
from jax.experimental.pallas import tpu as pltpu


def _round_up(x, m):
    return ((x + m - 1) // m) * m


# ----------------------------------------------------------------------------
# Pallas kernel: direct conv (kh*kw tap accumulation) + folded-BN bias + Mish
# ----------------------------------------------------------------------------
def _convblock_kernel(x_hbm, w_ref, b_ref, o_ref, xbuf, sem, *, stride):
    kh, kw, cin_p, tn = w_ref.shape          # weight tile  [kh, kw, Cin_p, tn]
    _, th, wo, _ = o_ref.shape               # output tile  [1, th, Wo_p, tn]
    rows_in = xbuf.shape[0]                  # input window rows (halo included)

    n = pl.program_id(0)                     # batch
    i = pl.program_id(1)                     # output row tile
    jc = pl.program_id(2)                    # Cout tile (innermost, "arbitrary")

    # DMA the input row window for this (batch, row-tile) once; it is reused
    # for every Cout tile because the Cout axis iterates innermost.
    @pl.when(jc == 0)
    def _load_window():
        row0 = pl.multiple_of(i * (th * stride), th * stride)
        dma = pltpu.make_async_copy(x_hbm.at[n, pl.ds(row0, rows_in)], xbuf, sem)
        dma.start()
        dma.wait()

    # Accumulate over the kh*kw kernel taps (fully unrolled; f32 accumulator).
    acc = jnp.zeros((th * wo, tn), jnp.float32)
    for di in range(kh):
        for dj in range(kw):
            if stride == 1:
                slab = xbuf[di:di + th, dj:dj + wo, :]
            else:
                # TODO(synk): strided sublane/lane slicing for stride > 1 may
                # lower with a relayout copy; the delivered test uses stride=1.
                xv = xbuf[...]
                slab = jax.lax.slice(
                    xv, (di, dj, 0),
                    (di + stride * (th - 1) + 1, dj + stride * (wo - 1) + 1, cin_p),
                    (stride, stride, 1))
            acc = acc + jnp.dot(slab.reshape(th * wo, cin_p), w_ref[di, dj],
                                preferred_element_type=jnp.float32)

    # Folded-BN bias + Mish with a single transcendental:
    #   tanh(softplus(y)) = u / (u + 2),  u = e^y * (e^y + 2)
    y = acc + b_ref[...]
    t = jnp.exp(jnp.minimum(y, 20.0))
    u = t * (t + 2.0)
    mish = y * u * pl.reciprocal(u + 2.0)     # exact recip keeps tight accuracy
    mish = jnp.where(y > 20.0, y, mish)       # large-y guard: mish(y) -> y
    o_ref[...] = mish.reshape(1, th, wo, tn).astype(o_ref.dtype)


# ----------------------------------------------------------------------------
# ConvBlock wrapper (layout/padding glue in plain JAX, hot path in Pallas)
# ----------------------------------------------------------------------------
@functools.partial(jax.jit,
                   static_argnames=("kernel_size", "stride", "compute_dtype"))
def conv_block_forward(x, weight, bn_gamma, bn_beta, bn_mean, bn_var,
                       *, kernel_size, stride, compute_dtype=jnp.float32):
    """PyTorch ConvBlock forward (inference BatchNorm), activation='mish'.

    x:      [N, Cin, H, W]      float32
    weight: [Cout, Cin, kh, kw] float32 (no conv bias)
    bn_*:   [Cout]              float32
    returns [N, Cout, Ho, Wo]   float32
    """
    N, Cin, H, W = x.shape
    Cout = weight.shape[0]
    kh = kw = kernel_size
    pad = kernel_size // 2
    eps = 1e-5

    Ho = (H + 2 * pad - kh) // stride + 1
    Wo = (W + 2 * pad - kw) // stride + 1

    # Lane-dense channel padding (last dim of every VMEM operand = k*128).
    cin_p = _round_up(Cin, 128)
    cout_p = _round_up(Cout, 128)
    tn = 256 if cout_p % 256 == 0 else 128

    # Row tiling of the output: aim for ~1024 GEMM rows per grid step.
    wo_p = _round_up(Wo, 8)
    th = max(1, min(Ho, max(1, 1024 // wo_p)))
    ho_p = _round_up(Ho, th)
    n_row = ho_p // th
    rows_in = (th - 1) * stride + kh

    # Padded input extents required by the last row/col tile; width rounded to
    # a sublane multiple so in-kernel slices of the VMEM window stay aligned.
    hp = max((ho_p - 1) * stride + kh, H + 2 * pad)
    wp = _round_up(max((wo_p - 1) * stride + kw, W + 2 * pad), 8)

    # NCHW -> NHWC once; pad spatial + channels; cast to the MXU operand dtype.
    # TODO(synk): keep the whole network NHWC to drop this transpose pair.
    x_nhwc = jnp.transpose(x, (0, 2, 3, 1))
    x_pad = jnp.pad(
        x_nhwc,
        ((0, 0), (pad, hp - H - pad), (pad, wp - W - pad), (0, cin_p - Cin)),
    ).astype(compute_dtype)

    # Fold BatchNorm (inference) scale into the weights; keep only the bias.
    inv_std = 1.0 / jnp.sqrt(bn_var + eps)
    scale = bn_gamma * inv_std                              # [Cout]
    bias = bn_beta - bn_mean * scale                        # [Cout]
    w_hwio = jnp.transpose(weight, (2, 3, 1, 0)) * scale    # [kh, kw, Cin, Cout]
    w_pad = jnp.pad(
        w_hwio, ((0, 0), (0, 0), (0, cin_p - Cin), (0, cout_p - Cout))
    ).astype(compute_dtype)
    b_pad = jnp.pad(bias, (0, cout_p - Cout)).reshape(1, cout_p).astype(jnp.float32)

    grid = (N, n_row, cout_p // tn)

    itemsize = jnp.dtype(compute_dtype).itemsize
    vmem_est = (
        rows_in * wp * cin_p * itemsize          # input window (single buffer)
        + 2 * kh * kw * cin_p * tn * itemsize    # weight tile (double buffered)
        + 2 * th * wo_p * tn * 4                 # output tile (double buffered)
        + 4 * th * wo_p * tn * 4                 # f32 accumulator + temporaries
        + 2 * cout_p * 4
    )
    vmem_limit = int(min(max(2 * vmem_est, 16 * 2**20), 48 * 2**20))

    out = pl.pallas_call(
        functools.partial(_convblock_kernel, stride=stride),
        out_shape=jax.ShapeDtypeStruct((N, ho_p, wo_p, cout_p), jnp.float32),
        grid_spec=pltpu.PrefetchScalarGridSpec(
            num_scalar_prefetch=0,
            grid=grid,
            in_specs=[
                pl.BlockSpec(memory_space=pl.ANY),                # raw HBM input
                pl.BlockSpec((kh, kw, cin_p, tn), lambda n, i, j: (0, 0, 0, j)),
                pl.BlockSpec((1, tn), lambda n, i, j: (0, j)),
            ],
            out_specs=pl.BlockSpec((1, th, wo_p, tn),
                                   lambda n, i, j: (n, i, 0, j)),
            scratch_shapes=[
                pltpu.VMEM((rows_in, wp, cin_p), compute_dtype),
                pltpu.SemaphoreType.DMA(()),
            ],
        ),
        compiler_params=pltpu.CompilerParams(
            dimension_semantics=("parallel", "parallel", "arbitrary"),
            vmem_limit_bytes=vmem_limit,
        ),
    )(x_pad, w_pad, b_pad)

    out = out[:, :Ho, :Wo, :Cout]               # drop spatial/channel padding
    return jnp.transpose(out, (0, 3, 1, 2))     # back to NCHW (PyTorch layout)


# ----------------------------------------------------------------------------
# Pure-JAX reference for sanity checking
# ----------------------------------------------------------------------------
def _reference(x, weight, gamma, beta, mean, var, kernel_size, stride):
    padding = kernel_size // 2
    y = jax.lax.conv_general_dilated(
        x, weight, window_strides=(stride, stride),
        padding=((padding, padding), (padding, padding)),
        dimension_numbers=("NCHW", "OIHW", "NCHW"),
        precision=jax.lax.Precision.HIGHEST)
    eps = 1e-5
    y = (y - mean[None, :, None, None]) / jnp.sqrt(var[None, :, None, None] + eps)
    y = y * gamma[None, :, None, None] + beta[None, :, None, None]
    return y * jnp.tanh(jax.nn.softplus(y))


if __name__ == "__main__":
    key = jax.random.PRNGKey(0)
    k_x, k_w, k_g, k_b, k_m, k_v = jax.random.split(key, 6)

    # ConvBlock(in_channels=4, out_channels=8, kernel_size=3, stride=1)
    N, Cin, H, W = 2, 4, 16, 16
    Cout, ksize, stride = 8, 3, 1

    x = jax.random.normal(k_x, (N, Cin, H, W), dtype=jnp.float32)
    weight = jax.random.normal(k_w, (Cout, Cin, ksize, ksize), dtype=jnp.float32) * 0.1
    bn_gamma = 1.0 + 0.1 * jax.random.normal(k_g, (Cout,), dtype=jnp.float32)
    bn_beta = 0.1 * jax.random.normal(k_b, (Cout,), dtype=jnp.float32)
    bn_mean = 0.1 * jax.random.normal(k_m, (Cout,), dtype=jnp.float32)
    bn_var = jnp.abs(1.0 + 0.1 * jax.random.normal(k_v, (Cout,), dtype=jnp.float32))

    ref = _reference(x, weight, bn_gamma, bn_beta, bn_mean, bn_var, ksize, stride)

    # f32 MXU operands: tight check against the PyTorch-equivalent reference.
    out = conv_block_forward(x, weight, bn_gamma, bn_beta, bn_mean, bn_var,
                             kernel_size=ksize, stride=stride,
                             compute_dtype=jnp.float32)
    out = jax.block_until_ready(out)
    assert out.shape == (N, Cout, H, W), out.shape
    err_f32 = float(jnp.max(jnp.abs(out - ref)))
    assert jnp.allclose(out, ref, atol=1e-3, rtol=1e-3), err_f32

    print("KERNEL_OK")
</pallas_src>

<mosaic_0001>
module attributes {stable_mosaic.version = 11 : i64} {
  func.func @_convblock_kernel(%arg0: i32, %arg1: i32, %arg2: i32, %arg3: memref<2x18x24x128xf32, #tpu.memory_space<any>>, %arg4: memref<3x3x128x128xf32, #tpu.memory_space<vmem>>, %arg5: memref<1x128xf32, #tpu.memory_space<vmem>>, %arg6: memref<1x16x16x128xf32, #tpu.memory_space<vmem>>, %arg7: memref<18x24x128xf32, #tpu.memory_space<vmem>>, %arg8: memref<!tpu.dma_semaphore, #tpu.memory_space<semaphore_mem>>) attributes {dimension_semantics = [#tpu.dimension_semantics<parallel>, #tpu.dimension_semantics<parallel>, #tpu.dimension_semantics<arbitrary>], iteration_bounds = array<i64: 2, 1, 1>, scalar_prefetch = 0 : i64, scratch_operands = 2 : i64, tpu.core_type = #tpu.core_type<tc>, window_params = [{}, {transform_indices = @transform_1, window_bounds = array<i64: 3, 3, 128, 128>}, {transform_indices = @transform_2, window_bounds = array<i64: 1, 128>}, {transform_indices = @transform_3, window_bounds = array<i64: 1, 16, 16, 128>}]} {
    %c0_i32 = arith.constant 0 : i32
    %0 = arith.cmpi eq, %arg2, %c0_i32 : i32
    %1 = arith.extui %0 : i1 to i32
    %c0_i32_0 = arith.constant 0 : i32
    %2 = arith.cmpi ne, %1, %c0_i32_0 : i32
    scf.if %2 {
      %c16_i32 = arith.constant 16 : i32
      %77 = arith.muli %arg1, %c16_i32 : i32
      %78 = tpu.assume_multiple %77, 16 : i32
      %c0_i32_80 = arith.constant 0 : i32
      %c0_i32_81 = arith.constant 0 : i32
      %79 = tpu.memref_slice %arg3[%arg0, %78, %c0_i32_80, %c0_i32_81] : memref<2x18x24x128xf32, #tpu.memory_space<any>> -> memref<1x18x24x128xf32, #tpu.memory_space<any>>
      %80 = tpu.memref_squeeze %79 : memref<1x18x24x128xf32, #tpu.memory_space<any>> -> memref<18x24x128xf32, #tpu.memory_space<any>>
      tpu.enqueue_dma source(%80 : memref<18x24x128xf32, #tpu.memory_space<any>>) target(%arg7 : memref<18x24x128xf32, #tpu.memory_space<vmem>>) target_semaphore(%arg8 : memref<!tpu.dma_semaphore, #tpu.memory_space<semaphore_mem>>)
      %c0_i32_82 = arith.constant 0 : i32
      %c0_i32_83 = arith.constant 0 : i32
      %81 = tpu.memref_slice %arg3[%arg0, %78, %c0_i32_82, %c0_i32_83] : memref<2x18x24x128xf32, #tpu.memory_space<any>> -> memref<1x18x24x128xf32, #tpu.memory_space<any>>
      %82 = tpu.memref_squeeze %81 : memref<1x18x24x128xf32, #tpu.memory_space<any>> -> memref<18x24x128xf32, #tpu.memory_space<any>>
      tpu.wait_dma2 semaphore(%arg8 : memref<!tpu.dma_semaphore, #tpu.memory_space<semaphore_mem>>) src(%82 : memref<18x24x128xf32, #tpu.memory_space<any>>) dst(%arg7 : memref<18x24x128xf32, #tpu.memory_space<vmem>>)
    } else {
    }
    %cst = arith.constant 0.000000e+00 : f32
    %3 = vector.broadcast %cst : f32 to vector<256x128xf32>
    %c0 = arith.constant 0 : index
    %c0_1 = arith.constant 0 : index
    %c0_2 = arith.constant 0 : index
    %4 = vector.load %arg7[%c0, %c0_1, %c0_2] : memref<18x24x128xf32, #tpu.memory_space<vmem>>, vector<16x16x128xf32>
    %5 = vector.shape_cast %4 : vector<16x16x128xf32> to vector<256x128xf32>
    %c0_3 = arith.constant 0 : index
    %c0_4 = arith.constant 0 : index
    %c0_5 = arith.constant 0 : index
    %c0_6 = arith.constant 0 : index
    %6 = vector.load %arg4[%c0_3, %c0_4, %c0_5, %c0_6] : memref<3x3x128x128xf32, #tpu.memory_space<vmem>>, vector<1x1x128x128xf32>
    %7 = vector.shape_cast %6 : vector<1x1x128x128xf32> to vector<128x128xf32>
    %cst_7 = arith.constant dense<0.000000e+00> : vector<256x128xf32>
    %8 = tpu.matmul %5, %7, %cst_7 {dimension_numbers = #tpu.dot_dimension_numbers<[1], [0], [0], [1], [0, 0, 1, 1], [], []>} : vector<256x128xf32>, vector<128x128xf32>, vector<256x128xf32> -> vector<256x128xf32>
    %9 = arith.addf %3, %8 : vector<256x128xf32>
    %c0_8 = arith.constant 0 : index
    %c1 = arith.constant 1 : index
    %c0_9 = arith.constant 0 : index
    %10 = vector.load %arg7[%c0_8, %c1, %c0_9] : memref<18x24x128xf32, #tpu.memory_space<vmem>>, vector<16x16x128xf32>
    %11 = vector.shape_cast %10 : vector<16x16x128xf32> to vector<256x128xf32>
    %c0_10 = arith.constant 0 : index
    %c1_11 = arith.constant 1 : index
    %c0_12 = arith.constant 0 : index
    %c0_13 = arith.constant 0 : index
    %12 = vector.load %arg4[%c0_10, %c1_11, %c0_12, %c0_13] : memref<3x3x128x128xf32, #tpu.memory_space<vmem>>, vector<1x1x128x128xf32>
    %13 = vector.shape_cast %12 : vector<1x1x128x128xf32> to vector<128x128xf32>
    %cst_14 = arith.constant dense<0.000000e+00> : vector<256x128xf32>
    %14 = tpu.matmul %11, %13, %cst_14 {dimension_numbers = #tpu.dot_dimension_numbers<[1], [0], [0], [1], [0, 0, 1, 1], [], []>} : vector<256x128xf32>, vector<128x128xf32>, vector<256x128xf32> -> vector<256x128xf32>
    %15 = arith.addf %9, %14 : vector<256x128xf32>
    %c0_15 = arith.constant 0 : index
    %c2 = arith.constant 2 : index
    %c0_16 = arith.constant 0 : index
    %16 = vector.load %arg7[%c0_15, %c2, %c0_16] : memref<18x24x128xf32, #tpu.memory_space<vmem>>, vector<16x16x128xf32>
    %17 = vector.shape_cast %16 : vector<16x16x128xf32> to vector<256x128xf32>
    %c0_17 = arith.constant 0 : index
    %c2_18 = arith.constant 2 : index
    %c0_19 = arith.constant 0 : index
    %c0_20 = arith.constant 0 : index
    %18 = vector.load %arg4[%c0_17, %c2_18, %c0_19, %c0_20] : memref<3x3x128x128xf32, #tpu.memory_space<vmem>>, vector<1x1x128x128xf32>
    %19 = vector.shape_cast %18 : vector<1x1x128x128xf32> to vector<128x128xf32>
    %cst_21 = arith.constant dense<0.000000e+00> : vector<256x128xf32>
    %20 = tpu.matmul %17, %19, %cst_21 {dimension_numbers = #tpu.dot_dimension_numbers<[1], [0], [0], [1], [0, 0, 1, 1], [], []>} : vector<256x128xf32>, vector<128x128xf32>, vector<256x128xf32> -> vector<256x128xf32>
    %21 = arith.addf %15, %20 : vector<256x128xf32>
    %c1_22 = arith.constant 1 : index
    %c0_23 = arith.constant 0 : index
    %c0_24 = arith.constant 0 : index
    %22 = vector.load %arg7[%c1_22, %c0_23, %c0_24] : memref<18x24x128xf32, #tpu.memory_space<vmem>>, vector<16x16x128xf32>
    %23 = vector.shape_cast %22 : vector<16x16x128xf32> to vector<256x128xf32>
    %c1_25 = arith.constant 1 : index
    %c0_26 = arith.constant 0 : index
    %c0_27 = arith.constant 0 : index
    %c0_28 = arith.constant 0 : index
    %24 = vector.load %arg4[%c1_25, %c0_26, %c0_27, %c0_28] : memref<3x3x128x128xf32, #tpu.memory_space<vmem>>, vector<1x1x128x128xf32>
    %25 = vector.shape_cast %24 : vector<1x1x128x128xf32> to vector<128x128xf32>
    %cst_29 = arith.constant dense<0.000000e+00> : vector<256x128xf32>
    %26 = tpu.matmul %23, %25, %cst_29 {dimension_numbers = #tpu.dot_dimension_numbers<[1], [0], [0], [1], [0, 0, 1, 1], [], []>} : vector<256x128xf32>, vector<128x128xf32>, vector<256x128xf32> -> vector<256x128xf32>
    %27 = arith.addf %21, %26 : vector<256x128xf32>
    %c1_30 = arith.constant 1 : index
    %c1_31 = arith.constant 1 : index
    %c0_32 = arith.constant 0 : index
    %28 = vector.load %arg7[%c1_30, %c1_31, %c0_32] : memref<18x24x128xf32, #tpu.memory_space<vmem>>, vector<16x16x128xf32>
    %29 = vector.shape_cast %28 : vector<16x16x128xf32> to vector<256x128xf32>
    %c1_33 = arith.constant 1 : index
    %c1_34 = arith.constant 1 : index
    %c0_35 = arith.constant 0 : index
    %c0_36 = arith.constant 0 : index
    %30 = vector.load %arg4[%c1_33, %c1_34, %c0_35, %c0_36] : memref<3x3x128x128xf32, #tpu.memory_space<vmem>>, vector<1x1x128x128xf32>
    %31 = vector.shape_cast %30 : vector<1x1x128x128xf32> to vector<128x128xf32>
    %cst_37 = arith.constant dense<0.000000e+00> : vector<256x128xf32>
    %32 = tpu.matmul %29, %31, %cst_37 {dimension_numbers = #tpu.dot_dimension_numbers<[1], [0], [0], [1], [0, 0, 1, 1], [], []>} : vector<256x128xf32>, vector<128x128xf32>, vector<256x128xf32> -> vector<256x128xf32>
    %33 = arith.addf %27, %32 : vector<256x128xf32>
    %c1_38 = arith.constant 1 : index
    %c2_39 = arith.constant 2 : index
    %c0_40 = arith.constant 0 : index
    %34 = vector.load %arg7[%c1_38, %c2_39, %c0_40] : memref<18x24x128xf32, #tpu.memory_space<vmem>>, vector<16x16x128xf32>
    %35 = vector.shape_cast %34 : vector<16x16x128xf32> to vector<256x128xf32>
    %c1_41 = arith.constant 1 : index
    %c2_42 = arith.constant 2 : index
    %c0_43 = arith.constant 0 : index
    %c0_44 = arith.constant 0 : index
    %36 = vector.load %arg4[%c1_41, %c2_42, %c0_43, %c0_44] : memref<3x3x128x128xf32, #tpu.memory_space<vmem>>, vector<1x1x128x128xf32>
    %37 = vector.shape_cast %36 : vector<1x1x128x128xf32> to vector<128x128xf32>
    %cst_45 = arith.constant dense<0.000000e+00> : vector<256x128xf32>
    %38 = tpu.matmul %35, %37, %cst_45 {dimension_numbers = #tpu.dot_dimension_numbers<[1], [0], [0], [1], [0, 0, 1, 1], [], []>} : vector<256x128xf32>, vector<128x128xf32>, vector<256x128xf32> -> vector<256x128xf32>
    %39 = arith.addf %33, %38 : vector<256x128xf32>
    %c2_46 = arith.constant 2 : index
    %c0_47 = arith.constant 0 : index
    %c0_48 = arith.constant 0 : index
    %40 = vector.load %arg7[%c2_46, %c0_47, %c0_48] : memref<18x24x128xf32, #tpu.memory_space<vmem>>, vector<16x16x128xf32>
    %41 = vector.shape_cast %40 : vector<16x16x128xf32> to vector<256x128xf32>
    %c2_49 = arith.constant 2 : index
    %c0_50 = arith.constant 0 : index
    %c0_51 = arith.constant 0 : index
    %c0_52 = arith.constant 0 : index
    %42 = vector.load %arg4[%c2_49, %c0_50, %c0_51, %c0_52] : memref<3x3x128x128xf32, #tpu.memory_space<vmem>>, vector<1x1x128x128xf32>
    %43 = vector.shape_cast %42 : vector<1x1x128x128xf32> to vector<128x128xf32>
    %cst_53 = arith.constant dense<0.000000e+00> : vector<256x128xf32>
    %44 = tpu.matmul %41, %43, %cst_53 {dimension_numbers = #tpu.dot_dimension_numbers<[1], [0], [0], [1], [0, 0, 1, 1], [], []>} : vector<256x128xf32>, vector<128x128xf32>, vector<256x128xf32> -> vector<256x128xf32>
    %45 = arith.addf %39, %44 : vector<256x128xf32>
    %c2_54 = arith.constant 2 : index
    %c1_55 = arith.constant 1 : index
    %c0_56 = arith.constant 0 : index
    %46 = vector.load %arg7[%c2_54, %c1_55, %c0_56] : memref<18x24x128xf32, #tpu.memory_space<vmem>>, vector<16x16x128xf32>
    %47 = vector.shape_cast %46 : vector<16x16x128xf32> to vector<256x128xf32>
    %c2_57 = arith.constant 2 : index
    %c1_58 = arith.constant 1 : index
    %c0_59 = arith.constant 0 : index
    %c0_60 = arith.constant 0 : index
    %48 = vector.load %arg4[%c2_57, %c1_58, %c0_59, %c0_60] : memref<3x3x128x128xf32, #tpu.memory_space<vmem>>, vector<1x1x128x128xf32>
    %49 = vector.shape_cast %48 : vector<1x1x128x128xf32> to vector<128x128xf32>
    %cst_61 = arith.constant dense<0.000000e+00> : vector<256x128xf32>
    %50 = tpu.matmul %47, %49, %cst_61 {dimension_numbers = #tpu.dot_dimension_numbers<[1], [0], [0], [1], [0, 0, 1, 1], [], []>} : vector<256x128xf32>, vector<128x128xf32>, vector<256x128xf32> -> vector<256x128xf32>
    %51 = arith.addf %45, %50 : vector<256x128xf32>
    %c2_62 = arith.constant 2 : index
    %c2_63 = arith.constant 2 : index
    %c0_64 = arith.constant 0 : index
    %52 = vector.load %arg7[%c2_62, %c2_63, %c0_64] : memref<18x24x128xf32, #tpu.memory_space<vmem>>, vector<16x16x128xf32>
    %53 = vector.shape_cast %52 : vector<16x16x128xf32> to vector<256x128xf32>
    %c2_65 = arith.constant 2 : index
    %c2_66 = arith.constant 2 : index
    %c0_67 = arith.constant 0 : index
    %c0_68 = arith.constant 0 : index
    %54 = vector.load %arg4[%c2_65, %c2_66, %c0_67, %c0_68] : memref<3x3x128x128xf32, #tpu.memory_space<vmem>>, vector<1x1x128x128xf32>
    %55 = vector.shape_cast %54 : vector<1x1x128x128xf32> to vector<128x128xf32>
    %cst_69 = arith.constant dense<0.000000e+00> : vector<256x128xf32>
    %56 = tpu.matmul %53, %55, %cst_69 {dimension_numbers = #tpu.dot_dimension_numbers<[1], [0], [0], [1], [0, 0, 1, 1], [], []>} : vector<256x128xf32>, vector<128x128xf32>, vector<256x128xf32> -> vector<256x128xf32>
    %57 = arith.addf %51, %56 : vector<256x128xf32>
    %c0_70 = arith.constant 0 : index
    %c0_71 = arith.constant 0 : index
    %58 = vector.load %arg5[%c0_70, %c0_71] : memref<1x128xf32, #tpu.memory_space<vmem>>, vector<1x128xf32>
    %59 = vector.broadcast %58 : vector<1x128xf32> to vector<256x128xf32>
    %60 = arith.addf %57, %59 : vector<256x128xf32>
    %cst_72 = arith.constant 2.000000e+01 : f32
    %61 = vector.broadcast %cst_72 : f32 to vector<256x128xf32>
    %62 = arith.minimumf %60, %61 : vector<256x128xf32>
    %63 = math.exp %62 : vector<256x128xf32>
    %cst_73 = arith.constant 2.000000e+00 : f32
    %64 = vector.broadcast %cst_73 : f32 to vector<256x128xf32>
    %65 = arith.addf %63, %64 : vector<256x128xf32>
    %66 = arith.mulf %63, %65 : vector<256x128xf32>
    %67 = arith.mulf %60, %66 : vector<256x128xf32>
    %cst_74 = arith.constant 2.000000e+00 : f32
    %68 = vector.broadcast %cst_74 : f32 to vector<256x128xf32>
    %69 = arith.addf %66, %68 : vector<256x128xf32>
    %70 = tpu.reciprocal %69 : vector<256x128xf32> -> vector<256x128xf32>
    %71 = arith.mulf %67, %70 : vector<256x128xf32>
    %cst_75 = arith.constant 2.000000e+01 : f32
    %72 = vector.broadcast %cst_75 : f32 to vector<256x128xf32>
    %73 = arith.cmpf ogt, %60, %72 : vector<256x128xf32>
    %74 = arith.select %73, %60, %71 : vector<256x128xi1>, vector<256x128xf32>
    %75 = vector.shape_cast %74 : vector<256x128xf32> to vector<1x16x16x128xf32>
    %c0_76 = arith.constant 0 : index
    %c0_77 = arith.constant 0 : index
    %c0_78 = arith.constant 0 : index
    %c0_79 = arith.constant 0 : index
    %76 = vector.load %arg6[%c0_76, %c0_77, %c0_78, %c0_79] : memref<1x16x16x128xf32, #tpu.memory_space<vmem>>, vector<1x16x16x128xf32>
    tpu.vector_store %arg6[%c0_76, %c0_77, %c0_78, %c0_79], %75 {strides = array<i32>} : memref<1x16x16x128xf32, #tpu.memory_space<vmem>>, vector<1x16x16x128xf32>,
    return
  }
  func.func @transform_1(%arg0: i32, %arg1: i32, %arg2: i32) -> (i32, i32, i32, i32) {
    %c0_i32 = arith.constant 0 : i32
    %c0_i32_0 = arith.constant 0 : i32
    %c0_i32_1 = arith.constant 0 : i32
    %c0_i32_2 = arith.constant 0 : i32
    return %c0_i32, %c0_i32_0, %c0_i32_1, %arg2 : i32, i32, i32, i32
  }
  func.func @transform_2(%arg0: i32, %arg1: i32, %arg2: i32) -> (i32, i32) {
    %c0_i32 = arith.constant 0 : i32
    %c0_i32_0 = arith.constant 0 : i32
    return %c0_i32, %arg2 : i32, i32
  }
  func.func @transform_3(%arg0: i32, %arg1: i32, %arg2: i32) -> (i32, i32, i32, i32) {
    %c0_i32 = arith.constant 0 : i32
    %c0_i32_0 = arith.constant 0 : i32
    return %arg0, %arg1, %c0_i32, %arg2 : i32, i32, i32, i32
  }
}

</mosaic_0001>

<bundles_post_ra>
// kernel: conv_block_forward.1
= control target key start
LH: loop header
LB: loop body
LE: loop exit
PB: predicated region body
PF: predicated region fallthrough
CT: control target
= control target key end

     0   :  { %s3370_s12 = smov 0   ;;  %s3372_s13 = smov 0   ;;  %s4815_s0 = inlined_call_operand.vmem [shape: f32[2,18,24,128], index: 0, kind: input, shape index: {}]   ;;  %s4816_s1 = inlined_call_operand.vmem [shape: f32[3,3,128,128], index: 1, kind: input, shape index: {}]   ;;  %s4817_s2 = inlined_call_operand.vmem [shape: f32[1,128], index: 2, kind: input, shape index: {}]   ;;  %s4818_s3 = inlined_call_operand.vmem [shape: f32[2,16,16,128], index: 3, kind: output, shape index: {}]  }
   0x1   :  { %s3374_s14 = smov 0  }
   0x2 LB: > { %s32_s15 = sadd.s32 1, %s3344_s13  ;;  %p2986_p0 = scmp.ge.s32.totalorder %s3348_s14, 1  ;;  %s3348_s14 = sphi %s3374_s14, %s13_s14   ;;  %s3344_s13 = sphi %s3372_s13, %s4822_s13   ;;  %s3340_s12 = sphi %s3370_s12, %s4821_s12  }
   0x3   : > { %p34_p1 = scmp.ge.s32.totalorder %s32_s15, 2  ;;  %p143_p2 = scmp.lt.s32.totalorder %s3348_s14, 3 }
   0x5   : > { %s4824_s15 = smov (%p34_p1, %s32_s15), 0  ;;  %p144_p3 = pnand %p2986_p0, %p143_p2 }
   0x6   : > { %p183_p4 = scmp.lt.s32.totalorder (!%p144_p3), %s3340_s12, 1  ;;  %s202_s16 = smul.u32 (!%p144_p3), 432, %s3340_s12 }
   0x7   : > { %147 = sbr.rel (%p144_p3) target bundleno = 847 (0x34f), region = 28 }
   0x8   : > { %s3391_s19 = scalar_lea.vmem (!%p144_p3), %s4815_s0, %s202_s16 }
   0xc   : > { %s4826_s12 = smov (!%p183_p4, %s3340_s12), 1  ;;  %v215_v0 = vld [vmem:[%s3391_s19] sm:$0xff]  ;;  %v217_v1 = vld [vmem:[%s3391_s19 + $0x8] sm:$0xff]  ;;  %v219_v2 = vld [vmem:[%s3391_s19 + $0x10] sm:$0xff] }
   0xd   : > { %s3120_s20 = sshll.u32 %s4826_s12, 8  ;;  %216 = vst [vmem:[#allocation2] sm:$0xff] %v215_v0  ;;  %v221_v3 = vld [vmem:[%s3391_s19 + $0x18] sm:$0xff]  ;;  %v223_v4 = vld [vmem:[%s3391_s19 + $0x20] sm:$0xff]  ;;  %v225_v5 = vld [vmem:[%s3391_s19 + $0x28] sm:$0xff] }
   0xe   : > { %s3399_s23 = scalar_lea.vmem %s4818_s3, %s3120_s20  ;;  %218 = vst [vmem:[#allocation2 + $0x8] sm:$0xff] %v217_v1  ;;  %v227_v6 = vld [vmem:[%s3391_s19 + $0x30] sm:$0xff]  ;;  %v229_v7 = vld [vmem:[%s3391_s19 + $0x38] sm:$0xff]  ;;  %v231_v8 = vld [vmem:[%s3391_s19 + $0x40] sm:$0xff] }
   0xf   : > { %220 = vst [vmem:[#allocation2 + $0x10] sm:$0xff] %v219_v2  ;;  %v233_v9 = vld [vmem:[%s3391_s19 + $0x48] sm:$0xff]  ;;  %v235_v10 = vld [vmem:[%s3391_s19 + $0x50] sm:$0xff]  ;;  %v237_v11 = vld [vmem:[%s3391_s19 + $0x58] sm:$0xff] }
  0x10   : > { %222 = vst [vmem:[#allocation2 + $0x18] sm:$0xff] %v221_v3  ;;  %v239_v12 = vld [vmem:[%s3391_s19 + $0x60] sm:$0xff]  ;;  %v241_v13 = vld [vmem:[%s3391_s19 + $0x68] sm:$0xff]  ;;  %v243_v14 = vld [vmem:[%s3391_s19 + $0x70] sm:$0xff] }
  0x11   : > { %224 = vst [vmem:[#allocation2 + $0x20] sm:$0xff] %v223_v4  ;;  %v245_v15 = vld [vmem:[%s3391_s19 + $0x78] sm:$0xff]  ;;  %v247_v16 = vld [vmem:[%s3391_s19 + $0x80] sm:$0xff]  ;;  %v249_v17 = vld [vmem:[%s3391_s19 + $0x88] sm:$0xff] }
  0x12   : > { %226 = vst [vmem:[#allocation2 + $0x28] sm:$0xff] %v225_v5  ;;  %v251_v18 = vld [vmem:[%s3391_s19 + $0x90] sm:$0xff]  ;;  %v253_v19 = vld [vmem:[%s3391_s19 + $0x98] sm:$0xff]  ;;  %v255_v20 = vld [vmem:[%s3391_s19 + $0xa0] sm:$0xff] }
  0x13   : > { %228 = vst [vmem:[#allocation2 + $0x30] sm:$0xff] %v227_v6  ;;  %v257_v21 = vld [vmem:[%s3391_s19 + $0xa8] sm:$0xff]  ;;  %v259_v22 = vld [vmem:[%s3391_s19 + $0xb0] sm:$0xff]  ;;  %v261_v23 = vld [vmem:[%s3391_s19 + $0xb8] sm:$0xff] }
  0x14   : > { %230 = vst [vmem:[#allocation2 + $0x38] sm:$0xff] %v229_v7  ;;  %v263_v24 = vld [vmem:[%s3391_s19 + $0xc0] sm:$0xff]  ;;  %v265_v25 = vld [vmem:[%s3391_s19 + $0xc8] sm:$0xff]  ;;  %v267_v26 = vld [vmem:[%s3391_s19 + $0xd0] sm:$0xff] }
  0x15   : > { %232 = vst [vmem:[#allocation2 + $0x40] sm:$0xff] %v231_v8  ;;  %v269_v27 = vld [vmem:[%s3391_s19 + $0xd8] sm:$0xff]  ;;  %v271_v28 = vld [vmem:[%s3391_s19 + $0xe0] sm:$0xff]  ;;  %v273_v29 = vld [vmem:[%s3391_s19 + $0xe8] sm:$0xff] }
  0x16   : > { %234 = vst [vmem:[#allocation2 + $0x48] sm:$0xff] %v233_v9  ;;  %v275_v30 = vld [vmem:[%s3391_s19 + $0xf0] sm:$0xff]  ;;  %v277_v31 = vld [vmem:[%s3391_s19 + $0xf8] sm:$0xff]  ;;  %v279_v32 = vld [vmem:[%s3391_s19 + $0x100] sm:$0xff] }
  0x17   : > { %236 = vst [vmem:[#allocation2 + $0x50] sm:$0xff] %v235_v10  ;;  %v281_v33 = vld [vmem:[%s3391_s19 + $0x108] sm:$0xff]  ;;  %v283_v34 = vld [vmem:[%s3391_s19 + $0x110] sm:$0xff]  ;;  %v285_v35 = vld [vmem:[%s3391_s19 + $0x118] sm:$0xff] }
  0x18   : > { %238 = vst [vmem:[#allocation2 + $0x58] sm:$0xff] %v237_v11  ;;  %v287_v36 = vld [vmem:[%s3391_s19 + $0x120] sm:$0xff]  ;;  %v289_v37 = vld [vmem:[%s3391_s19 + $0x128] sm:$0xff]  ;;  %v291_v38 = vld [vmem:[%s3391_s19 + $0x130] sm:$0xff] }
  0x19   : > { %240 = vst [vmem:[#allocation2 + $0x60] sm:$0xff] %v239_v12  ;;  %v293_v39 = vld [vmem:[%s3391_s19 + $0x138] sm:$0xff]  ;;  %v295_v40 = vld [vmem:[%s3391_s19 + $0x140] sm:$0xff]  ;;  %v297_v41 = vld [vmem:[%s3391_s19 + $0x148] sm:$0xff] }
  0x1a   : > { %242 = vst [vmem:[#allocation2 + $0x68] sm:$0xff] %v241_v13  ;;  %v299_v42 = vld [vmem:[%s3391_s19 + $0x150] sm:$0xff]  ;;  %v301_v43 = vld [vmem:[%s3391_s19 + $0x158] sm:$0xff]  ;;  %v303_v44 = vld [vmem:[%s3391_s19 + $0x160] sm:$0xff] }
  0x1b   : > { %244 = vst [vmem:[#allocation2 + $0x70] sm:$0xff] %v243_v14  ;;  %v305_v45 = vld [vmem:[%s3391_s19 + $0x168] sm:$0xff]  ;;  %v307_v46 = vld [vmem:[%s3391_s19 + $0x170] sm:$0xff]  ;;  %v309_v47 = vld [vmem:[%s3391_s19 + $0x178] sm:$0xff] }
  0x1c   : > { %246 = vst [vmem:[#allocation2 + $0x78] sm:$0xff] %v245_v15  ;;  %v311_v48 = vld [vmem:[%s3391_s19 + $0x180] sm:$0xff]  ;;  %v313_v49 = vld [vmem:[%s3391_s19 + $0x188] sm:$0xff]  ;;  %v315_v50 = vld [vmem:[%s3391_s19 + $0x190] sm:$0xff] }
  0x1d   : > { %248 = vst [vmem:[#allocation2 + $0x80] sm:$0xff] %v247_v16  ;;  %v317_v51 = vld [vmem:[%s3391_s19 + $0x198] sm:$0xff]  ;;  %v319_v52 = vld [vmem:[%s3391_s19 + $0x1a0] sm:$0xff]  ;;  %v321_v53 = vld [vmem:[%s3391_s19 + $0x1a8] sm:$0xff] }
  0x1e   : > { %250 = vst [vmem:[#allocation2 + $0x88] sm:$0xff] %v249_v17 }
  0x1f   : > { %252 = vst [vmem:[#allocation2 + $0x90] sm:$0xff] %v251_v18 }
  0x20   : > { %254 = vst [vmem:[#allocation2 + $0x98] sm:$0xff] %v253_v19 }
  0x21   : > { %256 = vst [vmem:[#allocation2 + $0xa0] sm:$0xff] %v255_v20 }
  0x22   : > { %258 = vst [vmem:[#allocation2 + $0xa8] sm:$0xff] %v257_v21 }
  0x23   : > { %260 = vst [vmem:[#allocation2 + $0xb0] sm:$0xff] %v259_v22 }
  0x24   : > { %262 = vst [vmem:[#allocation2 + $0xb8] sm:$0xff] %v261_v23 }
  0x25   : > { %264 = vst [vmem:[#allocation2 + $0xc0] sm:$0xff] %v263_v24 }
  0x26   : > { %266 = vst [vmem:[#allocation2 + $0xc8] sm:$0xff] %v265_v25 }
  0x27   : > { %268 = vst [vmem:[#allocation2 + $0xd0] sm:$0xff] %v267_v26 }
  0x28   : > { %270 = vst [vmem:[#allocation2 + $0xd8] sm:$0xff] %v269_v27 }
  0x29   : > { %272 = vst [vmem:[#allocation2 + $0xe0] sm:$0xff] %v271_v28 }
  0x2a   : > { %274 = vst [vmem:[#allocation2 + $0xe8] sm:$0xff] %v273_v29 }
  0x2b   : > { %276 = vst [vmem:[#allocation2 + $0xf0] sm:$0xff] %v275_v30 }
  0x2c   : > { %278 = vst [vmem:[#allocation2 + $0xf8] sm:$0xff] %v277_v31 }
  0x2d   : > { %280 = vst [vmem:[#allocation2 + $0x100] sm:$0xff] %v279_v32 }
  0x2e   : > { %282 = vst [vmem:[#allocation2 + $0x108] sm:$0xff] %v281_v33 }
  0x2f   : > { %284 = vst [vmem:[#allocation2 + $0x110] sm:$0xff] %v283_v34 }
  0x30   : > { %286 = vst [vmem:[#allocation2 + $0x118] sm:$0xff] %v285_v35 }
  0x31   : > { %288 = vst [vmem:[#allocation2 + $0x120] sm:$0xff] %v287_v36 }
  0x32   : > { %290 = vst [vmem:[#allocation2 + $0x128] sm:$0xff] %v289_v37 }
  0x33   : > { %292 = vst [vmem:[#allocation2 + $0x130] sm:$0xff] %v291_v38 }
  0x34   : > { %294 = vst [vmem:[#allocation2 + $0x138] sm:$0xff] %v293_v39 }
  0x35   : > { %296 = vst [vmem:[#allocation2 + $0x140] sm:$0xff] %v295_v40 }
  0x36   : > { %298 = vst [vmem:[#allocation2 + $0x148] sm:$0xff] %v297_v41 }
  0x37   : > { %300 = vst [vmem:[#allocation2 + $0x150] sm:$0xff] %v299_v42 }
  0x38   : > { %302 = vst [vmem:[#allocation2 + $0x158] sm:$0xff] %v301_v43 }
  0x39   : > { %304 = vst [vmem:[#allocation2 + $0x160] sm:$0xff] %v303_v44 }
  0x3a   : > { %306 = vst [vmem:[#allocation2 + $0x168] sm:$0xff] %v305_v45 }
  0x3b   : > { %308 = vst [vmem:[#allocation2 + $0x170] sm:$0xff] %v307_v46 }
  0x3c   : > { %310 = vst [vmem:[#allocation2 + $0x178] sm:$0xff] %v309_v47 }
  0x3d   : > { %312 = vst [vmem:[#allocation2 + $0x180] sm:$0xff] %v311_v48 }
  0x3e   : > { %314 = vst [vmem:[#allocation2 + $0x188] sm:$0xff] %v313_v49 }
  0x3f   : > { %316 = vst [vmem:[#allocation2 + $0x190] sm:$0xff] %v315_v50 }
  0x40   : > { %318 = vst [vmem:[#allocation2 + $0x198] sm:$0xff] %v317_v51 }
  0x41   : > { %320 = vst [vmem:[#allocation2 + $0x1a0] sm:$0xff] %v319_v52 }
  0x42   : > { %322 = vst [vmem:[#allocation2 + $0x1a8] sm:$0xff] %v321_v53 }
  0x43   : > { %328 = vsyncadd [#allocation3], 6912 }
  0x44   : > { %3336 = dma.done.wait [#allocation3], 6912 }
  0x45   : > { %3337 = vsyncadd [#allocation3], 4294960384  ;;  %v3004_v54 = vld [vmem:[%s4816_s1 + $0xf8] sm:$0xff]  ;;  %v3003_v55 = vld [vmem:[%s4816_s1 + $0xf0] sm:$0xff] }
  0x46   : > { %3121 = vmatpush.msra.mxu1 %v3004_v54  ;;  %3122 = vmatpush.msra.mxu2 %v3004_v54  ;;  %v3002_v56 = vld [vmem:[%s4816_s1 + $0xe8] sm:$0xff]  ;;  %v3001_v57 = vld [vmem:[%s4816_s1 + $0xe0] sm:$0xff]  ;;  %v3000_v58 = vld [vmem:[%s4816_s1 + $0xd8] sm:$0xff] }
  0x47   : > { %3123 = vmatpush.msra.mxu3 %v3004_v54  ;;  %430 = vmatpush.msra.mxu0 %v3004_v54  ;;  %v2999_v59 = vld [vmem:[%s4816_s1 + $0xd0] sm:$0xff]  ;;  %v2998_v60 = vld [vmem:[%s4816_s1 + $0xc8] sm:$0xff]  ;;  %v2997_v61 = vld [vmem:[%s4816_s1 + $0xc0] sm:$0xff] }
  0x48   : > { %3124 = vmatpush.msra.mxu1 %v3003_v55  ;;  %3125 = vmatpush.msra.mxu2 %v3003_v55  ;;  %v2996_v62 = vld [vmem:[%s4816_s1 + $0xb8] sm:$0xff]  ;;  %v2995_v63 = vld [vmem:[%s4816_s1 + $0xb0] sm:$0xff]  ;;  %v2994_v0 = vld [vmem:[%s4816_s1 + $0xa8] sm:$0xff] }
  0x49   : > { %3126 = vmatpush.msra.mxu3 %v3003_v55  ;;  %431 = vmatpush.msra.mxu0 %v3003_v55  ;;  %v2993_v1 = vld [vmem:[%s4816_s1 + $0xa0] sm:$0xff]  ;;  %v2992_v2 = vld [vmem:[%s4816_s1 + $0x98] sm:$0xff]  ;;  %v2991_v3 = vld [vmem:[%s4816_s1 + $0x90] sm:$0xff] }
  0x4a   : > { %3127 = vmatpush.msra.mxu1 %v3002_v56  ;;  %3128 = vmatpush.msra.mxu2 %v3002_v56  ;;  %v2990_v4 = vld [vmem:[%s4816_s1 + $0x88] sm:$0xff]  ;;  %v2989_v5 = vld [vmem:[%s4816_s1 + $0x80] sm:$0xff]  ;;  %v3020_v8 = vld [vmem:[%s4816_s1 + $0x178] sm:$0xff] }
  0x4b   : > { %3129 = vmatpush.msra.mxu3 %v3002_v56  ;;  %432 = vmatpush.msra.mxu0 %v3002_v56  ;;  %v3500_v6 = vld [vmem:[#allocation2 + $0x61] sm:$0xff]  ;;  %v380_v10 = vld [vmem:[%s4816_s1 + $0x78] sm:$0xff]  ;;  %v3019_v12 = vld [vmem:[%s4816_s1 + $0x170] sm:$0xff] }
  0x4c   : > { %3130 = vmatpush.msra.mxu1 %v3001_v57  ;;  %3131 = vmatpush.msra.mxu2 %v3001_v57  ;;  %v3502_v7 = vld [vmem:[#allocation2 + $0xc1] sm:$0xff]  ;;  %v3036_v11 = vld [vmem:[%s4816_s1 + $0x1f8] sm:$0xff]  ;;  %v379_v13 = vld [vmem:[%s4816_s1 + $0x70] sm:$0xff] }
  0x4d   : > { %3132 = vmatpush.msra.mxu3 %v3001_v57  ;;  %433 = vmatpush.msra.mxu0 %v3001_v57  ;;  %v405_v9 = vld [vmem:[#allocation2 + $0x121] sm:$0xff]  ;;  %v3035_v14 = vld [vmem:[%s4816_s1 + $0x1f0] sm:$0xff]  ;;  %v3052_v19 = vld [vmem:[%s4816_s1 + $0x278] sm:$0xff] }
  0x4e   : > { %3133 = vmatpush.msra.mxu1 %v3000_v58  ;;  %3134 = vmatpush.msra.mxu2 %v3000_v58  ;;  %v3018_v15 = vld [vmem:[%s4816_s1 + $0x168] sm:$0xff]  ;;  %v3017_v22 = vld [vmem:[%s4816_s1 + $0x160] sm:$0xff]  ;;  %v3051_v25 = vld [vmem:[%s4816_s1 + $0x270] sm:$0xff] }
  0x4f   : > { %3135 = vmatpush.msra.mxu3 %v3000_v58  ;;  %434 = vmatpush.msra.mxu0 %v3000_v58  ;;  %v381_v16 = vld [vmem:[#allocation2 + $0x1] sm:$0xff]  ;;  %v3536_v20 = vld [vmem:[#allocation2 + $0x69] sm:$0xff]  ;;  %v3016_v27 = vld [vmem:[%s4816_s1 + $0x158] sm:$0xff] }
  0x50   : > { %3136 = vmatpush.msra.mxu1 %v2999_v59  ;;  %3137 = vmatpush.msra.mxu2 %v2999_v59  ;;  %v378_v17 = vld [vmem:[%s4816_s1 + $0x68] sm:$0xff]  ;;  %v3033_v23 = vld [vmem:[%s4816_s1 + $0x1e0] sm:$0xff]  ;;  %v3032_v28 = vld [vmem:[%s4816_s1 + $0x1d8] sm:$0xff] }
  0x51   : > { %3138 = vmatpush.msra.mxu3 %v2999_v59  ;;  %435 = vmatpush.msra.mxu0 %v2999_v59  ;;  %v3034_v18 = vld [vmem:[%s4816_s1 + $0x1e8] sm:$0xff]  ;;  %v377_v26 = vld [vmem:[%s4816_s1 + $0x60] sm:$0xff]  ;;  %v376_v30 = vld [vmem:[%s4816_s1 + $0x58] sm:$0xff] }
  0x52   : > { %3139 = vmatpush.msra.mxu1 %v2998_v60  ;;  %3140 = vmatpush.msra.mxu2 %v2998_v60  ;;  %v3538_v21 = vld [vmem:[#allocation2 + $0xc9] sm:$0xff]  ;;  %v3049_v34 = vld [vmem:[%s4816_s1 + $0x260] sm:$0xff]  ;;  %v3048_v41 = vld [vmem:[%s4816_s1 + $0x258] sm:$0xff] }
  0x53   : > { %3141 = vmatpush.msra.mxu3 %v2998_v60  ;;  %436 = vmatpush.msra.mxu0 %v2998_v60  ;;  %v406_v24 = vld [vmem:[#allocation2 + $0x129] sm:$0xff]  ;;  %v3578_v36 = vld [vmem:[#allocation2 + $0x79] sm:$0xff]  ;;  %v3622_v52 = vld [vmem:[#allocation2 + $0x81] sm:$0xff] }
  0x54   : > { %3142 = vmatpush.msra.mxu1 %v2997_v61  ;;  %3143 = vmatpush.msra.mxu2 %v2997_v61  ;;  %v3050_v29 = vld [vmem:[%s4816_s1 + $0x268] sm:$0xff]  ;;  %v3015_v31 = vld [vmem:[%s4816_s1 + $0x150] sm:$0xff]  ;;  %v3580_v37 = vld [vmem:[#allocation2 + $0xd9] sm:$0xff] }
  0x55   : > { %3144 = vmatpush.msra.mxu3 %v2997_v61  ;;  %437 = vmatpush.msra.mxu0 %v2997_v61  ;;  %v382_v32 = vld [vmem:[#allocation2 + $0x9] sm:$0xff]  ;;  %v407_v40 = vld [vmem:[#allocation2 + $0x139] sm:$0xff]  ;;  %v3624_v53 = vld [vmem:[#allocation2 + $0xe1] sm:$0xff] }
  0x56   : > { %3145 = vmatpush.msra.mxu1 %v2996_v62  ;;  %3146 = vmatpush.msra.mxu2 %v2996_v62  ;;  %v3031_v33 = vld [vmem:[%s4816_s1 + $0x1d0] sm:$0xff]  ;;  %v3014_v38 = vld [vmem:[%s4816_s1 + $0x148] sm:$0xff]  ;;  %v3013_v43 = vld [vmem:[%s4816_s1 + $0x140] sm:$0xff] }
  0x57   : > { %3147 = vmatpush.msra.mxu3 %v2996_v62  ;;  %438 = vmatpush.msra.mxu0 %v2996_v62  ;;  %v375_v35 = vld [vmem:[%s4816_s1 + $0x50] sm:$0xff]  ;;  %v3030_v39 = vld [vmem:[%s4816_s1 + $0x1c8] sm:$0xff]  ;;  %v3029_v44 = vld [vmem:[%s4816_s1 + $0x1c0] sm:$0xff] }
  0x58   : > { %3148 = vmatpush.msra.mxu1 %v2995_v63  ;;  %3149 = vmatpush.msra.mxu2 %v2995_v63  ;;  %v374_v42 = vld [vmem:[%s4816_s1 + $0x48] sm:$0xff]  ;;  %v3047_v45 = vld [vmem:[%s4816_s1 + $0x250] sm:$0xff]  ;;  %v373_v46 = vld [vmem:[%s4816_s1 + $0x40] sm:$0xff] }
  0x59   : > { %3150 = vmatpush.msra.mxu3 %v2995_v63  ;;  %439 = vmatpush.msra.mxu0 %v2995_v63  ;;  %v3012_v47 = vld [vmem:[%s4816_s1 + $0x138] sm:$0xff]  ;;  %v3046_v50 = vld [vmem:[%s4816_s1 + $0x248] sm:$0xff]  ;;  %v3011_v54 = vld [vmem:[%s4816_s1 + $0x130] sm:$0xff] }
  0x5a   : > { %3151 = vmatpush.msra.mxu1 %v2994_v0  ;;  %3152 = vmatpush.msra.mxu2 %v2994_v0  ;;  %v3611_v48 = vld [vmem:[#allocation2 + $0x19] sm:$0xff]  ;;  %v3027_v55 = vld [vmem:[%s4816_s1 + $0x1b0] sm:$0xff]  ;;  %v408_v56 = vld [vmem:[#allocation2 + $0x141] sm:$0xff] }
  0x5b   : > { %3153 = vmatpush.msra.mxu3 %v2994_v0  ;;  %440 = vmatpush.msra.mxu0 %v2994_v0  ;;  %v3028_v49 = vld [vmem:[%s4816_s1 + $0x1b8] sm:$0xff]  ;;  %v3045_v57 = vld [vmem:[%s4816_s1 + $0x240] sm:$0xff]  ;;  %v371_v58 = vld [vmem:[%s4816_s1 + $0x30] sm:$0xff] }
  0x5c   : > { %3154 = vmatpush.msra.mxu1 %v2993_v1  ;;  %3155 = vmatpush.msra.mxu2 %v2993_v1  ;;  %v372_v51 = vld [vmem:[%s4816_s1 + $0x38] sm:$0xff]  ;;  %v3010_v59 = vld [vmem:[%s4816_s1 + $0x128] sm:$0xff]  ;;  %v3009_v63 = vld [vmem:[%s4816_s1 + $0x120] sm:$0xff] }
  0x5d   : > { %3156 = vmatpush.msra.mxu3 %v2993_v1  ;;  %441 = vmatpush.msra.mxu0 %v2993_v1  ;;  %v3026_v60 = vld [vmem:[%s4816_s1 + $0x1a8] sm:$0xff]  ;;  %v3044_v61 = vld [vmem:[%s4816_s1 + $0x238] sm:$0xff]  ;;  %v3025_v1 = vld [vmem:[%s4816_s1 + $0x1a0] sm:$0xff] }
  0x5e   : > { %3157 = vmatpush.msra.mxu1 %v2992_v2  ;;  %3158 = vmatpush.msra.mxu2 %v2992_v2  ;;  %v370_v62 = vld [vmem:[%s4816_s1 + $0x28] sm:$0xff] }
  0x5f   : > { %3159 = vmatpush.msra.mxu3 %v2992_v2  ;;  %442 = vmatpush.msra.mxu0 %v2992_v2  ;;  %v3656_v0 = vld [vmem:[#allocation2 + $0x21] sm:$0xff]  ;;  %v3043_v2 = vld [vmem:[%s4816_s1 + $0x230] sm:$0xff] }
  0x60   : > { %3160 = vmatpush.msra.mxu1 %v2991_v3  ;;  %3161 = vmatpush.msra.mxu2 %v2991_v3 }
  0x61   : > { %3162 = vmatpush.msra.mxu3 %v2991_v3  ;;  %443 = vmatpush.msra.mxu0 %v2991_v3  ;;  %v369_v3 = vld [vmem:[%s4816_s1 + $0x20] sm:$0xff] }
  0x62   : > { %3163 = vmatpush.msra.mxu1 %v2990_v4  ;;  %3164 = vmatpush.msra.mxu2 %v2990_v4 }
  0x63   : > { %3165 = vmatpush.msra.mxu3 %v2990_v4  ;;  %444 = vmatpush.msra.mxu0 %v2990_v4  ;;  %v3667_v4 = vld [vmem:[#allocation2 + $0x91] sm:$0xff] }
  0x64   : > { %3166 = vmatpush.msra.mxu1 %v2989_v5  ;;  %3167 = vmatpush.msra.mxu2 %v2989_v5 }
  0x65   : > { %470 = vmatmul.f32.vlgmr.msra.gmra.mxu1 %v3500_v6  ;;  %494 = vmatmul.f32.vlgmr.msra.gmra.mxu2 %v3502_v7 }
  0x66   : > { %705 = vmatpush.msrb.mxu2 %v3020_v8  ;;  %3168 = vmatpush.msra.mxu3 %v2989_v5  ;;  %v3008_v8 = vld [vmem:[%s4816_s1 + $0x118] sm:$0xff] }
  0x67   : > { %518 = vmatmul.f32.vlgmr.msra.gmra.mxu3 %v405_v9  ;;  %543 = vmatpush.msrb.mxu1 %v380_v10  ;;  %v3024_v9 = vld [vmem:[%s4816_s1 + $0x198] sm:$0xff] }
  0x68   : > { %900 = vmatpush.msrb.mxu3 %v3036_v11  ;;  %706 = vmatpush.msrb.mxu2 %v3019_v12  ;;  %v409_v10 = vld [vmem:[#allocation2 + $0x151] sm:$0xff]  ;;  %v3042_v11 = vld [vmem:[%s4816_s1 + $0x228] sm:$0xff] }
  0x69   : > { %544 = vmatpush.msrb.mxu1 %v379_v13  ;;  %445 = vmatpush.msra.mxu0 %v2989_v5  ;;  %v3669_v5 = vld [vmem:[#allocation2 + $0xf1] sm:$0xff] }
  0x6a   : > { %901 = vmatpush.msrb.mxu3 %v3035_v14  ;;  %707 = vmatpush.msrb.mxu2 %v3018_v15  ;;  %v368_v12 = vld [vmem:[%s4816_s1 + $0x18] sm:$0xff]  ;;  %v3007_v13 = vld [vmem:[%s4816_s1 + $0x110] sm:$0xff]  ;;  %v3041_v15 = vld [vmem:[%s4816_s1 + $0x220] sm:$0xff] }
  0x6b   : > { %446 = vmatmul.f32.vlgmr.msra.gmra.mxu0 %v381_v16  ;;  %545 = vmatpush.msrb.mxu1 %v378_v17  ;;  %v3023_v14 = vld [vmem:[%s4816_s1 + $0x190] sm:$0xff]  ;;  %v3006_v17 = vld [vmem:[%s4816_s1 + $0x108] sm:$0xff] }
  0x6c   : > { %902 = vmatpush.msrb.mxu3 %v3034_v18  ;;  %1094 = vmatpush.msrb.mxu0 %v3052_v19  ;;  %v367_v16 = vld [vmem:[%s4816_s1 + $0x10] sm:$0xff]  ;;  %v3022_v19 = vld [vmem:[%s4816_s1 + $0x188] sm:$0xff] }
  0x6d   : > { %473 = vmatmul.f32.gmra.mxu1 %v3536_v20  ;;  %497 = vmatmul.f32.gmra.mxu2 %v3538_v21  ;;  %v3701_v18 = vld [vmem:[#allocation2 + $0x31] sm:$0xff] }
  0x6e   : > { %708 = vmatpush.msrb.mxu2 %v3017_v22  ;;  %903 = vmatpush.msrb.mxu3 %v3033_v23  ;;  %v3040_v22 = vld [vmem:[%s4816_s1 + $0x218] sm:$0xff]  ;;  %v366_v23 = vld [vmem:[%s4816_s1 + $0x8] sm:$0xff] }
  0x6f   : > { %521 = vmatmul.f32.gmra.mxu3 %v406_v24  ;;  %1095 = vmatpush.msrb.mxu0 %v3051_v25  ;;  %v3712_v24 = vld [vmem:[#allocation2 + $0x99] sm:$0xff] }
  0x70   : > { %546 = vmatpush.msrb.mxu1 %v377_v26  ;;  %709 = vmatpush.msrb.mxu2 %v3016_v27  ;;  %v3714_v25 = vld [vmem:[#allocation2 + $0xf9] sm:$0xff] }
  0x71   : > { %904 = vmatpush.msrb.mxu3 %v3032_v28  ;;  %1096 = vmatpush.msrb.mxu0 %v3050_v29  ;;  %v3005_v26 = vld [vmem:[%s4816_s1 + $0x100] sm:$0xff]  ;;  %v3039_v29 = vld [vmem:[%s4816_s1 + $0x210] sm:$0xff] }
  0x72   : > { %547 = vmatpush.msrb.mxu1 %v376_v30  ;;  %710 = vmatpush.msrb.mxu2 %v3015_v31  ;;  %v3021_v27 = vld [vmem:[%s4816_s1 + $0x180] sm:$0xff]  ;;  %v3084_v31 = vld [vmem:[%s4816_s1 + $0x378] sm:$0xff] }
  0x73   : > { %449 = vmatmul.f32.gmra.mxu0 %v382_v32  ;;  %905 = vmatpush.msrb.mxu3 %v3031_v33  ;;  %v410_v28 = vld [vmem:[#allocation2 + $0x159] sm:$0xff]  ;;  %v3038_v32 = vld [vmem:[%s4816_s1 + $0x208] sm:$0xff] }
  0x74   : > { %1097 = vmatpush.msrb.mxu0 %v3049_v34  ;;  %548 = vmatpush.msrb.mxu1 %v375_v35  ;;  %v365_v30 = vld [vmem:[%s4816_s1] sm:$0xff]  ;;  %v3100_v33 = vld [vmem:[%s4816_s1 + $0x3f8] sm:$0xff] }
  0x75   : > { %476 = vmatmul.f32.gmra.mxu1 %v3578_v36  ;;  %500 = vmatmul.f32.gmra.mxu2 %v3580_v37  ;;  %v3068_v34 = vld [vmem:[%s4816_s1 + $0x2f8] sm:$0xff] }
  0x76   : > { %711 = vmatpush.msrb.mxu2 %v3014_v38  ;;  %906 = vmatpush.msrb.mxu3 %v3030_v39  ;;  %v3743_v35 = vld [vmem:[#allocation2 + $0x39] sm:$0xff]  ;;  %v3748_v39 = vld [vmem:[#allocation2 + $0xa9] sm:$0xff] }
  0x77   : > { %524 = vmatmul.f32.gmra.mxu3 %v407_v40  ;;  %1098 = vmatpush.msrb.mxu0 %v3048_v41  ;;  %v3037_v38 = vld [vmem:[%s4816_s1 + $0x200] sm:$0xff]  ;;  %v3750_v40 = vld [vmem:[#allocation2 + $0x109] sm:$0xff]  ;;  %v3116_v41 = vld [vmem:[%s4816_s1 + $0x478] sm:$0xff] }
  0x78   : > { %549 = vmatpush.msrb.mxu1 %v374_v42  ;;  %712 = vmatpush.msrb.mxu2 %v3013_v43  ;;  %v411_v42 = vld [vmem:[#allocation2 + $0x169] sm:$0xff] }
  0x79   : > { %907 = vmatpush.msrb.mxu3 %v3029_v44  ;;  %1099 = vmatpush.msrb.mxu0 %v3047_v45  ;;  %v3083_v43 = vld [vmem:[%s4816_s1 + $0x370] sm:$0xff] }
  0x7a   : > { %550 = vmatpush.msrb.mxu1 %v373_v46  ;;  %713 = vmatpush.msrb.mxu2 %v3012_v47  ;;  %v3099_v44 = vld [vmem:[%s4816_s1 + $0x3f0] sm:$0xff] }
  0x7b   : > { %452 = vmatmul.f32.gmra.mxu0 %v3611_v48  ;;  %908 = vmatpush.msrb.mxu3 %v3028_v49  ;;  %v3067_v45 = vld [vmem:[%s4816_s1 + $0x2f0] sm:$0xff] }
  0x7c   : > { %1100 = vmatpush.msrb.mxu0 %v3046_v50  ;;  %551 = vmatpush.msrb.mxu1 %v372_v51  ;;  %v3767_v46 = vld [vmem:[#allocation2 + $0x49] sm:$0xff]  ;;  %v3769_v47 = vld [vmem:[#allocation2 + $0xb1] sm:$0xff] }
  0x7d   : > { %479 = vmatmul.f32.gmra.mxu1 %v3622_v52  ;;  %503 = vmatmul.f32.gmra.mxu2 %v3624_v53  ;;  %v3771_v49 = vld [vmem:[#allocation2 + $0x111] sm:$0xff] }
  0x7e   : > { %714 = vmatpush.msrb.mxu2 %v3011_v54  ;;  %909 = vmatpush.msrb.mxu3 %v3027_v55  ;;  %v412_v50 = vld [vmem:[#allocation2 + $0x171] sm:$0xff]  ;;  %v333_v55 = vld [vmem:[#allocation2] sm:$0xff] }
  0x7f   : > { %527 = vmatmul.f32.gmra.mxu3 %v408_v56  ;;  %1101 = vmatpush.msrb.mxu0 %v3045_v57  ;;  %v3115_v51 = vld [vmem:[%s4816_s1 + $0x470] sm:$0xff]  ;;  %v656_v56 = vld [vmem:[#allocation2 + $0x2] sm:$0xff]  ;;  %v851_v57 = vld [vmem:[#allocation2 + $0x18] sm:$0xff] }
  0x80   : > { %552 = vmatpush.msrb.mxu1 %v371_v58  ;;  %715 = vmatpush.msrb.mxu2 %v3010_v59  ;;  %v3779_v54 = vld [vmem:[#allocation2 + $0x51] sm:$0xff]  ;;  %v3082_v58 = vld [vmem:[%s4816_s1 + $0x368] sm:$0xff] }
  0x81   : > { %910 = vmatpush.msrb.mxu3 %v3026_v60  ;;  %1102 = vmatpush.msrb.mxu0 %v3044_v61  ;;  %v3098_v59 = vld [vmem:[%s4816_s1 + $0x3e8] sm:$0xff] }
  0x82   : > { %553 = vmatpush.msrb.mxu1 %v370_v62  ;;  %716 = vmatpush.msrb.mxu2 %v3009_v63  ;;  %v3066_v60 = vld [vmem:[%s4816_s1 + $0x2e8] sm:$0xff]  ;;  %v852_v63 = vld [vmem:[#allocation2 + $0x20] sm:$0xff] }
  0x83   : > { %455 = vmatmul.f32.gmra.mxu0 %v3656_v0  ;;  %911 = vmatpush.msrb.mxu3 %v3025_v1  ;;  %v334_v61 = vld [vmem:[#allocation2 + $0x8] sm:$0xff] }
  0x84   : > { %1103 = vmatpush.msrb.mxu0 %v3043_v2  ;;  %554 = vmatpush.msrb.mxu1 %v369_v3  ;;  %v657_v62 = vld [vmem:[#allocation2 + $0xa] sm:$0xff]  ;;  %v658_v2 = vld [vmem:[#allocation2 + $0x1a] sm:$0xff] }
  0x85   : > { %482 = vmatmul.f32.gmra.mxu1 %v3667_v4  ;;  %506 = vmatmul.f32.gmra.mxu2 %v3669_v5  ;;  %v3114_v1 = vld [vmem:[%s4816_s1 + $0x468] sm:$0xff]  ;;  %v853_v3 = vld [vmem:[#allocation2 + $0x30] sm:$0xff] }
  0x86   : > { %717 = vmatpush.msrb.mxu2 %v3008_v8  ;;  %912 = vmatpush.msrb.mxu3 %v3024_v9  ;;  %v3081_v8 = vld [vmem:[%s4816_s1 + $0x360] sm:$0xff] }
  0x87   : > { %530 = vmatmul.f32.gmra.mxu3 %v409_v10  ;;  %1104 = vmatpush.msrb.mxu0 %v3042_v11  ;;  %v3065_v9 = vld [vmem:[%s4816_s1 + $0x2e0] sm:$0xff]  ;;  %v854_v10 = vld [vmem:[#allocation2 + $0x38] sm:$0xff] }
  0x88   : > { %555 = vmatpush.msrb.mxu1 %v368_v12  ;;  %718 = vmatpush.msrb.mxu2 %v3007_v13  ;;  %v3113_v11 = vld [vmem:[%s4816_s1 + $0x460] sm:$0xff]  ;;  %v660_v12 = vld [vmem:[#allocation2 + $0x32] sm:$0xff]  ;;  %v855_v13 = vld [vmem:[#allocation2 + $0x48] sm:$0xff] }
  0x89   : > { %913 = vmatpush.msrb.mxu3 %v3023_v14  ;;  %1105 = vmatpush.msrb.mxu0 %v3041_v15  ;;  %v3080_v14 = vld [vmem:[%s4816_s1 + $0x358] sm:$0xff] }
  0x8a   : > { %556 = vmatpush.msrb.mxu1 %v367_v16  ;;  %719 = vmatpush.msrb.mxu2 %v3006_v17  ;;  %v3096_v15 = vld [vmem:[%s4816_s1 + $0x3d8] sm:$0xff] }
  0x8b   : > { %458 = vmatmul.f32.gmra.mxu0 %v3701_v18  ;;  %914 = vmatpush.msrb.mxu3 %v3022_v19  ;;  %v3064_v16 = vld [vmem:[%s4816_s1 + $0x2d8] sm:$0xff] }
  0x8c   : > { %1106 = vmatpush.msrb.mxu0 %v3040_v22  ;;  %557 = vmatpush.msrb.mxu1 %v366_v23  ;;  %v661_v17 = vld [vmem:[#allocation2 + $0x3a] sm:$0xff]  ;;  %v662_v22 = vld [vmem:[#allocation2 + $0x4a] sm:$0xff] }
  0x8d   : > { %485 = vmatmul.f32.gmra.mxu1 %v3712_v24  ;;  %509 = vmatmul.f32.gmra.mxu2 %v3714_v25  ;;  %v3112_v19 = vld [vmem:[%s4816_s1 + $0x458] sm:$0xff]  ;;  %v857_v23 = vld [vmem:[#allocation2 + $0x60] sm:$0xff] }
  0x8e   : > { %720 = vmatpush.msrb.mxu2 %v3005_v26  ;;  %915 = vmatpush.msrb.mxu3 %v3021_v27  ;;  %v3079_v26 = vld [vmem:[%s4816_s1 + $0x350] sm:$0xff] }
  0x8f   : > { %533 = vmatmul.f32.gmra.mxu3 %v410_v28  ;;  %1107 = vmatpush.msrb.mxu0 %v3039_v29  ;;  %v3095_v27 = vld [vmem:[%s4816_s1 + $0x3d0] sm:$0xff] }
  0x90   : > { %558 = vmatpush.msrb.mxu1 %v365_v30  ;;  %1483 = vmatpush.msra.mxu2 %v3084_v31  ;;  %v3063_v28 = vld [vmem:[%s4816_s1 + $0x2d0] sm:$0xff]  ;;  %v858_v30 = vld [vmem:[#allocation2 + $0x68] sm:$0xff] }
  0x91   : > { %1108 = vmatpush.msrb.mxu0 %v3038_v32  ;;  %1677 = vmatpush.msra.mxu3 %v3100_v33  ;;  %v663_v29 = vld [vmem:[#allocation2 + $0x52] sm:$0xff]  ;;  %v664_v33 = vld [vmem:[#allocation2 + $0x62] sm:$0xff] }
  0x92   : > { %1288 = vmatpush.msra.mxu1 %v3068_v34  ;;  %1484 = vmatpush.msra.mxu2 %v3083_v43  ;;  %v3111_v31 = vld [vmem:[%s4816_s1 + $0x450] sm:$0xff]  ;;  %v859_v34 = vld [vmem:[#allocation2 + $0x78] sm:$0xff] }
  0x93   : > { %461 = vmatmul.f32.gmra.mxu0 %v3743_v35  ;;  %1678 = vmatpush.msra.mxu3 %v3099_v44  ;;  %v665_v44 = vld [vmem:[#allocation2 + $0x6a] sm:$0xff] }
  0x94   : > { %1109 = vmatpush.msrb.mxu0 %v3037_v38  ;;  %1289 = vmatpush.msra.mxu1 %v3067_v45  ;;  %v860_v45 = vld [vmem:[#allocation2 + $0x80] sm:$0xff] }
  0x95   : > { %488 = vmatmul.f32.gmra.mxu1 %v3748_v39  ;;  %512 = vmatmul.f32.gmra.mxu2 %v3750_v40 }
  0x96   : > { %1871 = vmatpush.msra.mxu0 %v3116_v41  ;;  %1485 = vmatpush.msra.mxu2 %v3082_v58  ;;  %v3093_v58 = vld [vmem:[%s4816_s1 + $0x3c0] sm:$0xff] }
  0x97   : > { %536 = vmatmul.f32.gmra.mxu3 %v411_v42  ;;  %1290 = vmatpush.msra.mxu1 %v3066_v60 }
  0x98   : > { %1872 = vmatpush.msra.mxu0 %v3115_v51  ;;  %1679 = vmatpush.msra.mxu3 %v3098_v59 }
  0x99   : > { %1486 = vmatpush.msra.mxu2 %v3081_v8  ;;  %1291 = vmatpush.msra.mxu1 %v3065_v9 }
  0x9a   : > { %1873 = vmatpush.msra.mxu0 %v3114_v1  ;;  %v862_v1 = vld [vmem:[#allocation2 + $0x98] sm:$0xff] }
  0x9b   : > { %464 = vmatmul.f32.gmra.mxu0 %v3767_v46  ;;  %1487 = vmatpush.msra.mxu2 %v3080_v14 }
  0x9c   : > { %1874 = vmatpush.msra.mxu0 %v3113_v11  ;;  %1292 = vmatpush.msra.mxu1 %v3064_v16  ;;  %v3092_v11 = vld [vmem:[%s4816_s1 + $0x3b8] sm:$0xff] }
  0x9d   : > { %491 = vmatmul.f32.gmra.mxu1 %v3769_v47  ;;  %515 = vmatmul.f32.gmra.mxu2 %v3771_v49  ;;  %v669_v16 = vld [vmem:[#allocation2 + $0x9a] sm:$0xff] }
  0x9e   : > { %1875 = vmatpush.msra.mxu0 %v3112_v19  ;;  %1488 = vmatpush.msra.mxu2 %v3079_v26 }
  0x9f   : > { %539 = vmatmul.f32.gmra.mxu3 %v412_v50  ;;  %1293 = vmatpush.msra.mxu1 %v3063_v28  ;;  %v3075_v28 = vld [vmem:[%s4816_s1 + $0x330] sm:$0xff] }
  0xa0   : > { %1876 = vmatpush.msra.mxu0 %v3111_v31 }
  0xa3   : > { %467 = vmatmul.f32.gmra.mxu0 %v3779_v54 }
  0xa5   : > { %559 = vmatmul.f32.vlgmr.msrb.gmra.mxu1 %v333_v55  ;;  %721 = vmatmul.f32.vlgmr.msrb.gmra.mxu2 %v656_v56  ;;  %v666_v56 = vld [vmem:[#allocation2 + $0x7a] sm:$0xff] }
  0xa7   : > { %916 = vmatmul.f32.vlgmr.msrb.gmra.mxu3 %v851_v57 }
  0xab   : > { %1110 = vmatmul.f32.vlgmr.msrb.gmra.mxu0 %v3611_v48  ;;  %v3097_v48 = vld [vmem:[%s4816_s1 + $0x3e0] sm:$0xff] }
  0xac   : > { %1680 = vmatpush.msra.mxu3 %v3097_v48 }
  0xad   : > { %562 = vmatmul.f32.gmra.mxu1 %v334_v61  ;;  %724 = vmatmul.f32.gmra.mxu2 %v657_v62 }
  0xae   : > { %1681 = vmatpush.msra.mxu3 %v3096_v15 }
  0xaf   : > { %919 = vmatmul.f32.gmra.mxu3 %v852_v63 }
  0xb0   : > { %1682 = vmatpush.msra.mxu3 %v3095_v27  ;;  %v670_v27 = vld [vmem:[#allocation2 + $0xaa] sm:$0xff] }
  0xb3   : > { %1113 = vmatmul.f32.gmra.mxu0 %v3656_v0  ;;  %v659_v0 = vld [vmem:[#allocation2 + $0x22] sm:$0xff] }
  0xb5   : > { %565 = vmatmul.f32.gmra.mxu1 %v851_v57  ;;  %727 = vmatmul.f32.gmra.mxu2 %v658_v2  ;;  %v3077_v57 = vld [vmem:[%s4816_s1 + $0x340] sm:$0xff] }
  0xb6   : > { %v3109_v2 = vld [vmem:[%s4816_s1 + $0x440] sm:$0xff] }
  0xb7   : > { %922 = vmatmul.f32.gmra.mxu3 %v853_v3 }
  0xbb   : > { %1116 = vmatmul.f32.gmra.mxu0 %v3701_v18  ;;  %v856_v18 = vld [vmem:[#allocation2 + $0x50] sm:$0xff] }
  0xbd   : > { %568 = vmatmul.f32.gmra.mxu1 %v852_v63  ;;  %730 = vmatmul.f32.gmra.mxu2 %v659_v0  ;;  %v667_v63 = vld [vmem:[#allocation2 + $0x82] sm:$0xff]  ;;  %v668_v0 = vld [vmem:[#allocation2 + $0x92] sm:$0xff] }
  0xbf   : > { %925 = vmatmul.f32.gmra.mxu3 %v854_v10 }
  0xc3   : > { %1119 = vmatmul.f32.gmra.mxu0 %v3743_v35  ;;  %v3094_v35 = vld [vmem:[%s4816_s1 + $0x3c8] sm:$0xff] }
  0xc4   : > { %1683 = vmatpush.msra.mxu3 %v3094_v35  ;;  %v866_v35 = vld [vmem:[#allocation2 + $0xc8] sm:$0xff] }
  0xc5   : > { %571 = vmatmul.f32.gmra.mxu1 %v853_v3  ;;  %733 = vmatmul.f32.gmra.mxu2 %v660_v12 }
  0xc6   : > { %1684 = vmatpush.msra.mxu3 %v3093_v58 }
  0xc7   : > { %928 = vmatmul.f32.gmra.mxu3 %v855_v13 }
  0xc8   : > { %1685 = vmatpush.msra.mxu3 %v3092_v11 }
  0xcb   : > { %1122 = vmatmul.f32.gmra.mxu0 %v3767_v46  ;;  %v3110_v46 = vld [vmem:[%s4816_s1 + $0x448] sm:$0xff] }
  0xcc   : > { %1877 = vmatpush.msra.mxu0 %v3110_v46 }
  0xcd   : > { %574 = vmatmul.f32.gmra.mxu1 %v854_v10  ;;  %736 = vmatmul.f32.gmra.mxu2 %v661_v17  ;;  %v3076_v10 = vld [vmem:[%s4816_s1 + $0x338] sm:$0xff]  ;;  %v864_v17 = vld [vmem:[#allocation2 + $0xb0] sm:$0xff] }
  0xce   : > { %1878 = vmatpush.msra.mxu0 %v3109_v2 }
  0xcf   : > { %931 = vmatmul.f32.gmra.mxu3 %v856_v18 }
  0xd3   : > { %1125 = vmatmul.f32.gmra.mxu0 %v3779_v54 }
  0xd5   : > { %577 = vmatmul.f32.gmra.mxu1 %v855_v13  ;;  %739 = vmatmul.f32.gmra.mxu2 %v662_v22 }
  0xd7   : > { %934 = vmatmul.f32.gmra.mxu3 %v857_v23 }
  0xdb   : > { %1128 = vmatmul.f32.gmra.mxu0 %v3500_v6  ;;  %v3078_v6 = vld [vmem:[%s4816_s1 + $0x348] sm:$0xff] }
  0xdc   : > { %1489 = vmatpush.msra.mxu2 %v3078_v6  ;;  %v671_v6 = vld [vmem:[#allocation2 + $0xb2] sm:$0xff] }
  0xdd   : > { %580 = vmatmul.f32.gmra.mxu1 %v856_v18  ;;  %742 = vmatmul.f32.gmra.mxu2 %v663_v29  ;;  %v3108_v18 = vld [vmem:[%s4816_s1 + $0x438] sm:$0xff]  ;;  %v3091_v29 = vld [vmem:[%s4816_s1 + $0x3b0] sm:$0xff] }
  0xde   : > { %1490 = vmatpush.msra.mxu2 %v3077_v57  ;;  %1879 = vmatpush.msra.mxu0 %v3108_v18  ;;  %v3074_v57 = vld [vmem:[%s4816_s1 + $0x328] sm:$0xff] }
  0xdf   : > { %937 = vmatmul.f32.gmra.mxu3 %v858_v30 }
  0xe0   : > { %1491 = vmatpush.msra.mxu2 %v3076_v10  ;;  %1686 = vmatpush.msra.mxu3 %v3091_v29  ;;  %v673_v10 = vld [vmem:[#allocation2 + $0xca] sm:$0xff] }
  0xe2   : > { %v3837_v32 = vpop.f32.mrf.mxu1  ;;  %1492 = vmatpush.msra.mxu2 %v3075_v28 }
  0xe3   : > { %1131 = vmatmul.f32.gmra.mxu0 %v3536_v20  ;;  %v3062_v20 = vld [vmem:[%s4816_s1 + $0x2c8] sm:$0xff] }
  0xe4   : > { %1294 = vmatpush.msra.mxu1 %v3062_v20  ;;  %v3107_v20 = vld [vmem:[%s4816_s1 + $0x430] sm:$0xff]  ;;  %1493 = vmatpush.msra.mxu2 %v3074_v57 }
  0xe5   : > { %583 = vmatmul.f32.gmra.mxu1 %v857_v23  ;;  %745 = vmatmul.f32.gmra.mxu2 %v664_v33 }
  0xe6   : > { %1880 = vmatpush.msra.mxu0 %v3107_v20 }
  0xe7   : > { %940 = vmatmul.f32.gmra.mxu3 %v859_v34 }
  0xe8   : > { %v3846_v38 = vpop.f32.mrf.mxu2  ;;  %v3848_v41 = vpop.f32.mrf.mxu0 }
  0xea   : > { %v3853_v42 = vpop.f32.mrf.mxu1  ;;  %v3855_v43 = vpop.f32.mrf.mxu3 }
  0xeb   : > { %1134 = vmatmul.f32.gmra.mxu0 %v3578_v36  ;;  %v861_v36 = vld [vmem:[#allocation2 + $0x90] sm:$0xff] }
  0xed   : > { %586 = vmatmul.f32.gmra.mxu1 %v858_v30  ;;  %748 = vmatmul.f32.gmra.mxu2 %v665_v44 }
  0xef   : > { %943 = vmatmul.f32.gmra.mxu3 %v860_v45 }
  0xf0   : > { %v3861_v50 = vpop.f32.mrf.mxu2  ;;  %v3863_v51 = vpop.f32.mrf.mxu0 }
  0xf2   : > { %v3865_v54 = vpop.f32.mrf.mxu1  ;;  %v3867_v55 = vpop.f32.mrf.mxu3 }
  0xf3   : > { %1137 = vmatmul.f32.gmra.mxu0 %v3622_v52  ;;  %v3061_v52 = vld [vmem:[%s4816_s1 + $0x2c0] sm:$0xff] }
  0xf4   : > { %1295 = vmatpush.msra.mxu1 %v3061_v52  ;;  %v3090_v52 = vld [vmem:[%s4816_s1 + $0x3a8] sm:$0xff] }
  0xf5   : > { %589 = vmatmul.f32.gmra.mxu1 %v859_v34  ;;  %751 = vmatmul.f32.gmra.mxu2 %v666_v56 }
  0xf6   : > { %1687 = vmatpush.msra.mxu3 %v3090_v52 }
  0xf7   : > { %946 = vmatmul.f32.gmra.mxu3 %v861_v36 }
  0xf8   : > { %v3876_v59 = vpop.f32.mrf.mxu2  ;;  %v3878_v60 = vpop.f32.mrf.mxu0 }
  0xfa   : > { %v3883_v61 = vpop.f32.mrf.mxu1  ;;  %v3885_v62 = vpop.f32.mrf.mxu3 }
  0xfb   : > { %1140 = vmatmul.f32.gmra.mxu0 %v3667_v4  ;;  %v863_v4 = vld [vmem:[#allocation2 + $0xa8] sm:$0xff] }
  0xfd   : > { %592 = vmatmul.f32.gmra.mxu1 %v860_v45  ;;  %754 = vmatmul.f32.gmra.mxu2 %v667_v63 }
  0xff   : > { %949 = vmatmul.f32.gmra.mxu3 %v862_v1 }
 0x100   : > { %v3891_v3 = vpop.f32.mrf.mxu2  ;;  %v3893_v8 = vpop.f32.mrf.mxu0 }
 0x102   : > { %v3895_v48 = vpop.f32.mrf.mxu1  ;;  %v3897_v9 = vpop.f32.mrf.mxu3 }
 0x103   : > { %1143 = vmatmul.f32.gmra.mxu0 %v3712_v24  ;;  %v3060_v24 = vld [vmem:[%s4816_s1 + $0x2b8] sm:$0xff] }
 0x104   : > { %1296 = vmatpush.msra.mxu1 %v3060_v24 }
 0x105   : > { %595 = vmatmul.f32.gmra.mxu1 %v861_v36  ;;  %757 = vmatmul.f32.gmra.mxu2 %v668_v0  ;;  %v672_v36 = vld [vmem:[#allocation2 + $0xc2] sm:$0xff] }
 0x107   : > { %952 = vmatmul.f32.gmra.mxu3 %v863_v4 }
 0x108   : > { %v3906_v12 = vpop.f32.mrf.mxu2  ;;  %v3908_v13 = vpop.f32.mrf.mxu0 }
 0x10a   : > { %v3913_v14 = vpop.f32.mrf.mxu1  ;;  %v3915_v15 = vpop.f32.mrf.mxu3 }
 0x10b   : > { %1146 = vmatmul.f32.gmra.mxu0 %v3748_v39  ;;  %v865_v39 = vld [vmem:[#allocation2 + $0xc0] sm:$0xff] }
 0x10d   : > { %598 = vmatmul.f32.gmra.mxu1 %v862_v1  ;;  %760 = vmatmul.f32.gmra.mxu2 %v669_v16 }
 0x10f   : > { %955 = vmatmul.f32.gmra.mxu3 %v864_v17 }
 0x110   : > { %v3921_v19 = vpop.f32.mrf.mxu2  ;;  %v3923_v22 = vpop.f32.mrf.mxu0 }
 0x112   : > { %v3925_v23 = vpop.f32.mrf.mxu1  ;;  %v3927_v26 = vpop.f32.mrf.mxu3 }
 0x113   : > { %1149 = vmatmul.f32.gmra.mxu0 %v3769_v47  ;;  %v3059_v47 = vld [vmem:[%s4816_s1 + $0x2b0] sm:$0xff] }
 0x114   : > { %1297 = vmatpush.msra.mxu1 %v3059_v47  ;;  %v674_v47 = vld [vmem:[#allocation2 + $0xda] sm:$0xff] }
 0x115   : > { %601 = vmatmul.f32.gmra.mxu1 %v863_v4  ;;  %763 = vmatmul.f32.gmra.mxu2 %v670_v27 }
 0x117   : > { %958 = vmatmul.f32.gmra.mxu3 %v865_v39 }
 0x118   : > { %v3936_v30 = vpop.f32.mrf.mxu2  ;;  %v3938_v31 = vpop.f32.mrf.mxu0 }
 0x11a   : > { %v3943_v33 = vpop.f32.mrf.mxu1  ;;  %v3945_v34 = vpop.f32.mrf.mxu3 }
 0x11b   : > { %1152 = vmatmul.f32.gmra.mxu0 %v3502_v7  ;;  %v867_v7 = vld [vmem:[#allocation2 + $0xd8] sm:$0xff] }
 0x11d   : > { %604 = vmatmul.f32.gmra.mxu1 %v864_v17  ;;  %766 = vmatmul.f32.gmra.mxu2 %v671_v6  ;;  %v3106_v17 = vld [vmem:[%s4816_s1 + $0x428] sm:$0xff]  ;;  %v869_v6 = vld [vmem:[#allocation2 + $0xf0] sm:$0xff] }
 0x11e   : > { %1881 = vmatpush.msra.mxu0 %v3106_v17 }
 0x11f   : > { %961 = vmatmul.f32.gmra.mxu3 %v866_v35 }
 0x120   : > { %v3951_v44 = vpop.f32.mrf.mxu2  ;;  %v3953_v45 = vpop.f32.mrf.mxu0 }
 0x122   : > { %v3955_v46 = vpop.f32.mrf.mxu3  ;;  %v560_v56 = vpop.f32.mrf.mxu1 }
 0x123   : > { %1155 = vmatmul.f32.gmra.mxu0 %v3538_v21  ;;  %v561_v58 = vadd.f32 %v560_v56, %v3848_v41  ;;  %v3058_v21 = vld [vmem:[%s4816_s1 + $0x2a8] sm:$0xff]  ;;  %v868_v41 = vld [vmem:[#allocation2 + $0xe0] sm:$0xff] }
 0x124   : > { %1298 = vmatpush.msra.mxu1 %v3058_v21  ;;  %v3089_v56 = vld [vmem:[%s4816_s1 + $0x3a0] sm:$0xff] }
 0x125   : > { %607 = vmatmul.f32.gmra.mxu1 %v865_v39  ;;  %769 = vmatmul.f32.gmra.mxu2 %v672_v36 }
 0x126   : > { %1688 = vmatpush.msra.mxu3 %v3089_v56 }
 0x127   : > { %964 = vmatmul.f32.gmra.mxu3 %v867_v7 }
 0x128   : > { %v722_v63 = vpop.f32.mrf.mxu2  ;;  %v1111_v1 = vpop.f32.mrf.mxu0 }
 0x129   : > { %v818_v2 = vadd.f32 %v722_v63, %v561_v58  ;;  %v675_v63 = vld [vmem:[#allocation2 + $0xe2] sm:$0xff] }
 0x12a   : > { %v563_v0 = vpop.f32.mrf.mxu1  ;;  %v917_v4 = vpop.f32.mrf.mxu3 }
 0x12b   : > { %v1013_v11 = vadd.f32 %v917_v4, %v818_v2  ;;  %1158 = vmatmul.f32.gmra.mxu0 %v3580_v37  ;;  %v564_v16 = vadd.f32 %v563_v0, %v3863_v51  ;;  %v3073_v51 = vld [vmem:[%s4816_s1 + $0x320] sm:$0xff] }
 0x12c   : > { %1494 = vmatpush.msra.mxu2 %v3073_v51  ;;  %v3105_v0 = vld [vmem:[%s4816_s1 + $0x420] sm:$0xff] }
 0x12d   : > { %v3969_v24 = vadd.f32 %v1111_v1, %v1013_v11  ;;  %610 = vmatmul.f32.gmra.mxu1 %v866_v35  ;;  %772 = vmatmul.f32.gmra.mxu2 %v673_v10 }
 0x12e   : > { %1882 = vmatpush.msra.mxu0 %v3105_v0  ;;  %v873_v0 = vld [vmem:[#allocation2 + $0x120] sm:$0xff] }
 0x12f   : > { %967 = vmatmul.f32.gmra.mxu3 %v868_v41 }
 0x130   : > { %v725_v18 = vpop.f32.mrf.mxu2  ;;  %v1114_v27 = vpop.f32.mrf.mxu0 }
 0x131   : > { %v819_v39 = vadd.f32 %v725_v18, %v564_v16  ;;  %v676_v18 = vld [vmem:[#allocation2 + $0xf2] sm:$0xff] }
 0x132   : > { %v566_v28 = vpop.f32.mrf.mxu1  ;;  %v920_v29 = vpop.f32.mrf.mxu3 }
 0x133   : > { %v1014_v37 = vadd.f32 %v920_v29, %v819_v39  ;;  %1161 = vmatmul.f32.gmra.mxu0 %v3624_v53  ;;  %v567_v20 = vadd.f32 %v566_v28, %v3878_v60  ;;  %v870_v60 = vld [vmem:[#allocation2 + $0xf8] sm:$0xff] }
 0x134   : > { %v3088_v28 = vld [vmem:[%s4816_s1 + $0x398] sm:$0xff] }
 0x135   : > { %v3976_v35 = vadd.f32 %v1114_v27, %v1014_v37  ;;  %613 = vmatmul.f32.gmra.mxu1 %v867_v7  ;;  %775 = vmatmul.f32.gmra.mxu2 %v674_v47  ;;  %v3057_v7 = vld [vmem:[%s4816_s1 + $0x2a0] sm:$0xff]  ;;  %v871_v27 = vld [vmem:[#allocation2 + $0x108] sm:$0xff]  ;;  %v3056_v37 = vld [vmem:[%s4816_s1 + $0x298] sm:$0xff] }
 0x136   : > { %1299 = vmatpush.msra.mxu1 %v3057_v7  ;;  %1689 = vmatpush.msra.mxu3 %v3088_v28 }
 0x137   : > { %970 = vmatmul.f32.gmra.mxu3 %v869_v6 }
 0x138   : > { %v728_v36 = vpop.f32.mrf.mxu2  ;;  %v1117_v57 = vpop.f32.mrf.mxu0  ;;  %1300 = vmatpush.msra.mxu1 %v3056_v37 }
 0x139   : > { %v820_v53 = vadd.f32 %v728_v36, %v567_v20  ;;  %v677_v20 = vld [vmem:[#allocation2 + $0xfa] sm:$0xff] }
 0x13a   : > { %v569_v58 = vpop.f32.mrf.mxu1  ;;  %v923_v52 = vpop.f32.mrf.mxu3 }
 0x13b   : > { %v1015_v1 = vadd.f32 %v923_v52, %v820_v53  ;;  %1164 = vmatmul.f32.gmra.mxu0 %v3669_v5  ;;  %v570_v21 = vadd.f32 %v569_v58, %v3893_v8  ;;  %v3072_v8 = vld [vmem:[%s4816_s1 + $0x318] sm:$0xff] }
 0x13c   : > { %1495 = vmatpush.msra.mxu2 %v3072_v8  ;;  %v3104_v53 = vld [vmem:[%s4816_s1 + $0x418] sm:$0xff] }
 0x13d   : > { %v3989_v2 = vadd.f32 %v1117_v57, %v1015_v1  ;;  %616 = vmatmul.f32.gmra.mxu1 %v868_v41  ;;  %778 = vmatmul.f32.gmra.mxu2 %v675_v63  ;;  %v679_v8 = vld [vmem:[#allocation2 + $0x112] sm:$0xff] }
 0x13e   : > { %1883 = vmatpush.msra.mxu0 %v3104_v53 }
 0x13f   : > { %973 = vmatmul.f32.gmra.mxu3 %v870_v60 }
 0x140   : > { %v731_v4 = vpop.f32.mrf.mxu2  ;;  %v1120_v10 = vpop.f32.mrf.mxu0 }
 0x141   : > { %v821_v11 = vadd.f32 %v731_v4, %v570_v21  ;;  %v678_v21 = vld [vmem:[#allocation2 + $0x10a] sm:$0xff] }
 0x142   : > { %v572_v16 = vpop.f32.mrf.mxu1  ;;  %v926_v17 = vpop.f32.mrf.mxu3 }
 0x143   : > { %v1016_v5 = vadd.f32 %v926_v17, %v821_v11  ;;  %1167 = vmatmul.f32.gmra.mxu0 %v3714_v25  ;;  %v573_v39 = vadd.f32 %v572_v16, %v3908_v13  ;;  %v872_v13 = vld [vmem:[#allocation2 + $0x110] sm:$0xff] }
 0x145   : > { %v3996_v41 = vadd.f32 %v1120_v10, %v1016_v5  ;;  %619 = vmatmul.f32.gmra.mxu1 %v869_v6  ;;  %781 = vmatmul.f32.gmra.mxu2 %v676_v18  ;;  %v3087_v10 = vld [vmem:[%s4816_s1 + $0x390] sm:$0xff] }
 0x146   : > { %1690 = vmatpush.msra.mxu3 %v3087_v10  ;;  %v3055_v18 = vld [vmem:[%s4816_s1 + $0x290] sm:$0xff] }
 0x147   : > { %976 = vmatmul.f32.gmra.mxu3 %v871_v27  ;;  %1301 = vmatpush.msra.mxu1 %v3055_v18  ;;  %v681_v10 = vld [vmem:[#allocation2 + $0x12a] sm:$0xff] }
 0x148   : > { %v734_v29 = vpop.f32.mrf.mxu2  ;;  %v1123_v47 = vpop.f32.mrf.mxu0 }
 0x149   : > { %v822_v25 = vadd.f32 %v734_v29, %v573_v39 }
 0x14a   : > { %v575_v6 = vpop.f32.mrf.mxu1  ;;  %v929_v51 = vpop.f32.mrf.mxu3 }
 0x14b   : > { %v1017_v56 = vadd.f32 %v929_v51, %v822_v25  ;;  %1170 = vmatmul.f32.gmra.mxu0 %v3750_v40  ;;  %v576_v57 = vadd.f32 %v575_v6, %v3923_v22  ;;  %v3071_v22 = vld [vmem:[%s4816_s1 + $0x310] sm:$0xff] }
 0x14c   : > { %1496 = vmatpush.msra.mxu2 %v3071_v22  ;;  %v1068_v6 = vld [vmem:[#allocation2 + $0x129] sm:$0xff] }
 0x14d   : > { %v4009_v36 = vadd.f32 %v1123_v47, %v1017_v56  ;;  %622 = vmatmul.f32.gmra.mxu1 %v870_v60  ;;  %784 = vmatmul.f32.gmra.mxu2 %v677_v20  ;;  %v3103_v47 = vld [vmem:[%s4816_s1 + $0x410] sm:$0xff] }
 0x14e   : > { %1884 = vmatpush.msra.mxu0 %v3103_v47  ;;  %v682_v47 = vld [vmem:[#allocation2 + $0x13a] sm:$0xff] }
 0x14f   : > { %979 = vmatmul.f32.gmra.mxu3 %v872_v13 }
 0x150   : > { %v737_v7 = vpop.f32.mrf.mxu2  ;;  %v1126_v58 = vpop.f32.mrf.mxu0 }
 0x151   : > { %v823_v52 = vadd.f32 %v737_v7, %v576_v57  ;;  %v680_v57 = vld [vmem:[#allocation2 + $0x122] sm:$0xff]  ;;  %v875_v7 = vld [vmem:[#allocation2 + $0x138] sm:$0xff] }
 0x152   : > { %v578_v63 = vpop.f32.mrf.mxu1  ;;  %v932_v1 = vpop.f32.mrf.mxu3 }
 0x153   : > { %v1018_v40 = vadd.f32 %v932_v1, %v823_v52  ;;  %1173 = vmatmul.f32.gmra.mxu0 %v3771_v49  ;;  %v579_v4 = vadd.f32 %v578_v63, %v3938_v31  ;;  %v1067_v49 = vld [vmem:[#allocation2 + $0x121] sm:$0xff] }
 0x154   : > { %v874_v31 = vld [vmem:[#allocation2 + $0x128] sm:$0xff] }
 0x155   : > { %v4016_v60 = vadd.f32 %v1126_v58, %v1018_v40  ;;  %625 = vmatmul.f32.gmra.mxu1 %v871_v27  ;;  %787 = vmatmul.f32.gmra.mxu2 %v678_v21  ;;  %v3086_v52 = vld [vmem:[%s4816_s1 + $0x388] sm:$0xff]  ;;  %v1069_v21 = vld [vmem:[#allocation2 + $0x139] sm:$0xff] }
 0x156   : > { %1691 = vmatpush.msra.mxu3 %v3086_v52  ;;  %v683_v52 = vld [vmem:[#allocation2 + $0x142] sm:$0xff] }
 0x157   : > { %982 = vmatmul.f32.gmra.mxu3 %v873_v0 }
 0x158   : > { %v740_v11 = vpop.f32.mrf.mxu2  ;;  %v1129_v16 = vpop.f32.mrf.mxu0 }
 0x159   : > { %v824_v17 = vadd.f32 %v740_v11, %v579_v4 }
 0x15a   : > { %v581_v5 = vpop.f32.mrf.mxu1  ;;  %v935_v27 = vpop.f32.mrf.mxu3 }
 0x15b   : > { %v1019_v39 = vadd.f32 %v935_v27, %v824_v17  ;;  %1176 = vmatmul.f32.gmra.mxu0 %v1067_v49  ;;  %v582_v29 = vadd.f32 %v581_v5, %v3953_v45  ;;  %v3070_v45 = vld [vmem:[%s4816_s1 + $0x308] sm:$0xff] }
 0x15c   : > { %1497 = vmatpush.msra.mxu2 %v3070_v45  ;;  %v3102_v17 = vld [vmem:[%s4816_s1 + $0x408] sm:$0xff] }
 0x15d   : > { %v4028_v28 = vadd.f32 %v1129_v16, %v1019_v39  ;;  %628 = vmatmul.f32.gmra.mxu1 %v872_v13  ;;  %790 = vmatmul.f32.gmra.mxu2 %v679_v8  ;;  %v1070_v27 = vld [vmem:[#allocation2 + $0x141] sm:$0xff] }
 0x15e   : > { %1885 = vmatpush.msra.mxu0 %v3102_v17  ;;  %v684_v17 = vld [vmem:[#allocation2 + $0x152] sm:$0xff] }
 0x15f   : > { %985 = vmatmul.f32.gmra.mxu3 %v874_v31 }
 0x160   : > { %v743_v25 = vpop.f32.mrf.mxu2  ;;  %v1132_v37 = vpop.f32.mrf.mxu0 }
 0x161   : > { %v825_v51 = vadd.f32 %v743_v25, %v582_v29 }
 0x162   : > { %v584_v20 = vpop.f32.mrf.mxu1  ;;  %v938_v56 = vpop.f32.mrf.mxu3 }
 0x163   : > { %v1020_v53 = vadd.f32 %v938_v56, %v825_v51  ;;  %1179 = vmatmul.f32.gmra.mxu0 %v1068_v6  ;;  %v585_v58 = vadd.f32 %v584_v20, %v3837_v32  ;;  %v876_v32 = vld [vmem:[#allocation2 + $0x140] sm:$0xff] }
 0x164   : > { %v3085_v51 = vld [vmem:[%s4816_s1 + $0x380] sm:$0xff] }
 0x165   : > { %v4034_v13 = vadd.f32 %v1132_v37, %v1020_v53  ;;  %631 = vmatmul.f32.gmra.mxu1 %v873_v0  ;;  %793 = vmatmul.f32.gmra.mxu2 %v680_v57  ;;  %v3054_v0 = vld [vmem:[%s4816_s1 + $0x288] sm:$0xff]  ;;  %v877_v37 = vld [vmem:[#allocation2 + $0x150] sm:$0xff] }
 0x166   : > { %1302 = vmatpush.msra.mxu1 %v3054_v0  ;;  %v1071_v57 = vld [vmem:[#allocation2 + $0x151] sm:$0xff]  ;;  %1692 = vmatpush.msra.mxu3 %v3085_v51 }
 0x167   : > { %988 = vmatmul.f32.gmra.mxu3 %v875_v7  ;;  %v880_v51 = vld [vmem:[#allocation2 + $0x170] sm:$0xff] }
 0x168   : > { %v746_v63 = vpop.f32.mrf.mxu2  ;;  %v1135_v1 = vpop.f32.mrf.mxu0 }
 0x169   : > { %v826_v40 = vadd.f32 %v746_v63, %v585_v58 }
 0x16a   : > { %v587_v22 = vpop.f32.mrf.mxu1  ;;  %v941_v4 = vpop.f32.mrf.mxu3 }
 0x16b   : > { %v1021_v11 = vadd.f32 %v941_v4, %v826_v40  ;;  %1182 = vmatmul.f32.gmra.mxu0 %v1069_v21  ;;  %v588_v49 = vadd.f32 %v587_v22, %v3853_v42  ;;  %v3069_v42 = vld [vmem:[%s4816_s1 + $0x300] sm:$0xff] }
 0x16c   : > { %1498 = vmatpush.msra.mxu2 %v3069_v42  ;;  %v3101_v40 = vld [vmem:[%s4816_s1 + $0x400] sm:$0xff] }
 0x16d   : > { %v4046_v16 = vadd.f32 %v1135_v1, %v1021_v11  ;;  %634 = vmatmul.f32.gmra.mxu1 %v874_v31  ;;  %796 = vmatmul.f32.gmra.mxu2 %v681_v10  ;;  %v1072_v4 = vld [vmem:[#allocation2 + $0x159] sm:$0xff] }
 0x16e   : > { %1886 = vmatpush.msra.mxu0 %v3101_v40  ;;  %v685_v42 = vld [vmem:[#allocation2 + $0x15a] sm:$0xff] }
 0x16f   : > { %991 = vmatmul.f32.gmra.mxu3 %v876_v32 }
 0x170   : > { %v749_v18 = vpop.f32.mrf.mxu2  ;;  %v1138_v5 = vpop.f32.mrf.mxu0 }
 0x171   : > { %v827_v8 = vadd.f32 %v749_v18, %v588_v49 }
 0x172   : > { %v590_v39 = vpop.f32.mrf.mxu1  ;;  %v944_v29 = vpop.f32.mrf.mxu3 }
 0x173   : > { %v1022_v25 = vadd.f32 %v944_v29, %v827_v8  ;;  %1185 = vmatmul.f32.gmra.mxu0 %v1070_v27  ;;  %v591_v6 = vadd.f32 %v590_v39, %v3865_v54  ;;  %v878_v54 = vld [vmem:[#allocation2 + $0x158] sm:$0xff]  ;;  %v1073_v39 = vld [vmem:[#allocation2 + $0x169] sm:$0xff] }
 0x175   : > { %v4052_v31 = vadd.f32 %v1138_v5, %v1022_v25  ;;  %637 = vmatmul.f32.gmra.mxu1 %v875_v7  ;;  %799 = vmatmul.f32.gmra.mxu2 %v682_v47  ;;  %v3053_v7 = vld [vmem:[%s4816_s1 + $0x280] sm:$0xff]  ;;  %v879_v5 = vld [vmem:[#allocation2 + $0x168] sm:$0xff] }
 0x176   : > { %1303 = vmatpush.msra.mxu1 %v3053_v7 }
 0x177   : > { %994 = vmatmul.f32.gmra.mxu3 %v877_v37 }
 0x178   : > { %v752_v20 = vpop.f32.mrf.mxu2  ;;  %v1141_v56 = vpop.f32.mrf.mxu0 }
 0x179   : > { %v828_v53 = vadd.f32 %v752_v20, %v591_v6 }
 0x17a   : > { %v593_v45 = vpop.f32.mrf.mxu1  ;;  %v947_v58 = vpop.f32.mrf.mxu3 }
 0x17b   : > { %v1023_v63 = vadd.f32 %v947_v58, %v828_v53  ;;  %1188 = vmatmul.f32.gmra.mxu0 %v1071_v57  ;;  %v594_v21 = vadd.f32 %v593_v45, %v3883_v61  ;;  %v1074_v57 = vld [vmem:[#allocation2 + $0x171] sm:$0xff] }
 0x17c   : > { %v686_v58 = vld [vmem:[#allocation2 + $0x16a] sm:$0xff] }
 0x17d   : > { %v4064_v1 = vadd.f32 %v1141_v56, %v1023_v63  ;;  %640 = vmatmul.f32.gmra.mxu1 %v876_v32  ;;  %802 = vmatmul.f32.gmra.mxu2 %v683_v52  ;;  %v881_v63 = vld [vmem:[#allocation2 + $0x180] sm:$0xff] }
 0x17f   : > { %997 = vmatmul.f32.gmra.mxu3 %v878_v54 }
 0x180   : > { %v755_v0 = vpop.f32.mrf.mxu2  ;;  %v1144_v22 = vpop.f32.mrf.mxu0 }
 0x181   : > { %v829_v10 = vadd.f32 %v755_v0, %v594_v21  ;;  %v1075_v0 = vld [vmem:[#allocation2 + $0x181] sm:$0xff] }
 0x182   : > { %v596_v11 = vpop.f32.mrf.mxu1  ;;  %v950_v49 = vpop.f32.mrf.mxu3 }
 0x183   : > { %v1024_v18 = vadd.f32 %v950_v49, %v829_v10  ;;  %1191 = vmatmul.f32.gmra.mxu0 %v1072_v4  ;;  %v597_v61 = vadd.f32 %v596_v11, %v3895_v48  ;;  %v687_v11 = vld [vmem:[#allocation2 + $0x172] sm:$0xff] }
 0x185   : > { %v4070_v32 = vadd.f32 %v1144_v22, %v1024_v18  ;;  %643 = vmatmul.f32.gmra.mxu1 %v877_v37  ;;  %805 = vmatmul.f32.gmra.mxu2 %v684_v17  ;;  %v882_v17 = vld [vmem:[#allocation2 + $0x188] sm:$0xff] }
 0x187   : > { %1000 = vmatmul.f32.gmra.mxu3 %v879_v5 }
 0x188   : > { %v758_v27 = vpop.f32.mrf.mxu2  ;;  %v1147_v8 = vpop.f32.mrf.mxu0 }
 0x189   : > { %v830_v29 = vadd.f32 %v758_v27, %v597_v61  ;;  %v1076_v27 = vld [vmem:[#allocation2 + $0x189] sm:$0xff] }
 0x18a   : > { %v599_v47 = vpop.f32.mrf.mxu1  ;;  %v953_v25 = vpop.f32.mrf.mxu3 }
 0x18b   : > { %v1025_v6 = vadd.f32 %v953_v25, %v830_v29  ;;  %1194 = vmatmul.f32.gmra.mxu0 %v1073_v39  ;;  %v600_v37 = vadd.f32 %v599_v47, %v3913_v14  ;;  %v1239_v47 = vld [vmem:[#allocation2 + $0x1a] sm:$0xff]  ;;  %v1434_v25 = vld [vmem:[#allocation2 + $0x30] sm:$0xff] }
 0x18d   : > { %v4073_v20 = vadd.f32 %v1147_v8, %v1025_v6  ;;  %646 = vmatmul.f32.gmra.mxu1 %v878_v54  ;;  %808 = vmatmul.f32.gmra.mxu2 %v685_v42  ;;  %v1628_v6 = vld [vmem:[#allocation2 + $0x31] sm:$0xff] }
 0x18f   : > { %1003 = vmatmul.f32.gmra.mxu3 %v880_v51 }
 0x190   : > { %v761_v56 = vpop.f32.mrf.mxu2  ;;  %v1150_v48 = vpop.f32.mrf.mxu0 }
 0x191   : > { %v831_v53 = vadd.f32 %v761_v56, %v600_v37 }
 0x192   : > { %v602_v7 = vpop.f32.mrf.mxu1  ;;  %v956_v45 = vpop.f32.mrf.mxu3 }
 0x193   : > { %v1026_v52 = vadd.f32 %v956_v45, %v831_v53  ;;  %1197 = vmatmul.f32.gmra.mxu0 %v1074_v57  ;;  %v603_v54 = vadd.f32 %v602_v7, %v3925_v23  ;;  %v1240_v45 = vld [vmem:[#allocation2 + $0x22] sm:$0xff] }
 0x195   : > { %v4076_v21 = vadd.f32 %v1150_v48, %v1026_v52  ;;  %649 = vmatmul.f32.gmra.mxu1 %v879_v5  ;;  %811 = vmatmul.f32.gmra.mxu2 %v686_v58  ;;  %v1822_v48 = vld [vmem:[#allocation2 + $0x32] sm:$0xff] }
 0x196   : > { %v1435_v58 = vld [vmem:[#allocation2 + $0x38] sm:$0xff] }
 0x197   : > { %1006 = vmatmul.f32.gmra.mxu3 %v881_v63  ;;  %v1629_v63 = vld [vmem:[#allocation2 + $0x39] sm:$0xff] }
 0x198   : > { %v764_v40 = vpop.f32.mrf.mxu2  ;;  %v1153_v14 = vpop.f32.mrf.mxu0 }
 0x199   : > { %v832_v22 = vadd.f32 %v764_v40, %v603_v54 }
 0x19a   : > { %v605_v4 = vpop.f32.mrf.mxu1  ;;  %v959_v10 = vpop.f32.mrf.mxu3 }
 0x19b   : > { %v1027_v49 = vadd.f32 %v959_v10, %v832_v22  ;;  %1200 = vmatmul.f32.gmra.mxu0 %v1075_v0  ;;  %v606_v5 = vadd.f32 %v605_v4, %v3943_v33  ;;  %v1823_v0 = vld [vmem:[#allocation2 + $0x3a] sm:$0xff] }
 0x19d   : > { %v4079_v18 = vadd.f32 %v1153_v14, %v1027_v49  ;;  %652 = vmatmul.f32.gmra.mxu1 %v880_v51  ;;  %814 = vmatmul.f32.gmra.mxu2 %v687_v11  ;;  %v1436_v11 = vld [vmem:[#allocation2 + $0x48] sm:$0xff] }
 0x19f   : > { %1009 = vmatmul.f32.gmra.mxu3 %v882_v17  ;;  %v1630_v17 = vld [vmem:[#allocation2 + $0x49] sm:$0xff] }
 0x1a0   : > { %v767_v61 = vpop.f32.mrf.mxu2  ;;  %v1156_v23 = vpop.f32.mrf.mxu0 }
 0x1a1   : > { %v833_v8 = vadd.f32 %v767_v61, %v606_v5 }
 0x1a2   : > { %v608_v39 = vpop.f32.mrf.mxu1  ;;  %v962_v29 = vpop.f32.mrf.mxu3 }
 0x1a3   : > { %v1028_v42 = vadd.f32 %v962_v29, %v833_v8  ;;  %1203 = vmatmul.f32.gmra.mxu0 %v1076_v27  ;;  %v609_v51 = vadd.f32 %v608_v39, %v3846_v38  ;;  %v1824_v27 = vld [vmem:[#allocation2 + $0x4a] sm:$0xff] }
 0x1a5   : > { %v4082_v37 = vadd.f32 %v1156_v23, %v1028_v42  ;;  %1304 = vmatmul.f32.vlgmr.msra.gmra.mxu1 %v1239_v47  ;;  %1499 = vmatmul.f32.vlgmr.msra.gmra.mxu2 %v1434_v25  ;;  %v1437_v47 = vld [vmem:[#allocation2 + $0x50] sm:$0xff] }
 0x1a6   : > { %v1631_v42 = vld [vmem:[#allocation2 + $0x51] sm:$0xff] }
 0x1a7   : > { %1693 = vmatmul.f32.vlgmr.msra.gmra.mxu3 %v1628_v6 }
 0x1a8   : > { %v770_v33 = vpop.f32.mrf.mxu2  ;;  %v1159_v56 = vpop.f32.mrf.mxu0 }
 0x1a9   : > { %v834_v57 = vadd.f32 %v770_v33, %v609_v51 }
 0x1aa   : > { %v611_v53 = vpop.f32.mrf.mxu1  ;;  %v965_v7 = vpop.f32.mrf.mxu3 }
 0x1ab   : > { %v1029_v52 = vadd.f32 %v965_v7, %v834_v57  ;;  %1887 = vmatmul.f32.vlgmr.msra.gmra.mxu0 %v1822_v48  ;;  %v612_v40 = vadd.f32 %v611_v53, %v3861_v50  ;;  %v1438_v7 = vld [vmem:[#allocation2 + $0x60] sm:$0xff] }
 0x1ad   : > { %v4085_v54 = vadd.f32 %v1159_v56, %v1029_v52  ;;  %1307 = vmatmul.f32.gmra.mxu1 %v1240_v45  ;;  %1502 = vmatmul.f32.gmra.mxu2 %v1435_v58  ;;  %v1825_v56 = vld [vmem:[#allocation2 + $0x52] sm:$0xff]  ;;  %v1632_v58 = vld [vmem:[#allocation2 + $0x61] sm:$0xff] }
 0x1af   : > { %1696 = vmatmul.f32.gmra.mxu3 %v1629_v63 }
 0x1b0   : > { %v773_v38 = vpop.f32.mrf.mxu2  ;;  %v1162_v14 = vpop.f32.mrf.mxu0 }
 0x1b1   : > { %v835_v22 = vadd.f32 %v773_v38, %v612_v40  ;;  %v1826_v38 = vld [vmem:[#allocation2 + $0x62] sm:$0xff] }
 0x1b2   : > { %v614_v4 = vpop.f32.mrf.mxu1  ;;  %v968_v10 = vpop.f32.mrf.mxu3 }
 0x1b3   : > { %v1030_v49 = vadd.f32 %v968_v10, %v835_v22  ;;  %1890 = vmatmul.f32.gmra.mxu0 %v1823_v0  ;;  %v615_v61 = vadd.f32 %v614_v4, %v3876_v59  ;;  %v1439_v4 = vld [vmem:[#allocation2 + $0x68] sm:$0xff] }
 0x1b5   : > { %v4088_v5 = vadd.f32 %v1162_v14, %v1030_v49  ;;  %1310 = vmatmul.f32.gmra.mxu1 %v1822_v48  ;;  %1505 = vmatmul.f32.gmra.mxu2 %v1436_v11  ;;  %v1633_v11 = vld [vmem:[#allocation2 + $0x69] sm:$0xff] }
 0x1b7   : > { %1699 = vmatmul.f32.gmra.mxu3 %v1630_v17 }
 0x1b8   : > { %v776_v23 = vpop.f32.mrf.mxu2  ;;  %v1165_v50 = vpop.f32.mrf.mxu0 }
 0x1b9   : > { %v836_v8 = vadd.f32 %v776_v23, %v615_v61  ;;  %v1827_v23 = vld [vmem:[#allocation2 + $0x6a] sm:$0xff] }
 0x1ba   : > { %v617_v39 = vpop.f32.mrf.mxu1  ;;  %v971_v29 = vpop.f32.mrf.mxu3 }
 0x1bb   : > { %v1031_v25 = vadd.f32 %v971_v29, %v836_v8  ;;  %1893 = vmatmul.f32.gmra.mxu0 %v1824_v27  ;;  %v618_v51 = vadd.f32 %v617_v39, %v3891_v3  ;;  %v1440_v39 = vld [vmem:[#allocation2 + $0x78] sm:$0xff] }
 0x1bd   : > { %v4091_v6 = vadd.f32 %v1165_v50, %v1031_v25  ;;  %1313 = vmatmul.f32.gmra.mxu1 %v1823_v0  ;;  %1508 = vmatmul.f32.gmra.mxu2 %v1437_v47  ;;  %v1634_v47 = vld [vmem:[#allocation2 + $0x79] sm:$0xff] }
 0x1bf   : > { %1702 = vmatmul.f32.gmra.mxu3 %v1631_v42 }
 0x1c0   : > { %v779_v33 = vpop.f32.mrf.mxu2  ;;  %v1168_v59 = vpop.f32.mrf.mxu0 }
 0x1c1   : > { %v837_v48 = vadd.f32 %v779_v33, %v618_v51  ;;  %v1828_v33 = vld [vmem:[#allocation2 + $0x7a] sm:$0xff] }
 0x1c2   : > { %v620_v57 = vpop.f32.mrf.mxu1  ;;  %v974_v53 = vpop.f32.mrf.mxu3 }
 0x1c3   : > { %v1032_v45 = vadd.f32 %v974_v53, %v837_v48  ;;  %1896 = vmatmul.f32.gmra.mxu0 %v1825_v56  ;;  %v621_v63 = vadd.f32 %v620_v57, %v3906_v12  ;;  %v1441_v57 = vld [vmem:[#allocation2 + $0x80] sm:$0xff] }
 0x1c5   : > { %v4094_v52 = vadd.f32 %v1168_v59, %v1032_v45  ;;  %1316 = vmatmul.f32.gmra.mxu1 %v1824_v27  ;;  %1511 = vmatmul.f32.gmra.mxu2 %v1438_v7  ;;  %v1635_v7 = vld [vmem:[#allocation2 + $0x81] sm:$0xff] }
 0x1c7   : > { %1705 = vmatmul.f32.gmra.mxu3 %v1632_v58 }
 0x1c8   : > { %v782_v40 = vpop.f32.mrf.mxu2  ;;  %v1171_v3 = vpop.f32.mrf.mxu0 }
 0x1c9   : > { %v838_v14 = vadd.f32 %v782_v40, %v621_v63  ;;  %v1829_v40 = vld [vmem:[#allocation2 + $0x82] sm:$0xff] }
 0x1ca   : > { %v623_v0 = vpop.f32.mrf.mxu1  ;;  %v977_v22 = vpop.f32.mrf.mxu3 }
 0x1cb   : > { %v1033_v10 = vadd.f32 %v977_v22, %v838_v14  ;;  %1899 = vmatmul.f32.gmra.mxu0 %v1826_v38  ;;  %v624_v17 = vadd.f32 %v623_v0, %v3921_v19  ;;  %v1442_v0 = vld [vmem:[#allocation2 + $0x90] sm:$0xff] }
 0x1cd   : > { %v4097_v49 = vadd.f32 %v1171_v3, %v1033_v10  ;;  %1319 = vmatmul.f32.gmra.mxu1 %v1825_v56  ;;  %1514 = vmatmul.f32.gmra.mxu2 %v1439_v4  ;;  %v1636_v4 = vld [vmem:[#allocation2 + $0x91] sm:$0xff] }
 0x1cf   : > { %1708 = vmatmul.f32.gmra.mxu3 %v1633_v11 }
 0x1d0   : > { %v785_v61 = vpop.f32.mrf.mxu2  ;;  %v1174_v12 = vpop.f32.mrf.mxu0 }
 0x1d1   : > { %v839_v50 = vadd.f32 %v785_v61, %v624_v17  ;;  %v1830_v61 = vld [vmem:[#allocation2 + $0x92] sm:$0xff] }
 0x1d2   : > { %v626_v27 = vpop.f32.mrf.mxu1  ;;  %v980_v8 = vpop.f32.mrf.mxu3 }
 0x1d3   : > { %v1034_v29 = vadd.f32 %v980_v8, %v839_v50  ;;  %1902 = vmatmul.f32.gmra.mxu0 %v1827_v23  ;;  %v627_v42 = vadd.f32 %v626_v27, %v3936_v30  ;;  %v1443_v27 = vld [vmem:[#allocation2 + $0x98] sm:$0xff] }
 0x1d5   : > { %v4100_v25 = vadd.f32 %v1174_v12, %v1034_v29  ;;  %1322 = vmatmul.f32.gmra.mxu1 %v1826_v38  ;;  %1517 = vmatmul.f32.gmra.mxu2 %v1440_v39  ;;  %v1637_v39 = vld [vmem:[#allocation2 + $0x99] sm:$0xff] }
 0x1d7   : > { %1711 = vmatmul.f32.gmra.mxu3 %v1634_v47 }
 0x1d8   : > { %v788_v51 = vpop.f32.mrf.mxu2  ;;  %v1177_v19 = vpop.f32.mrf.mxu0 }
 0x1d9   : > { %v840_v59 = vadd.f32 %v788_v51, %v627_v42  ;;  %v1831_v51 = vld [vmem:[#allocation2 + $0x9a] sm:$0xff] }
 0x1da   : > { %v629_v56 = vpop.f32.mrf.mxu1  ;;  %v983_v48 = vpop.f32.mrf.mxu3 }
 0x1db   : > { %v1035_v53 = vadd.f32 %v983_v48, %v840_v59  ;;  %1905 = vmatmul.f32.gmra.mxu0 %v1828_v33  ;;  %v630_v58 = vadd.f32 %v629_v56, %v3951_v44  ;;  %v1444_v56 = vld [vmem:[#allocation2 + $0xa8] sm:$0xff] }
 0x1dd   : > { %v4103_v45 = vadd.f32 %v1177_v19, %v1035_v53  ;;  %1325 = vmatmul.f32.gmra.mxu1 %v1827_v23  ;;  %1520 = vmatmul.f32.gmra.mxu2 %v1441_v57  ;;  %v1638_v57 = vld [vmem:[#allocation2 + $0xa9] sm:$0xff] }
 0x1df   : > { %1714 = vmatmul.f32.gmra.mxu3 %v1635_v7 }
 0x1e0   : > { %v791_v63 = vpop.f32.mrf.mxu2  ;;  %v1180_v30 = vpop.f32.mrf.mxu0 }
 0x1e1   : > { %v841_v3 = vadd.f32 %v791_v63, %v630_v58  ;;  %v1832_v63 = vld [vmem:[#allocation2 + $0xaa] sm:$0xff] }
 0x1e2   : > { %v632_v38 = vpop.f32.mrf.mxu1  ;;  %v986_v14 = vpop.f32.mrf.mxu3 }
 0x1e3   : > { %v1036_v22 = vadd.f32 %v986_v14, %v841_v3  ;;  %1908 = vmatmul.f32.gmra.mxu0 %v1829_v40  ;;  %v633_v11 = vadd.f32 %v632_v38, %v3855_v43  ;;  %v1445_v38 = vld [vmem:[#allocation2 + $0xb0] sm:$0xff] }
 0x1e5   : > { %v4106_v10 = vadd.f32 %v1180_v30, %v1036_v22  ;;  %1328 = vmatmul.f32.gmra.mxu1 %v1828_v33  ;;  %1523 = vmatmul.f32.gmra.mxu2 %v1442_v0  ;;  %v1639_v0 = vld [vmem:[#allocation2 + $0xb1] sm:$0xff] }
 0x1e7   : > { %1717 = vmatmul.f32.gmra.mxu3 %v1636_v4 }
 0x1e8   : > { %v794_v17 = vpop.f32.mrf.mxu2  ;;  %v1183_v44 = vpop.f32.mrf.mxu0 }
 0x1e9   : > { %v842_v12 = vadd.f32 %v794_v17, %v633_v11  ;;  %v1833_v17 = vld [vmem:[#allocation2 + $0xb2] sm:$0xff] }
 0x1ea   : > { %v635_v23 = vpop.f32.mrf.mxu1  ;;  %v989_v50 = vpop.f32.mrf.mxu3 }
 0x1eb   : > { %v1037_v8 = vadd.f32 %v989_v50, %v842_v12  ;;  %1911 = vmatmul.f32.gmra.mxu0 %v1830_v61  ;;  %v636_v47 = vadd.f32 %v635_v23, %v3867_v55  ;;  %v1446_v23 = vld [vmem:[#allocation2 + $0xc0] sm:$0xff] }
 0x1ed   : > { %v4109_v29 = vadd.f32 %v1183_v44, %v1037_v8  ;;  %1331 = vmatmul.f32.gmra.mxu1 %v1829_v40  ;;  %1526 = vmatmul.f32.gmra.mxu2 %v1443_v27  ;;  %v1640_v27 = vld [vmem:[#allocation2 + $0xc1] sm:$0xff] }
 0x1ef   : > { %1720 = vmatmul.f32.gmra.mxu3 %v1637_v39 }
 0x1f0   : > { %v797_v42 = vpop.f32.mrf.mxu2  ;;  %v1186_v43 = vpop.f32.mrf.mxu0 }
 0x1f1   : > { %v843_v19 = vadd.f32 %v797_v42, %v636_v47  ;;  %v1834_v42 = vld [vmem:[#allocation2 + $0xc2] sm:$0xff] }
 0x1f2   : > { %v638_v33 = vpop.f32.mrf.mxu1  ;;  %v992_v59 = vpop.f32.mrf.mxu3 }
 0x1f3   : > { %v1038_v48 = vadd.f32 %v992_v59, %v843_v19  ;;  %1914 = vmatmul.f32.gmra.mxu0 %v1831_v51  ;;  %v639_v7 = vadd.f32 %v638_v33, %v3885_v62  ;;  %v1447_v33 = vld [vmem:[#allocation2 + $0xc8] sm:$0xff] }
 0x1f5   : > { %v4112_v53 = vadd.f32 %v1186_v43, %v1038_v48  ;;  %1334 = vmatmul.f32.gmra.mxu1 %v1830_v61  ;;  %1529 = vmatmul.f32.gmra.mxu2 %v1444_v56  ;;  %v1641_v56 = vld [vmem:[#allocation2 + $0xc9] sm:$0xff] }
 0x1f7   : > { %1723 = vmatmul.f32.gmra.mxu3 %v1638_v57 }
 0x1f8   : > { %v800_v58 = vpop.f32.mrf.mxu2  ;;  %v1189_v55 = vpop.f32.mrf.mxu0 }
 0x1f9   : > { %v844_v30 = vadd.f32 %v800_v58, %v639_v7  ;;  %v1835_v58 = vld [vmem:[#allocation2 + $0xca] sm:$0xff] }
 0x1fa   : > { %v641_v40 = vpop.f32.mrf.mxu1  ;;  %v995_v3 = vpop.f32.mrf.mxu3 }
 0x1fb   : > { %v1039_v14 = vadd.f32 %v995_v3, %v844_v30  ;;  %1917 = vmatmul.f32.gmra.mxu0 %v1832_v63  ;;  %v642_v4 = vadd.f32 %v641_v40, %v3897_v9  ;;  %v1448_v40 = vld [vmem:[#allocation2 + $0xd8] sm:$0xff] }
 0x1fd   : > { %v4115_v22 = vadd.f32 %v1189_v55, %v1039_v14  ;;  %1337 = vmatmul.f32.gmra.mxu1 %v1831_v51  ;;  %1532 = vmatmul.f32.gmra.mxu2 %v1445_v38  ;;  %v1642_v38 = vld [vmem:[#allocation2 + $0xd9] sm:$0xff] }
 0x1ff   : > { %1726 = vmatmul.f32.gmra.mxu3 %v1639_v0 }
 0x200   : > { %v803_v11 = vpop.f32.mrf.mxu2  ;;  %v1192_v62 = vpop.f32.mrf.mxu0 }
 0x201   : > { %v845_v44 = vadd.f32 %v803_v11, %v642_v4  ;;  %v1836_v11 = vld [vmem:[#allocation2 + $0xda] sm:$0xff] }
 0x202   : > { %v644_v61 = vpop.f32.mrf.mxu1  ;;  %v998_v12 = vpop.f32.mrf.mxu3 }
 0x203   : > { %v1040_v50 = vadd.f32 %v998_v12, %v845_v44  ;;  %1920 = vmatmul.f32.gmra.mxu0 %v1833_v17  ;;  %v645_v39 = vadd.f32 %v644_v61, %v3915_v15  ;;  %v1449_v61 = vld [vmem:[#allocation2 + $0xe0] sm:$0xff] }
 0x205   : > { %v4118_v8 = vadd.f32 %v1192_v62, %v1040_v50  ;;  %1340 = vmatmul.f32.gmra.mxu1 %v1832_v63  ;;  %1535 = vmatmul.f32.gmra.mxu2 %v1446_v23  ;;  %v1643_v23 = vld [vmem:[#allocation2 + $0xe1] sm:$0xff] }
 0x207   : > { %1729 = vmatmul.f32.gmra.mxu3 %v1640_v27 }
 0x208   : > { %v806_v47 = vpop.f32.mrf.mxu2  ;;  %v1195_v9 = vpop.f32.mrf.mxu0 }
 0x209   : > { %v846_v43 = vadd.f32 %v806_v47, %v645_v39  ;;  %v1837_v47 = vld [vmem:[#allocation2 + $0xe2] sm:$0xff] }
 0x20a   : > { %v647_v51 = vpop.f32.mrf.mxu1  ;;  %v1001_v19 = vpop.f32.mrf.mxu3 }
 0x20b   : > { %v1041_v59 = vadd.f32 %v1001_v19, %v846_v43  ;;  %1923 = vmatmul.f32.gmra.mxu0 %v1834_v42  ;;  %v648_v57 = vadd.f32 %v647_v51, %v3927_v26  ;;  %v1450_v51 = vld [vmem:[#allocation2 + $0xf0] sm:$0xff] }
 0x20d   : > { %v4121_v48 = vadd.f32 %v1195_v9, %v1041_v59  ;;  %1343 = vmatmul.f32.gmra.mxu1 %v1833_v17  ;;  %1538 = vmatmul.f32.gmra.mxu2 %v1447_v33  ;;  %v1644_v33 = vld [vmem:[#allocation2 + $0xf1] sm:$0xff] }
 0x20f   : > { %1732 = vmatmul.f32.gmra.mxu3 %v1641_v56 }
 0x210   : > { %v809_v7 = vpop.f32.mrf.mxu2  ;;  %v1198_v15 = vpop.f32.mrf.mxu0 }
 0x211   : > { %v847_v55 = vadd.f32 %v809_v7, %v648_v57  ;;  %v1838_v7 = vld [vmem:[#allocation2 + $0xf2] sm:$0xff] }
 0x212   : > { %v650_v63 = vpop.f32.mrf.mxu1  ;;  %v1004_v30 = vpop.f32.mrf.mxu3 }
 0x213   : > { %v1042_v3 = vadd.f32 %v1004_v30, %v847_v55  ;;  %1926 = vmatmul.f32.gmra.mxu0 %v1835_v58  ;;  %v651_v0 = vadd.f32 %v650_v63, %v3945_v34  ;;  %v1451_v63 = vld [vmem:[#allocation2 + $0xf8] sm:$0xff] }
 0x215   : > { %v4124_v14 = vadd.f32 %v1198_v15, %v1042_v3  ;;  %1346 = vmatmul.f32.gmra.mxu1 %v1834_v42  ;;  %1541 = vmatmul.f32.gmra.mxu2 %v1448_v40  ;;  %v4136_v40 = vld [vmem:[%s4817_s2] ss:$0 sm:$0xff] }
 0x216   : > { %v1645_v3 = vld [vmem:[#allocation2 + $0xf9] sm:$0xff] }
 0x217   : > { %1735 = vmatmul.f32.gmra.mxu3 %v1642_v38 }
 0x218   : > { %v812_v4 = vpop.f32.mrf.mxu2  ;;  %v1201_v26 = vpop.f32.mrf.mxu0 }
 0x219   : > { %v848_v62 = vadd.f32 %v812_v4, %v651_v0 }
 0x21a   : > { %v653_v17 = vpop.f32.mrf.mxu1  ;;  %v1007_v44 = vpop.f32.mrf.mxu3 }
 0x21b   : > { %v1043_v12 = vadd.f32 %v1007_v44, %v848_v62  ;;  %1929 = vmatmul.f32.gmra.mxu0 %v1836_v11  ;;  %v654_v27 = vadd.f32 %v653_v17, %v3955_v46 }
 0x21d   : > { %v4127_v50 = vadd.f32 %v1201_v26, %v1043_v12  ;;  %1349 = vmatmul.f32.gmra.mxu1 %v1835_v58  ;;  %1544 = vmatmul.f32.gmra.mxu2 %v1449_v61  ;;  %v1452_v12 = vld [vmem:[#allocation2 + $0x108] sm:$0xff] }
 0x21f   : > { %1738 = vmatmul.f32.gmra.mxu3 %v1643_v23 }
 0x220   : > { %v815_v39 = vpop.f32.mrf.mxu2  ;;  %v1204_v34 = vpop.f32.mrf.mxu0 }
 0x221   : > { %v849_v9 = vadd.f32 %v815_v39, %v654_v27  ;;  %v1646_v39 = vld [vmem:[#allocation2 + $0x109] sm:$0xff] }
 0x222   : > { %v1010_v42 = vpop.f32.mrf.mxu3  ;;  %v1305_v43 = vpop.f32.mrf.mxu1 }
 0x223   : > { %v1044_v19 = vadd.f32 %v1010_v42, %v849_v9  ;;  %1932 = vmatmul.f32.gmra.mxu0 %v1837_v47  ;;  %v1401_v56 = vadd.f32 %v1305_v43, %v3969_v24  ;;  %v1840_v43 = vld [vmem:[#allocation2 + $0x10a] sm:$0xff] }
 0x225   : > { %v4130_v59 = vadd.f32 %v1204_v34, %v1044_v19  ;;  %1352 = vmatmul.f32.gmra.mxu1 %v1836_v11  ;;  %1547 = vmatmul.f32.gmra.mxu2 %v1450_v51  ;;  %v1839_v11 = vld [vmem:[#allocation2 + $0xfa] sm:$0xff] }
 0x227   : > { %1741 = vmatmul.f32.gmra.mxu3 %v1644_v33 }
 0x228   : > { %v1500_v57 = vpop.f32.mrf.mxu2  ;;  %v1888_v46 = vpop.f32.mrf.mxu0 }
 0x229   : > { %v1596_v15 = vadd.f32 %v1500_v57, %v1401_v56  ;;  %v1453_v57 = vld [vmem:[#allocation2 + $0x110] sm:$0xff] }
 0x22a   : > { %v1308_v58 = vpop.f32.mrf.mxu1  ;;  %v1694_v55 = vpop.f32.mrf.mxu3 }
 0x22b   : > { %v1790_v30 = vadd.f32 %v1694_v55, %v1596_v15  ;;  %1935 = vmatmul.f32.gmra.mxu0 %v1838_v7  ;;  %v1402_v24 = vadd.f32 %v1308_v58, %v3976_v35  ;;  %v1647_v55 = vld [vmem:[#allocation2 + $0x111] sm:$0xff] }
 0x22d   : > { %v1984_v38 = vadd.f32 %v1888_v46, %v1790_v30  ;;  %1355 = vmatmul.f32.gmra.mxu1 %v1837_v47  ;;  %1550 = vmatmul.f32.gmra.mxu2 %v1451_v63 }
 0x22f   : > { %v4140_v0 = vadd.f32 %v4136_v40, %v1984_v38  ;;  %1744 = vmatmul.f32.gmra.mxu3 %v1645_v3 }
 0x230   : > { %v1503_v4 = vpop.f32.mrf.mxu2  ;;  %v1891_v26 = vpop.f32.mrf.mxu0 }
 0x231   : > { %v2052_v62 = vmin.f32 %v4140_v0, 20.0  ;;  %v1597_v17 = vadd.f32 %v1503_v4, %v1402_v24  ;;  %vm2756_vm4 = vcmp.gt.f32.partialorder %v4140_v0, 20.0 }
 0x232   : > { %v1311_v44 = vpop.f32.mrf.mxu1  ;;  %v1697_v61 = vpop.f32.mrf.mxu3 }
 0x233   : > { %v2084_v23 = vmul.f32 1.442695, %v2052_v62  ;;  %v1791_v27 = vadd.f32 %v1697_v61, %v1597_v17  ;;  %1938 = vmatmul.f32.gmra.mxu0 %v1839_v11  ;;  %v1403_v35 = vadd.f32 %v1311_v44, %v3989_v2  ;;  %v1454_v61 = vld [vmem:[#allocation2 + $0x120] sm:$0xff] }
 0x235   : > { %3194 = vpow2.f32 %v2084_v23  ;;  %v1985_v34 = vadd.f32 %v1891_v26, %v1791_v27  ;;  %1358 = vmatmul.f32.gmra.mxu1 %v1838_v7  ;;  %1553 = vmatmul.f32.gmra.mxu2 %v1452_v12  ;;  %v1841_v26 = vld [vmem:[#allocation2 + $0x112] sm:$0xff] }
 0x237   : > { %v4145_v47 = vadd.f32 %v4136_v40, %v1985_v34  ;;  %1747 = vmatmul.f32.gmra.mxu3 %v1646_v39  ;;  %v1648_v39 = vld [vmem:[#allocation2 + $0x121] sm:$0xff] }
 0x238   : > { %v1506_v9 = vpop.f32.mrf.mxu2  ;;  %v1894_v42 = vpop.f32.mrf.mxu0 }
 0x239   : > { %v2053_v51 = vmin.f32 %v4145_v47, 20.0  ;;  %v1598_v19 = vadd.f32 %v1506_v9, %v1403_v35  ;;  %vm2757_vm9 = vcmp.gt.f32.partialorder %v4145_v47, 20.0 }
 0x23a   : > { %v1314_v33 = vpop.f32.mrf.mxu1  ;;  %v1700_v56 = vpop.f32.mrf.mxu3 }
 0x23b   : > { %v3195_v46 = vpop.eup %3194  ;;  %v2086_v15 = vmul.f32 1.442695, %v2053_v51  ;;  %v1792_v58 = vadd.f32 %v1700_v56, %v1598_v19  ;;  %1941 = vmatmul.f32.gmra.mxu0 %v1840_v43  ;;  %v1404_v30 = vadd.f32 %v1314_v33, %v3996_v41  ;;  %v1842_v56 = vld [vmem:[#allocation2 + $0x122] sm:$0xff] }
 0x23c   : > { %v2148_v7 = vadd.f32 2.0, %v3195_v46 }
 0x23d   : > { %3196 = vpow2.f32 %v2086_v15  ;;  %v1986_v2 = vadd.f32 %v1894_v42, %v1792_v58  ;;  %1361 = vmatmul.f32.gmra.mxu1 %v1839_v11  ;;  %1556 = vmatmul.f32.gmra.mxu2 %v1453_v57 }
 0x23e   : > { %v2180_v63 = vmul.f32 %v3195_v46, %v2148_v7  ;;  %v1455_v7 = vld [vmem:[#allocation2 + $0x128] sm:$0xff] }
 0x23f   : > { %v4150_v3 = vadd.f32 %v4136_v40, %v1986_v2  ;;  %1750 = vmatmul.f32.gmra.mxu3 %v1647_v55 }
 0x240   : > { %v4152_v38 = vadd.f32 2.0, %v2180_v63  ;;  %v1509_v24 = vpop.f32.mrf.mxu2  ;;  %v1897_v4 = vpop.f32.mrf.mxu0 }
 0x241   : > { %v2054_v62 = vmin.f32 %v4150_v3, 20.0  ;;  %v1599_v17 = vadd.f32 %v1509_v24, %v1404_v30  ;;  %vm2758_vm14 = vcmp.gt.f32.partialorder %v4150_v3, 20.0 }
 0x242   : > { %3198 = vrcp.f32 %v4152_v38  ;;  %v1317_v44 = vpop.f32.mrf.mxu1  ;;  %v1703_v11 = vpop.f32.mrf.mxu3  ;;  %vm2281_vm1 = vweird.f32 %v4152_v38 }
 0x243   : > { %v3197_v12 = vpop.eup %3196  ;;  %v2088_v23 = vmul.f32 1.442695, %v2054_v62  ;;  %v1793_v41 = vadd.f32 %v1703_v11, %v1599_v17  ;;  %1944 = vmatmul.f32.gmra.mxu0 %v1841_v26  ;;  %v1405_v46 = vadd.f32 %v1317_v44, %v4009_v36  ;;  %v2287_v62 = vand.u32 2147483648, %v4152_v38  ;;  %v1649_v11 = vld [vmem:[#allocation2 + $0x129] sm:$0xff] }
 0x244   : > { %v2149_v27 = vadd.f32 2.0, %v3197_v12 }
 0x245   : > { %3200 = vpow2.f32 %v2088_v23  ;;  %v1987_v34 = vadd.f32 %v1897_v4, %v1793_v41  ;;  %1364 = vmatmul.f32.gmra.mxu1 %v1840_v43  ;;  %1559 = vmatmul.f32.gmra.mxu2 %v1454_v61  ;;  %v2285_v4 = vand.u32 2147483647, %v4152_v38 }
 0x246   : > { %v4156_v35 = vmul.f32 %v3197_v12, %v2149_v27  ;;  %v2212_v27 = vmul.f32 %v2180_v63, %v4140_v0 }
 0x247   : > { %v4159_v9 = vadd.f32 %v4136_v40, %v1987_v34  ;;  %1753 = vmatmul.f32.gmra.mxu3 %v1648_v39  ;;  %v2288_v39 = vor.u32 1.1754944e-38, %v2287_v62  ;;  %vm2286_vm3 = vcmp.eq.f32.partialorder %v2285_v4, 8.507059e+37 }
 0x248   : > { %v3199_v42 = vpop.eup %3198  ;;  %v4162_v51 = vadd.f32 2.0, %v4156_v35  ;;  %v1512_v19 = vpop.f32.mrf.mxu2 }
 0x249   : > { %v1900_v33 = vpop.f32.mrf.mxu0  ;;  %v2277_v57 = vmul.f32 %v3199_v42, %v4152_v38  ;;  %v2055_v43 = vmin.f32 %v4159_v9, 20.0  ;;  %v1600_v24 = vadd.f32 %v1512_v19, %v1405_v46  ;;  %vm2282_vm0 = vweird.f32 %v3199_v42  ;;  %v4177_v46 = vld [vmem:[#allocation2 + $0x12a] sm:$0xff] }
 0x24a   : > { %3202 = vrcp.f32 %v4162_v51  ;;  %v1320_v15 = vpop.f32.mrf.mxu1  ;;  %v1706_v58 = vpop.f32.mrf.mxu3  ;;  %vm2283_vm2 = vmor %vm2281_vm1, %vm2282_vm0  ;;  %v2299_v4 = vand.u32 2147483647, %v4162_v51  ;;  %v2301_v62 = vand.u32 2147483648, %v4162_v51  ;;  %vm2295_vm6 = vweird.f32 %v4162_v51 }
 0x24b   : > { %v3201_v55 = vpop.eup %3200  ;;  %v2278_v2 = vsub.f32 1.0, %v2277_v57  ;;  %v2090_v30 = vmul.f32 1.442695, %v2055_v43  ;;  %1947 = vmatmul.f32.gmra.mxu0 %v1842_v56  ;;  %v1794_v36 = vadd.f32 %v1706_v58, %v1600_v24  ;;  %v1406_v63 = vadd.f32 %v1320_v15, %v4016_v60  ;;  %v1650_v60 = vld [vmem:[#allocation2 + $0x139] sm:$0xff] }
 0x24c   : > { %v2150_v17 = vadd.f32 2.0, %v3201_v55  ;;  %vm2300_vm8 = vcmp.eq.f32.partialorder %v2299_v4, 8.507059e+37 }
 0x24d   : > { %v2279_v61 = vmul.f32 %v3199_v42, %v2278_v2  ;;  %3204 = vpow2.f32 %v2090_v30  ;;  %1367 = vmatmul.f32.gmra.mxu1 %v1841_v26  ;;  %1562 = vmatmul.f32.gmra.mxu2 %v1455_v7  ;;  %v1988_v23 = vadd.f32 %v1900_v33, %v1794_v36 }
 0x24e   : > { %v4170_v44 = vmul.f32 %v3201_v55, %v2150_v17  ;;  %v1456_v55 = vld [vmem:[#allocation2 + $0x138] sm:$0xff] }
 0x24f   : > { %v2280_v12 = vadd.f32 %v3199_v42, %v2279_v61  ;;  %1756 = vmatmul.f32.gmra.mxu3 %v1649_v11  ;;  %v4181_v38 = vadd.f32 %v4136_v40, %v1988_v23 }
 0x250   : > { %v3203_v41 = vpop.eup %3202  ;;  %v4175_v34 = vadd.f32 2.0, %v4170_v44  ;;  %v1515_v19 = vpop.f32.mrf.mxu2 }
 0x251   : > { %v1903_v57 = vpop.f32.mrf.mxu0  ;;  %v2284_v26 = vsel %vm2283_vm2, %v3199_v42, %v2280_v12  ;;  %v2291_v43 = vmul.f32 %v3203_v41, %v4162_v51  ;;  %v2056_v24 = vmin.f32 %v4181_v38, 20.0  ;;  %v1601_v11 = vadd.f32 %v1515_v19, %v1406_v63 }
 0x252   : > { %v2289_v33 = vsel %vm2286_vm3, %v2288_v39, %v2284_v26  ;;  %3206 = vrcp.f32 %v4175_v34  ;;  %v1323_v58 = vpop.f32.mrf.mxu1  ;;  %v1709_v7 = vpop.f32.mrf.mxu3  ;;  %vm2296_vm5 = vweird.f32 %v3203_v41  ;;  %v2302_v26 = vor.u32 1.1754944e-38, %v2301_v62 }
 0x253   : > { %v3205_v2 = vpop.eup %3204  ;;  %v2724_v30 = vmul.f32 %v2289_v33, %v2212_v27  ;;  %v2292_v42 = vsub.f32 1.0, %v2291_v43  ;;  %1950 = vmatmul.f32.gmra.mxu0 %v4177_v46  ;;  %v2092_v36 = vmul.f32 1.442695, %v2056_v24  ;;  %v1795_v23 = vadd.f32 %v1709_v7, %v1601_v11  ;;  %vm2297_vm7 = vmor %vm2295_vm6, %vm2296_vm5  ;;  %v4201_v7 = vld [vmem:[#allocation2 + $0x13a] sm:$0xff] }
 0x254   : > { %v2151_v17 = vadd.f32 2.0, %v3205_v2  ;;  %v1407_v39 = vadd.f32 %v1323_v58, %v4028_v28  ;;  %v2315_v4 = vand.u32 2147483648, %v4175_v34  ;;  %vm2309_vm11 = vweird.f32 %v4175_v34 }
 0x255   : > { %v2788_v15 = vsel %vm2756_vm4, %v4140_v0, %v2724_v30  ;;  %v2293_v61 = vmul.f32 %v3203_v41, %v2292_v42  ;;  %1370 = vmatmul.f32.gmra.mxu1 %v1842_v56  ;;  %1565 = vmatmul.f32.gmra.mxu2 %v1456_v55  ;;  %3208 = vpow2.f32 %v2092_v36  ;;  %v2213_v0 = vmul.f32 %v4156_v35, %v4145_v47  ;;  %v1457_v30 = vld [vmem:[#allocation2 + $0x140] sm:$0xff] }
 0x256   : > { %2820 = vst [vmem:[%s3399_s23] sm:$0xff] %v2788_v15  ;;  %v4192_v12 = vmul.f32 %v3205_v2, %v2151_v17  ;;  %v1989_v43 = vadd.f32 %v1903_v57, %v1795_v23  ;;  %v1651_v17 = vld [vmem:[#allocation2 + $0x141] sm:$0xff]  ;;  %vm2759_vm3 = vcmp.gt.f32.partialorder %v4159_v9, 20.0 }
 0x257   : > { %v2294_v27 = vadd.f32 %v3203_v41, %v2293_v61  ;;  %1759 = vmatmul.f32.gmra.mxu3 %v1650_v60 }
 0x258   : > { %v3207_v19 = vpop.eup %3206  ;;  %v4199_v56 = vadd.f32 2.0, %v4192_v12  ;;  %v1518_v33 = vpop.f32.mrf.mxu2  ;;  %v4206_v57 = vadd.f32 %v4136_v40, %v1989_v43 }
 0x259   : > { %v1906_v63 = vpop.f32.mrf.mxu0  ;;  %v2298_v55 = vsel %vm2297_vm7, %v3203_v41, %v2294_v27  ;;  %v2305_v51 = vmul.f32 %v3207_v19, %v4175_v34  ;;  %v1602_v28 = vadd.f32 %v1518_v33, %v1407_v39  ;;  %v2313_v41 = vand.u32 2147483647, %v4175_v34 }
 0x25a   : > { %v2303_v58 = vsel %vm2300_vm8, %v2302_v26, %v2298_v55  ;;  %3210 = vrcp.f32 %v4199_v56  ;;  %v1326_v2 = vpop.f32.mrf.mxu1  ;;  %v1712_v35 = vpop.f32.mrf.mxu3  ;;  %vm2310_vm10 = vweird.f32 %v3207_v19  ;;  %v2057_v61 = vmin.f32 %v4206_v57, 20.0 }
 0x25b   : > { %v2725_v42 = vmul.f32 %v2303_v58, %v2213_v0  ;;  %v2306_v24 = vsub.f32 1.0, %v2305_v51  ;;  %1953 = vmatmul.f32.gmra.mxu0 %v4201_v7  ;;  %v1796_v62 = vadd.f32 %v1712_v35, %v1602_v28  ;;  %v3209_v11 = vpop.eup %3208  ;;  %v2214_v27 = vmul.f32 %v4170_v44, %v4150_v3  ;;  %vm2311_vm12 = vmor %vm2309_vm11, %vm2310_vm10 }
 0x25c   : > { %v2152_v36 = vadd.f32 2.0, %v3209_v11  ;;  %v2094_v0 = vmul.f32 1.442695, %v2057_v61  ;;  %vm2314_vm13 = vcmp.eq.f32.partialorder %v2313_v41, 8.507059e+37  ;;  %v1408_v34 = vadd.f32 %v1326_v2, %v4034_v13  ;;  %v1652_v2 = vld [vmem:[#allocation2 + $0x151] sm:$0xff] }
 0x25d   : > { %v2789_v60 = vsel %vm2757_vm9, %v4145_v47, %v2725_v42  ;;  %v2307_v15 = vmul.f32 %v3207_v19, %v2306_v24  ;;  %1373 = vmatmul.f32.gmra.mxu1 %v4177_v46  ;;  %1568 = vmatmul.f32.gmra.mxu2 %v1457_v30  ;;  %v1990_v23 = vadd.f32 %v1906_v63, %v1796_v62  ;;  %v2316_v47 = vor.u32 1.1754944e-38, %v2315_v4  ;;  %v4224_v63 = vld [vmem:[#allocation2 + $0x142] sm:$0xff]  ;;  %v1458_v24 = vld [vmem:[#allocation2 + $0x150] sm:$0xff] }
 0x25e   : > { %2821 = vst [vmem:[%s3399_s23 + $0x8] sm:$0xff] %v2789_v60  ;;  %v4219_v43 = vmul.f32 %v3209_v11, %v2152_v36  ;;  %3212 = vpow2.f32 %v2094_v0  ;;  %v2329_v13 = vand.u32 2147483648, %v4199_v56  ;;  %vm2323_vm0 = vweird.f32 %v4199_v56 }
 0x25f   : > { %v2308_v39 = vadd.f32 %v3207_v19, %v2307_v15  ;;  %1762 = vmatmul.f32.gmra.mxu3 %v1651_v17  ;;  %v4222_v46 = vadd.f32 %v4136_v40, %v1990_v23  ;;  %vm2760_vm8 = vcmp.gt.f32.partialorder %v4181_v38, 20.0  ;;  %vm2761_vm11 = vcmp.gt.f32.partialorder %v4206_v57, 20.0 }
 0x260   : > { %v3211_v26 = vpop.eup %3210  ;;  %v1521_v33 = vpop.f32.mrf.mxu2  ;;  %v4229_v58 = vadd.f32 2.0, %v4219_v43 }
 0x261   : > { %v1909_v55 = vpop.f32.mrf.mxu0  ;;  %v2312_v51 = vsel %vm2311_vm12, %v3207_v19, %v2308_v39  ;;  %v2319_v44 = vmul.f32 %v3211_v26, %v4199_v56  ;;  %v2058_v35 = vmin.f32 %v4222_v46, 20.0  ;;  %v1603_v62 = vadd.f32 %v1521_v33, %v1408_v34  ;;  %v1846_v33 = vld [vmem:[#allocation2 + $0x152] sm:$0xff] }
 0x262   : > { %v2317_v28 = vsel %vm2314_vm13, %v2316_v47, %v2312_v51  ;;  %v1329_v30 = vpop.f32.mrf.mxu1  ;;  %v1715_v42 = vpop.f32.mrf.mxu3  ;;  %v2327_v19 = vand.u32 2147483647, %v4199_v56  ;;  %3214 = vrcp.f32 %v4229_v58  ;;  %vm2324_vm15 = vweird.f32 %v3211_v26 }
 0x263   : > { %v2726_v41 = vmul.f32 %v2317_v28, %v2214_v27  ;;  %v2320_v4 = vsub.f32 1.0, %v2319_v44  ;;  %1956 = vmatmul.f32.gmra.mxu0 %v4224_v63  ;;  %v2096_v60 = vmul.f32 1.442695, %v2058_v35  ;;  %v1797_v15 = vadd.f32 %v1715_v42, %v1603_v62  ;;  %vm2325_vm1 = vmor %vm2323_vm0, %vm2324_vm15 }
 0x264   : > { %v3213_v61 = vpop.eup %3212  ;;  %v1409_v23 = vadd.f32 %v1329_v30, %v4046_v16  ;;  %v2330_v27 = vor.u32 1.1754944e-38, %v2329_v13  ;;  %vm2328_vm2 = vcmp.eq.f32.partialorder %v2327_v19, 8.507059e+37  ;;  %vm2337_vm5 = vweird.f32 %v4229_v58 }
 0x265   : > { %v2790_v17 = vsel %vm2758_vm14, %v4150_v3, %v2726_v41  ;;  %v2321_v11 = vmul.f32 %v3211_v26, %v2320_v4  ;;  %1376 = vmatmul.f32.gmra.mxu1 %v4201_v7  ;;  %1571 = vmatmul.f32.gmra.mxu2 %v1458_v24  ;;  %3216 = vpow2.f32 %v2096_v60  ;;  %v2153_v39 = vadd.f32 2.0, %v3213_v61  ;;  %v1653_v41 = vld [vmem:[#allocation2 + $0x159] sm:$0xff] }
 0x266   : > { %2822 = vst [vmem:[%s3399_s23 + $0x10] sm:$0xff] %v2790_v17  ;;  %v1991_v3 = vadd.f32 %v1909_v55, %v1797_v15  ;;  %v2215_v7 = vmul.f32 %v4192_v12, %v4159_v9  ;;  %v1459_v55 = vld [vmem:[#allocation2 + $0x158] sm:$0xff]  ;;  %v2343_v17 = vand.u32 2147483648, %v4229_v58 }
 0x267   : > { %v2322_v36 = vadd.f32 %v3211_v26, %v2321_v11  ;;  %1765 = vmatmul.f32.gmra.mxu3 %v1652_v2  ;;  %v4244_v56 = vmul.f32 %v3213_v61, %v2153_v39  ;;  %v2341_v2 = vand.u32 2147483647, %v4229_v58 }
 0x268   : > { %v1524_v0 = vpop.f32.mrf.mxu2  ;;  %v3215_v34 = vpop.eup %3214  ;;  %v4247_v16 = vadd.f32 %v4136_v40, %v1991_v3 }
 0x269   : > { %v1912_v47 = vpop.f32.mrf.mxu0  ;;  %v2326_v51 = vsel %vm2325_vm1, %v3211_v26, %v2322_v36  ;;  %v1604_v44 = vadd.f32 %v1524_v0, %v1409_v23  ;;  %v2333_v24 = vmul.f32 %v3215_v34, %v4229_v58  ;;  %v4252_v12 = vadd.f32 2.0, %v4244_v56  ;;  %v4263_v23 = vld [vmem:[#allocation2 + $0x15a] sm:$0xff] }
 0x26a   : > { %v2331_v28 = vsel %vm2328_vm2, %v2330_v27, %v2326_v51  ;;  %v1332_v35 = vpop.f32.mrf.mxu1  ;;  %v1718_v30 = vpop.f32.mrf.mxu3  ;;  %v2059_v26 = vmin.f32 %v4247_v16, 20.0  ;;  %vm2338_vm4 = vweird.f32 %v3215_v34  ;;  %v2216_v0 = vmul.f32 %v4219_v43, %v4181_v38  ;;  %v1460_v51 = vld [vmem:[#allocation2 + $0x168] sm:$0xff] }
 0x26b   : > { %v2727_v42 = vmul.f32 %v2331_v28, %v2215_v7  ;;  %1959 = vmatmul.f32.gmra.mxu0 %v1846_v33  ;;  %v3217_v4 = vpop.eup %3216  ;;  %v2334_v19 = vsub.f32 1.0, %v2333_v24  ;;  %v1798_v13 = vadd.f32 %v1718_v30, %v1604_v44  ;;  %3218 = vrcp.f32 %v4252_v12  ;;  %vm2339_vm6 = vmor %vm2337_vm5, %vm2338_vm4 }
 0x26c   : > { %v2154_v60 = vadd.f32 2.0, %v3217_v4  ;;  %v2098_v15 = vmul.f32 1.442695, %v2059_v26  ;;  %vm2342_vm7 = vcmp.eq.f32.partialorder %v2341_v2, 8.507059e+37  ;;  %v2355_v2 = vand.u32 2147483647, %v4252_v12 }
 0x26d   : > { %v2791_v62 = vsel %vm2759_vm3, %v4159_v9, %v2727_v42  ;;  %1379 = vmatmul.f32.gmra.mxu1 %v4224_v63  ;;  %1574 = vmatmul.f32.gmra.mxu2 %v1459_v55  ;;  %v2335_v11 = vmul.f32 %v3215_v34, %v2334_v19  ;;  %v1992_v61 = vadd.f32 %v1912_v47, %v1798_v13  ;;  %v2344_v47 = vor.u32 1.1754944e-38, %v2343_v17  ;;  %v1654_v42 = vld [vmem:[#allocation2 + $0x169] sm:$0xff] }
 0x26e   : > { %2823 = vst [vmem:[%s3399_s23 + $0x18] sm:$0xff] %v2791_v62  ;;  %v1410_v9 = vadd.f32 %v1332_v35, %v4052_v31  ;;  %v4265_v39 = vmul.f32 %v3217_v4, %v2154_v60  ;;  %3220 = vpow2.f32 %v2098_v15  ;;  %v2357_v17 = vand.u32 2147483648, %v4252_v12  ;;  %v4286_v15 = vld [vmem:[#allocation2 + $0x16a] sm:$0xff] }
 0x26f   : > { %1768 = vmatmul.f32.gmra.mxu3 %v1653_v41  ;;  %v2336_v27 = vadd.f32 %v3215_v34, %v2335_v11  ;;  %v4268_v3 = vadd.f32 %v4136_v40, %v1992_v61  ;;  %vm2351_vm10 = vweird.f32 %v4252_v12  ;;  %vm2356_vm13 = vcmp.eq.f32.partialorder %v2355_v2, 8.507059e+37  ;;  %v4308_v2 = vld [vmem:[#allocation2 + $0x172] sm:$0xff] }
 0x270   : > { %v1527_v36 = vpop.f32.mrf.mxu2  ;;  %v4274_v28 = vadd.f32 2.0, %v4265_v39  ;;  %vm2762_vm2 = vcmp.gt.f32.partialorder %v4222_v46, 20.0 }
 0x271   : > { %v1915_v63 = vpop.f32.mrf.mxu0  ;;  %v1605_v58 = vadd.f32 %v1527_v36, %v1410_v9  ;;  %v2340_v44 = vsel %vm2339_vm6, %v3215_v34, %v2336_v27  ;;  %v2060_v35 = vmin.f32 %v4268_v3, 20.0  ;;  %v3219_v30 = vpop.eup %3218  ;;  %v1461_v27 = vld [vmem:[#allocation2 + $0x170] sm:$0xff]  ;;  %vm2763_vm6 = vcmp.gt.f32.partialorder %v4247_v16, 20.0 }
 0x272   : > { %v1335_v7 = vpop.f32.mrf.mxu1  ;;  %v1721_v31 = vpop.f32.mrf.mxu3  ;;  %v2345_v55 = vsel %vm2342_vm7, %v2344_v47, %v2340_v44  ;;  %v2347_v26 = vmul.f32 %v3219_v30, %v4252_v12  ;;  %3222 = vrcp.f32 %v4274_v28  ;;  %vm2352_vm9 = vweird.f32 %v3219_v30 }
 0x273   : > { %1962 = vmatmul.f32.gmra.mxu0 %v4263_v23  ;;  %v1799_v43 = vadd.f32 %v1721_v31, %v1605_v58  ;;  %v2728_v24 = vmul.f32 %v2345_v55, %v2216_v0  ;;  %v2100_v34 = vmul.f32 1.442695, %v2060_v35  ;;  %v1411_v19 = vadd.f32 %v1335_v7, %v4064_v1  ;;  %vm2353_vm12 = vmor %vm2351_vm10, %vm2352_vm9  ;;  %v1655_v35 = vld [vmem:[#allocation2 + $0x171] sm:$0xff] }
 0x274   : > { %v3221_v41 = vpop.eup %3220  ;;  %v2348_v62 = vsub.f32 1.0, %v2347_v26  ;;  %v2217_v7 = vmul.f32 %v4244_v56, %v4206_v57  ;;  %v2358_v31 = vor.u32 1.1754944e-38, %v2357_v17  ;;  %v2369_v56 = vand.u32 2147483647, %v4274_v28 }
 0x275   : > { %1382 = vmatmul.f32.gmra.mxu1 %v1846_v33  ;;  %1577 = vmatmul.f32.gmra.mxu2 %v1460_v51  ;;  %v2792_v4 = vsel %vm2760_vm8, %v4181_v38, %v2728_v24  ;;  %v1993_v13 = vadd.f32 %v1915_v63, %v1799_v43  ;;  %v2155_v11 = vadd.f32 2.0, %v3221_v41  ;;  %3224 = vpow2.f32 %v2100_v34 }
 0x276   : > { %2824 = vst [vmem:[%s3399_s23 + $0x20] sm:$0xff] %v2792_v4  ;;  %v2349_v61 = vmul.f32 %v3219_v30, %v2348_v62  ;;  %vm2365_vm15 = vweird.f32 %v4274_v28  ;;  %vm2370_vm1 = vcmp.eq.f32.partialorder %v2369_v56, 8.507059e+37 }
 0x277   : > { %1771 = vmatmul.f32.gmra.mxu3 %v1654_v42  ;;  %v4289_v38 = vadd.f32 %v4136_v40, %v1993_v13  ;;  %v4291_v1 = vmul.f32 %v3221_v41, %v2155_v11  ;;  %v2371_v41 = vand.u32 2147483648, %v4274_v28 }
 0x278   : > { %v1530_v33 = vpop.f32.mrf.mxu2  ;;  %v3223_v0 = vpop.eup %3222  ;;  %v2350_v47 = vadd.f32 %v3219_v30, %v2349_v61 }
 0x279   : > { %v1918_v60 = vpop.f32.mrf.mxu0  ;;  %v1606_v9 = vadd.f32 %v1530_v33, %v1411_v19  ;;  %v2061_v58 = vmin.f32 %v4289_v38, 20.0  ;;  %v2361_v51 = vmul.f32 %v3223_v0, %v4274_v28  ;;  %v4301_v44 = vadd.f32 2.0, %v4291_v1 }
 0x27a   : > { %v1338_v36 = vpop.f32.mrf.mxu1  ;;  %v1724_v63 = vpop.f32.mrf.mxu3  ;;  %v2354_v55 = vsel %vm2353_vm12, %v3219_v30, %v2350_v47  ;;  %vm2366_vm14 = vweird.f32 %v3223_v0  ;;  %vm2764_vm12 = vcmp.gt.f32.partialorder %v4268_v3, 20.0 }
 0x27b   : > { %1965 = vmatmul.f32.gmra.mxu0 %v4286_v15  ;;  %v2102_v12 = vmul.f32 1.442695, %v2061_v58  ;;  %v1800_v43 = vadd.f32 %v1724_v63, %v1606_v9  ;;  %v3225_v42 = vpop.eup %3224  ;;  %v2359_v24 = vsel %vm2356_vm13, %v2358_v31, %v2354_v55  ;;  %v2362_v26 = vsub.f32 1.0, %v2361_v51  ;;  %vm2367_vm0 = vmor %vm2365_vm15, %vm2366_vm14  ;;  %v1656_v31 = vld [vmem:[#allocation2 + $0x181] sm:$0xff] }
 0x27c   : > { %3226 = vrcp.f32 %v4301_v44  ;;  %v2729_v34 = vmul.f32 %v2359_v24, %v2217_v7  ;;  %v2156_v4 = vadd.f32 2.0, %v3225_v42  ;;  %v1412_v30 = vadd.f32 %v1338_v36, %v4070_v32  ;;  %v1462_v36 = vld [vmem:[#allocation2 + $0x180] sm:$0xff] }
 0x27d   : > { %1385 = vmatmul.f32.gmra.mxu1 %v4263_v23  ;;  %1580 = vmatmul.f32.gmra.mxu2 %v1461_v27  ;;  %v2363_v62 = vmul.f32 %v3223_v0, %v2362_v26  ;;  %3228 = vpow2.f32 %v2102_v12  ;;  %v1994_v23 = vadd.f32 %v1918_v60, %v1800_v43  ;;  %v2218_v63 = vmul.f32 %v4265_v39, %v4222_v46 }
 0x27e   : > { %v2793_v17 = vsel %vm2761_vm11, %v4206_v57, %v2729_v34  ;;  %v4313_v11 = vmul.f32 %v3225_v42, %v2156_v4  ;;  %v2372_v27 = vor.u32 1.1754944e-38, %v2371_v41  ;;  %v2385_v56 = vand.u32 2147483648, %v4301_v44  ;;  %v4336_v4 = vld [vmem:[#allocation2 + $0x182] sm:$0xff] }
 0x27f   : > { %1774 = vmatmul.f32.gmra.mxu3 %v1655_v35  ;;  %2825 = vst [vmem:[%s3399_s23 + $0x28] sm:$0xff] %v2793_v17  ;;  %v2364_v33 = vadd.f32 %v3223_v0, %v2363_v62  ;;  %v4318_v32 = vadd.f32 %v4136_v40, %v1994_v23  ;;  %vm2379_vm4 = vweird.f32 %v4301_v44 }
 0x280   : > { %v1533_v19 = vpop.f32.mrf.mxu2  ;;  %v4324_v57 = vadd.f32 2.0, %v4313_v11 }
 0x281   : > { %v1921_v13 = vpop.f32.mrf.mxu0  ;;  %v1607_v61 = vadd.f32 %v1533_v19, %v1412_v30  ;;  %v2368_v28 = vsel %vm2367_vm0, %v3223_v0, %v2364_v33  ;;  %v2062_v58 = vmin.f32 %v4318_v32, 20.0  ;;  %v2383_v0 = vand.u32 2147483647, %v4301_v44 }
 0x282   : > { %v1341_v9 = vpop.f32.mrf.mxu1  ;;  %v1727_v60 = vpop.f32.mrf.mxu3  ;;  %v2373_v51 = vsel %vm2370_vm1, %v2372_v27, %v2368_v28  ;;  %3230 = vrcp.f32 %v4324_v57  ;;  %vm2393_vm9 = vweird.f32 %v4324_v57  ;;  %vm2765_vm1 = vcmp.gt.f32.partialorder %v4289_v38, 20.0 }
 0x283   : > { %1968 = vmatmul.f32.gmra.mxu0 %v4308_v2  ;;  %v3227_v47 = vpop.eup %3226  ;;  %v1801_v7 = vadd.f32 %v1727_v60, %v1607_v61  ;;  %v2730_v55 = vmul.f32 %v2373_v51, %v2218_v63  ;;  %v2104_v42 = vmul.f32 1.442695, %v2062_v58  ;;  %v2386_v60 = vor.u32 1.1754944e-38, %v2385_v56 }
 0x284   : > { %v2375_v35 = vmul.f32 %v3227_v47, %v4301_v44  ;;  %v3229_v39 = vpop.eup %3228  ;;  %vm2380_vm3 = vweird.f32 %v3227_v47  ;;  %v2219_v63 = vmul.f32 %v4291_v1, %v4247_v16  ;;  %vm2384_vm7 = vcmp.eq.f32.partialorder %v2383_v0, 8.507059e+37 }
 0x285   : > { %1388 = vmatmul.f32.gmra.mxu1 %v4286_v15  ;;  %1583 = vmatmul.f32.gmra.mxu2 %v1462_v36  ;;  %v2157_v43 = vadd.f32 2.0, %v3229_v39  ;;  %v1995_v24 = vadd.f32 %v1921_v13, %v1801_v7  ;;  %v2794_v26 = vsel %vm2762_vm2, %v4222_v46, %v2730_v55  ;;  %v1413_v15 = vadd.f32 %v1341_v9, %v4073_v20  ;;  %v1463_v13 = vld [vmem:[#allocation2 + $0x188] sm:$0xff]  ;;  %vm2381_vm5 = vmor %vm2379_vm4, %vm2380_vm3 }
 0x286   : > { %v2376_v12 = vsub.f32 1.0, %v2375_v35  ;;  %2826 = vst [vmem:[%s3399_s23 + $0x30] sm:$0xff] %v2794_v26  ;;  %3232 = vpow2.f32 %v2104_v42  ;;  %v1657_v36 = vld [vmem:[#allocation2 + $0x189] sm:$0xff]  ;;  %v2397_v7 = vand.u32 2147483647, %v4324_v57  ;;  %vm2766_vm3 = vcmp.gt.f32.partialorder %v4318_v32, 20.0 }
 0x287   : > { %1777 = vmatmul.f32.gmra.mxu3 %v1656_v31  ;;  %v4339_v62 = vmul.f32 %v3229_v39, %v2157_v43  ;;  %v4342_v23 = vadd.f32 %v4136_v40, %v1995_v24  ;;  %v2399_v39 = vand.u32 2147483648, %v4324_v57  ;;  %v4360_v43 = vld [vmem:[#allocation2 + $0x18a] sm:$0xff] }
 0x288   : > { %v1536_v34 = vpop.f32.mrf.mxu2  ;;  %v2377_v30 = vmul.f32 %v3227_v47, %v2376_v12  ;;  %v3231_v17 = vpop.eup %3230  ;;  %vm2398_vm11 = vcmp.eq.f32.partialorder %v2397_v7, 8.507059e+37 }
 0x289   : > { %v1924_v41 = vpop.f32.mrf.mxu0  ;;  %v4346_v20 = vadd.f32 2.0, %v4339_v62  ;;  %v2063_v61 = vmin.f32 %v4342_v23, 20.0  ;;  %v1608_v9 = vadd.f32 %v1536_v34, %v1413_v15  ;;  %v2389_v44 = vmul.f32 %v3231_v17, %v4324_v57 }
 0x28a   : > { %v1344_v46 = vpop.f32.mrf.mxu1  ;;  %v1730_v19 = vpop.f32.mrf.mxu3  ;;  %v2378_v33 = vadd.f32 %v3227_v47, %v2377_v30  ;;  %vm2394_vm8 = vweird.f32 %v3231_v17  ;;  %v1464_v30 = vld [vmem:[#allocation2 + $0x198] sm:$0xff] }
 0x28b   : > { %1971 = vmatmul.f32.gmra.mxu0 %v4336_v4  ;;  %3234 = vrcp.f32 %v4346_v20  ;;  %v2390_v58 = vsub.f32 1.0, %v2389_v44  ;;  %v2106_v31 = vmul.f32 1.442695, %v2063_v61  ;;  %v1414_v55 = vadd.f32 %v1344_v46, %v4076_v21  ;;  %vm2395_vm10 = vmor %vm2393_vm9, %vm2394_vm8  ;;  %v1658_v61 = vld [vmem:[#allocation2 + $0x199] sm:$0xff] }
 0x28c   : > { %v2382_v27 = vsel %vm2381_vm5, %v3227_v47, %v2378_v33  ;;  %v3233_v51 = vpop.eup %3232  ;;  %v1802_v1 = vadd.f32 %v1730_v19, %v1608_v9  ;;  %v2400_v19 = vor.u32 1.1754944e-38, %v2399_v39  ;;  %vm2407_vm14 = vweird.f32 %v4346_v20 }
 0x28d   : > { %1391 = vmatmul.f32.gmra.mxu1 %v4308_v2  ;;  %1586 = vmatmul.f32.gmra.mxu2 %v1463_v13  ;;  %v2387_v28 = vsel %vm2384_vm7, %v2386_v60, %v2382_v27  ;;  %v2391_v47 = vmul.f32 %v3231_v17, %v2390_v58  ;;  %v2158_v0 = vadd.f32 2.0, %v3233_v51  ;;  %3236 = vpow2.f32 %v2106_v31 }
 0x28e   : > { %v2731_v35 = vmul.f32 %v2387_v28, %v2219_v63  ;;  %v1996_v24 = vadd.f32 %v1924_v41, %v1802_v1  ;;  %v2413_v28 = vand.u32 2147483648, %v4346_v20 }
 0x28f   : > { %1780 = vmatmul.f32.gmra.mxu3 %v1657_v36  ;;  %v2392_v56 = vadd.f32 %v3231_v17, %v2391_v47  ;;  %v4367_v21 = vmul.f32 %v3233_v51, %v2158_v0 }
 0x290   : > { %v1539_v2 = vpop.f32.mrf.mxu2  ;;  %v2795_v42 = vsel %vm2763_vm6, %v4247_v16, %v2731_v35  ;;  %v4371_v13 = vadd.f32 %v4136_v40, %v1996_v24  ;;  %v2220_v16 = vmul.f32 %v4313_v11, %v4268_v3 }
 0x291   : > { %v1927_v12 = vpop.f32.mrf.mxu0  ;;  %v1609_v26 = vadd.f32 %v1539_v2, %v1414_v55  ;;  %2827 = vst [vmem:[%s3399_s23 + $0x38] sm:$0xff] %v2795_v42  ;;  %v3235_v46 = vpop.eup %3234  ;;  %v2396_v41 = vsel %vm2395_vm10, %v3231_v17, %v2392_v56  ;;  %v4379_v60 = vadd.f32 2.0, %v4367_v21  ;;  %v2411_v17 = vand.u32 2147483647, %v4346_v20  ;;  %v1852_v55 = vld [vmem:[#allocation2 + $0x19a] sm:$0xff] }
 0x292   : > { %v1347_v15 = vpop.f32.mrf.mxu1  ;;  %v1733_v34 = vpop.f32.mrf.mxu3  ;;  %v2403_v57 = vmul.f32 %v3235_v46, %v4346_v20  ;;  %v2401_v9 = vsel %vm2398_vm11, %v2400_v19, %v2396_v41  ;;  %v2064_v44 = vmin.f32 %v4371_v13, 20.0  ;;  %vm2408_vm13 = vweird.f32 %v3235_v46 }
 0x293   : > { %v1803_v33 = vadd.f32 %v1733_v34, %v1609_v26  ;;  %1974 = vmatmul.f32.gmra.mxu0 %v4360_v43  ;;  %v3237_v36 = vpop.eup %3236  ;;  %v2732_v63 = vmul.f32 %v2401_v9, %v2220_v16  ;;  %3238 = vrcp.f32 %v4379_v60  ;;  %v1415_v58 = vadd.f32 %v1347_v15, %v4079_v18  ;;  %vm2409_vm15 = vmor %vm2407_vm14, %vm2408_vm13  ;;  %v1659_v15 = vld [vmem:[#allocation2 + $0x1a1] sm:$0xff] }
 0x294   : > { %v2404_v11 = vsub.f32 1.0, %v2403_v57  ;;  %v2108_v51 = vmul.f32 1.442695, %v2064_v44  ;;  %v2414_v42 = vor.u32 1.1754944e-38, %v2413_v28  ;;  %vm2412_vm0 = vcmp.eq.f32.partialorder %v2411_v17, 8.507059e+37 }
 0x295   : > { %1394 = vmatmul.f32.gmra.mxu1 %v4336_v4  ;;  %1589 = vmatmul.f32.gmra.mxu2 %v1464_v30  ;;  %v1997_v27 = vadd.f32 %v1927_v12, %v1803_v33  ;;  %v2796_v7 = vsel %vm2764_vm12, %v4268_v3, %v2732_v63  ;;  %v2159_v4 = vadd.f32 2.0, %v3237_v36  ;;  %v1465_v3 = vld [vmem:[#allocation2 + $0x1a0] sm:$0xff]  ;;  %vm2421_vm4 = vweird.f32 %v4379_v60 }
 0x296   : > { %v2405_v31 = vmul.f32 %v3235_v46, %v2404_v11  ;;  %2828 = vst [vmem:[%s3399_s23 + $0x40] sm:$0xff] %v2796_v7  ;;  %3240 = vpow2.f32 %v2108_v51  ;;  %v1853_v63 = vld [vmem:[#allocation2 + $0x1a2] sm:$0xff]  ;;  %v2425_v11 = vand.u32 2147483647, %v4379_v60  ;;  %vm2767_vm11 = vcmp.gt.f32.partialorder %v4342_v23, 20.0 }
 0x297   : > { %1783 = vmatmul.f32.gmra.mxu3 %v1658_v61  ;;  %v4390_v1 = vadd.f32 %v4136_v40, %v1997_v27  ;;  %v4393_v2 = vmul.f32 %v3237_v36, %v2159_v4  ;;  %v2221_v40 = vmul.f32 %v4339_v62, %v4289_v38 }
 0x298   : > { %v1542_v35 = vpop.f32.mrf.mxu2  ;;  %v2406_v0 = vadd.f32 %v3235_v46, %v2405_v31  ;;  %vm2426_vm6 = vcmp.eq.f32.partialorder %v2425_v11, 8.507059e+37 }
 0x299   : > { %v1930_v39 = vpop.f32.mrf.mxu0  ;;  %v1610_v47 = vadd.f32 %v1542_v35, %v1415_v58  ;;  %v2065_v24 = vmin.f32 %v4390_v1, 20.0  ;;  %v4400_v20 = vadd.f32 2.0, %v4393_v2  ;;  %v3239_v34 = vpop.eup %3238  ;;  %v2222_v35 = vmul.f32 %v4367_v21, %v4318_v32 }
 0x29a   : > { %v1350_v18 = vpop.f32.mrf.mxu1  ;;  %v1736_v12 = vpop.f32.mrf.mxu3  ;;  %v2410_v56 = vsel %vm2409_vm15, %v3235_v46, %v2406_v0  ;;  %v2417_v41 = vmul.f32 %v3239_v34, %v4379_v60  ;;  %vm2422_vm2 = vweird.f32 %v3239_v34 }
 0x29b   : > { %v1804_v26 = vadd.f32 %v1736_v12, %v1610_v47  ;;  %1977 = vmatmul.f32.gmra.mxu0 %v1852_v55  ;;  %v2415_v30 = vsel %vm2412_vm0, %v2414_v42, %v2410_v56  ;;  %v2110_v19 = vmul.f32 1.442695, %v2065_v24  ;;  %3242 = vrcp.f32 %v4400_v20  ;;  %vm2423_vm5 = vmor %vm2421_vm4, %vm2422_vm2 }
 0x29c   : > { %v2733_v16 = vmul.f32 %v2415_v30, %v2221_v40  ;;  %v1416_v62 = vadd.f32 %v1350_v18, %v4082_v37  ;;  %v3241_v46 = vpop.eup %3240  ;;  %v2418_v61 = vsub.f32 1.0, %v2417_v41  ;;  %v2427_v37 = vand.u32 2147483648, %v4379_v60 }
 0x29d   : > { %v1998_v33 = vadd.f32 %v1930_v39, %v1804_v26  ;;  %1397 = vmatmul.f32.gmra.mxu1 %v4360_v43  ;;  %1592 = vmatmul.f32.gmra.mxu2 %v1465_v3  ;;  %3244 = vpow2.f32 %v2110_v19  ;;  %v4411_v43 = vld [vmem:[%s4817_s2] ss:$0 sm:$0xff]  ;;  %v2160_v17 = vadd.f32 2.0, %v3241_v46  ;;  %v2439_v56 = vand.u32 2147483647, %v4400_v20 }
 0x29e   : > { %v2797_v57 = vsel %vm2765_vm1, %v4289_v38, %v2733_v16  ;;  %v2419_v38 = vmul.f32 %v3239_v34, %v2418_v61  ;;  %v2428_v0 = vor.u32 1.1754944e-38, %v2427_v37  ;;  %vm2435_vm8 = vweird.f32 %v4400_v20 }
 0x29f   : > { %1786 = vmatmul.f32.gmra.mxu3 %v1659_v15  ;;  %v4414_v9 = vadd.f32 %v4411_v43, %v1998_v33  ;;  %2829 = vst [vmem:[%s3399_s23 + $0x48] sm:$0xff] %v2797_v57  ;;  %v4421_v31 = vmul.f32 %v3241_v46, %v2160_v17  ;;  %v2441_v15 = vand.u32 2147483648, %v4400_v20  ;;  %v2223_v17 = vmul.f32 %v4393_v2, %v4342_v23 }
 0x2a0   : > { %v1545_v44 = vpop.f32.mrf.mxu2  ;;  %v2420_v39 = vadd.f32 %v3239_v34, %v2419_v38  ;;  %vm2440_vm10 = vcmp.eq.f32.partialorder %v2439_v56, 8.507059e+37  ;;  %vm2768_vm1 = vcmp.gt.f32.partialorder %v4371_v13, 20.0 }
 0x2a1   : > { %v1933_v36 = vpop.f32.mrf.mxu0  ;;  %v1611_v27 = vadd.f32 %v1545_v44, %v1416_v62  ;;  %v2066_v28 = vmin.f32 %v4414_v9, 20.0  ;;  %v3243_v51 = vpop.eup %3242  ;;  %v4428_v12 = vadd.f32 2.0, %v4421_v31 }
 0x2a2   : > { %v1353_v58 = vpop.f32.mrf.mxu1  ;;  %v1739_v7 = vpop.f32.mrf.mxu3  ;;  %v2431_v18 = vmul.f32 %v3243_v51, %v4400_v20  ;;  %v2424_v3 = vsel %vm2423_vm5, %v3239_v34, %v2420_v39  ;;  %vm2436_vm7 = vweird.f32 %v3243_v51  ;;  %vm2769_vm5 = vcmp.gt.f32.partialorder %v4390_v1, 20.0 }
 0x2a3   : > { %v1805_v4 = vadd.f32 %v1739_v7, %v1611_v27  ;;  %1980 = vmatmul.f32.gmra.mxu0 %v1853_v63  ;;  %v2112_v55 = vmul.f32 1.442695, %v2066_v28  ;;  %v3245_v47 = vpop.eup %3244  ;;  %v2429_v26 = vsel %vm2426_vm6, %v2428_v0, %v2424_v3  ;;  %v1417_v21 = vadd.f32 %v1353_v58, %v4085_v54  ;;  %vm2437_vm9 = vmor %vm2435_vm8, %vm2436_vm7 }
 0x2a4   : > { %v2161_v42 = vadd.f32 2.0, %v3245_v47  ;;  %v2432_v40 = vsub.f32 1.0, %v2431_v18  ;;  %v2734_v60 = vmul.f32 %v2429_v26, %v2222_v35  ;;  %v2442_v63 = vor.u32 1.1754944e-38, %v2441_v15 }
 0x2a5   : > { %3246 = vpow2.f32 %v2112_v55  ;;  %v1999_v24 = vadd.f32 %v1933_v36, %v1805_v4  ;;  %v2453_v35 = vand.u32 2147483647, %v4428_v12  ;;  %v2455_v2 = vand.u32 2147483648, %v4428_v12 }
 0x2a6   : > { %3248 = vrcp.f32 %v4428_v12  ;;  %v4434_v30 = vmul.f32 %v3245_v47, %v2161_v42  ;;  %v2433_v34 = vmul.f32 %v3243_v51, %v2432_v40  ;;  %v2798_v62 = vsel %vm2766_vm3, %v4318_v32, %v2734_v60 }
 0x2a7   : > { %v4437_v16 = vadd.f32 %v4411_v43, %v1999_v24  ;;  %2830 = vst [vmem:[%s3399_s23 + $0x50] sm:$0xff] %v2798_v62  ;;  %v2224_v40 = vmul.f32 %v4421_v31, %v4371_v13  ;;  %vm2449_vm13 = vweird.f32 %v4428_v12  ;;  %vm2454_vm15 = vcmp.eq.f32.partialorder %v2453_v35, 8.507059e+37 }
 0x2a8   : > { %v1548_v19 = vpop.f32.mrf.mxu2  ;;  %v2434_v57 = vadd.f32 %v3243_v51, %v2433_v34  ;;  %v4445_v61 = vadd.f32 2.0, %v4434_v30 }
 0x2a9   : > { %v1936_v33 = vpop.f32.mrf.mxu0  ;;  %v1612_v41 = vadd.f32 %v1548_v19, %v1417_v21  ;;  %v2067_v44 = vmin.f32 %v4437_v16, 20.0  ;;  %v2456_v19 = vor.u32 1.1754944e-38, %v2455_v2  ;;  %v2225_v2 = vmul.f32 %v4434_v30, %v4390_v1 }
 0x2aa   : > { %v1356_v54 = vpop.f32.mrf.mxu1  ;;  %v1742_v46 = vpop.f32.mrf.mxu3  ;;  %v2438_v32 = vsel %vm2437_vm9, %v3243_v51, %v2434_v57  ;;  %3250 = vrcp.f32 %v4445_v61  ;;  %vm2463_vm2 = vweird.f32 %v4445_v61 }
 0x2ab   : > { %v3247_v36 = vpop.eup %3246  ;;  %v1806_v11 = vadd.f32 %v1742_v46, %v1612_v41  ;;  %v2443_v27 = vsel %vm2440_vm10, %v2442_v63, %v2438_v32  ;;  %v2114_v58 = vmul.f32 1.442695, %v2067_v44  ;;  %v1418_v7 = vadd.f32 %v1356_v54, %v4088_v5 }
 0x2ac   : > { %v3249_v37 = vpop.eup %3248  ;;  %v2735_v38 = vmul.f32 %v2443_v27, %v2223_v17  ;;  %v2162_v28 = vadd.f32 2.0, %v3247_v36  ;;  %v2469_v41 = vand.u32 2147483648, %v4445_v61  ;;  %vm2770_vm10 = vcmp.gt.f32.partialorder %v4414_v9, 20.0 }
 0x2ad   : > { %v2445_v20 = vmul.f32 %v3249_v37, %v4428_v12  ;;  %v2000_v51 = vadd.f32 %v1936_v33, %v1806_v11  ;;  %3252 = vpow2.f32 %v2114_v58  ;;  %vm2450_vm12 = vweird.f32 %v3249_v37 }
 0x2ae   : > { %v2799_v47 = vsel %vm2767_vm11, %v4342_v23, %v2735_v38  ;;  %v4457_v0 = vmul.f32 %v3247_v36, %v2162_v28  ;;  %vm2451_vm14 = vmor %vm2449_vm13, %vm2450_vm12  ;;  %v2467_v33 = vand.u32 2147483647, %v4445_v61 }
 0x2af   : > { %v2446_v4 = vsub.f32 1.0, %v2445_v20  ;;  %2831 = vst [vmem:[%s3399_s23 + $0x58] sm:$0xff] %v2799_v47  ;;  %v4461_v42 = vadd.f32 %v4411_v43, %v2000_v51 }
 0x2b0   : > { %v1551_v39 = vpop.f32.mrf.mxu2  ;;  %v3251_v26 = vpop.eup %3250  ;;  %v4466_v21 = vadd.f32 2.0, %v4457_v0  ;;  %vm2468_vm4 = vcmp.eq.f32.partialorder %v2467_v33, 8.507059e+37 }
 0x2b1   : > { %v1939_v55 = vpop.f32.mrf.mxu0  ;;  %v1613_v18 = vadd.f32 %v1551_v39, %v1418_v7  ;;  %v2447_v3 = vmul.f32 %v3249_v37, %v2446_v4  ;;  %v2459_v56 = vmul.f32 %v3251_v26, %v4445_v61  ;;  %v2068_v15 = vmin.f32 %v4461_v42, 20.0 }
 0x2b2   : > { %v1359_v5 = vpop.f32.mrf.mxu1  ;;  %v1745_v24 = vpop.f32.mrf.mxu3  ;;  %3254 = vrcp.f32 %v4466_v21  ;;  %vm2464_vm0 = vweird.f32 %v3251_v26  ;;  %v2470_v7 = vor.u32 1.1754944e-38, %v2469_v41  ;;  %v2483_v30 = vand.u32 2147483648, %v4466_v21 }
 0x2b3   : > { %v1807_v23 = vadd.f32 %v1745_v24, %v1613_v18  ;;  %v2448_v60 = vadd.f32 %v3249_v37, %v2447_v3  ;;  %v2460_v31 = vsub.f32 1.0, %v2459_v56  ;;  %v2116_v62 = vmul.f32 1.442695, %v2068_v15  ;;  %v3253_v54 = vpop.eup %3252  ;;  %vm2465_vm3 = vmor %vm2463_vm2, %vm2464_vm0 }
 0x2b4   : > { %v1419_v12 = vadd.f32 %v1359_v5, %v4091_v6  ;;  %v2163_v63 = vadd.f32 2.0, %v3253_v54  ;;  %v2481_v24 = vand.u32 2147483647, %v4466_v21  ;;  %vm2477_vm7 = vweird.f32 %v4466_v21 }
 0x2b5   : > { %v2452_v34 = vsel %vm2451_vm14, %v3249_v37, %v2448_v60  ;;  %v2001_v57 = vadd.f32 %v1939_v55, %v1807_v23  ;;  %v2461_v36 = vmul.f32 %v3251_v26, %v2460_v31  ;;  %3256 = vpow2.f32 %v2116_v62 }
 0x2b6   : > { %v2457_v46 = vsel %vm2454_vm15, %v2456_v19, %v2452_v34  ;;  %v4481_v6 = vmul.f32 %v3253_v54, %v2163_v63  ;;  %vm2482_vm9 = vcmp.eq.f32.partialorder %v2481_v24, 8.507059e+37  ;;  %vm2771_vm14 = vcmp.gt.f32.partialorder %v4437_v16, 20.0 }
 0x2b7   : > { %v2736_v44 = vmul.f32 %v2457_v46, %v2224_v40  ;;  %v4477_v37 = vadd.f32 %v4411_v43, %v2001_v57  ;;  %v2462_v20 = vadd.f32 %v3251_v26, %v2461_v36  ;;  %v2226_v46 = vmul.f32 %v4457_v0, %v4414_v9 }
 0x2b8   : > { %v1554_v11 = vpop.f32.mrf.mxu2  ;;  %v3255_v58 = vpop.eup %3254  ;;  %v4490_v39 = vadd.f32 2.0, %v4481_v6 }
 0x2b9   : > { %v1942_v17 = vpop.f32.mrf.mxu0  ;;  %v1614_v32 = vadd.f32 %v1554_v11, %v1419_v12  ;;  %v2800_v27 = vsel %vm2768_vm1, %v4371_v13, %v2736_v44  ;;  %v2069_v4 = vmin.f32 %v4477_v37, 20.0  ;;  %v2466_v51 = vsel %vm2465_vm3, %v3251_v26, %v2462_v20 }
 0x2ba   : > { %v1362_v38 = vpop.f32.mrf.mxu1  ;;  %v1748_v28 = vpop.f32.mrf.mxu3  ;;  %2832 = vst [vmem:[%s3399_s23 + $0x60] sm:$0xff] %v2800_v27  ;;  %v2473_v13 = vmul.f32 %v3255_v58, %v4466_v21  ;;  %v2471_v61 = vsel %vm2468_vm4, %v2470_v7, %v2466_v51  ;;  %vm2478_vm6 = vweird.f32 %v3255_v58  ;;  %3258 = vrcp.f32 %v4490_v39 }
 0x2bb   : > { %v1808_v35 = vadd.f32 %v1748_v28, %v1614_v32  ;;  %v2118_v55 = vmul.f32 1.442695, %v2069_v4  ;;  %v3257_v18 = vpop.eup %3256  ;;  %v2737_v3 = vmul.f32 %v2471_v61, %v2225_v2  ;;  %v1420_v26 = vadd.f32 %v1362_v38, %v4094_v52  ;;  %vm2479_vm8 = vmor %vm2477_vm7, %vm2478_vm6 }
 0x2bc   : > { %v2474_v5 = vsub.f32 1.0, %v2473_v13  ;;  %v2164_v60 = vadd.f32 2.0, %v3257_v18  ;;  %v2484_v52 = vor.u32 1.1754944e-38, %v2483_v30  ;;  %v2497_v4 = vand.u32 2147483648, %v4490_v39 }
 0x2bd   : > { %v2002_v47 = vadd.f32 %v1942_v17, %v1808_v35  ;;  %v2801_v40 = vsel %vm2769_vm5, %v4390_v1, %v2737_v3  ;;  %3260 = vpow2.f32 %v2118_v55  ;;  %v2495_v13 = vand.u32 2147483647, %v4490_v39 }
 0x2be   : > { %v2475_v23 = vmul.f32 %v3255_v58, %v2474_v5  ;;  %2833 = vst [vmem:[%s3399_s23 + $0x68] sm:$0xff] %v2801_v40  ;;  %v4503_v31 = vmul.f32 %v3257_v18, %v2164_v60  ;;  %vm2491_vm12 = vweird.f32 %v4490_v39  ;;  %v2498_v24 = vor.u32 1.1754944e-38, %v2497_v4 }
 0x2bf   : > { %v4500_v19 = vadd.f32 %v4411_v43, %v2002_v47  ;;  %v2227_v40 = vmul.f32 %v4481_v6, %v4437_v16  ;;  %vm2496_vm15 = vcmp.eq.f32.partialorder %v2495_v13, 8.507059e+37  ;;  %vm2772_vm3 = vcmp.gt.f32.partialorder %v4461_v42, 20.0 }
 0x2c0   : > { %v1557_v56 = vpop.f32.mrf.mxu2  ;;  %v2476_v34 = vadd.f32 %v3255_v58, %v2475_v23  ;;  %v4510_v57 = vadd.f32 2.0, %v4503_v31  ;;  %v3259_v44 = vpop.eup %3258 }
 0x2c1   : > { %v1945_v15 = vpop.f32.mrf.mxu0  ;;  %v1615_v33 = vadd.f32 %v1557_v56, %v1420_v26  ;;  %v2070_v1 = vmin.f32 %v4500_v19, 20.0  ;;  %v2487_v32 = vmul.f32 %v3259_v44, %v4490_v39  ;;  %vm2492_vm11 = vweird.f32 %v3259_v44 }
 0x2c2   : > { %v1365_v41 = vpop.f32.mrf.mxu1  ;;  %v1751_v62 = vpop.f32.mrf.mxu3  ;;  %v2480_v12 = vsel %vm2479_vm8, %v3255_v58, %v2476_v34  ;;  %3262 = vrcp.f32 %v4510_v57  ;;  %vm2493_vm13 = vmor %vm2491_vm12, %vm2492_vm11  ;;  %v2509_v34 = vand.u32 2147483647, %v4510_v57  ;;  %vm2505_vm1 = vweird.f32 %v4510_v57 }
 0x2c3   : > { %v1809_v54 = vadd.f32 %v1751_v62, %v1615_v33  ;;  %v2485_v21 = vsel %vm2482_vm9, %v2484_v52, %v2480_v12  ;;  %v2120_v36 = vmul.f32 1.442695, %v2070_v1  ;;  %v3261_v11 = vpop.eup %3260  ;;  %v1421_v0 = vadd.f32 %v1365_v41, %v4097_v49 }
 0x2c4   : > { %v2738_v17 = vmul.f32 %v2485_v21, %v2226_v46  ;;  %v2165_v27 = vadd.f32 2.0, %v3261_v11  ;;  %v2488_v38 = vsub.f32 1.0, %v2487_v32  ;;  %v2511_v41 = vand.u32 2147483648, %v4510_v57 }
 0x2c5   : > { %v2003_v63 = vadd.f32 %v1945_v15, %v1809_v54  ;;  %3264 = vpow2.f32 %v2120_v36  ;;  %vm2510_vm4 = vcmp.eq.f32.partialorder %v2509_v34, 8.507059e+37  ;;  %vm2773_vm9 = vcmp.gt.f32.partialorder %v4477_v37, 20.0 }
 0x2c6   : > { %v2802_v20 = vsel %vm2770_vm10, %v4414_v9, %v2738_v17  ;;  %v4522_v35 = vmul.f32 %v3261_v11, %v2165_v27  ;;  %v2489_v51 = vmul.f32 %v3259_v44, %v2488_v38  ;;  %v2512_v27 = vor.u32 1.1754944e-38, %v2511_v41 }
 0x2c7   : > { %v4518_v28 = vadd.f32 %v4411_v43, %v2003_v63  ;;  %2834 = vst [vmem:[%s3399_s23 + $0x70] sm:$0xff] %v2802_v20 }
 0x2c8   : > { %v1560_v58 = vpop.f32.mrf.mxu2  ;;  %v4527_v55 = vadd.f32 2.0, %v4522_v35  ;;  %v3263_v18 = vpop.eup %3262  ;;  %v2490_v3 = vadd.f32 %v3259_v44, %v2489_v51 }
 0x2c9   : > { %v1948_v7 = vpop.f32.mrf.mxu0  ;;  %v1616_v2 = vadd.f32 %v1560_v58, %v1421_v0  ;;  %v2071_v49 = vmin.f32 %v4518_v28, 20.0  ;;  %v2501_v30 = vmul.f32 %v3263_v18, %v4510_v57  ;;  %vm2506_vm0 = vweird.f32 %v3263_v18 }
 0x2ca   : > { %v1368_v9 = vpop.f32.mrf.mxu1  ;;  %v1754_v61 = vpop.f32.mrf.mxu3  ;;  %3266 = vrcp.f32 %v4527_v55  ;;  %v2494_v23 = vsel %vm2493_vm13, %v3259_v44, %v2490_v3  ;;  %vm2507_vm2 = vmor %vm2505_vm1, %vm2506_vm0  ;;  %v2228_v57 = vmul.f32 %v4503_v31, %v4461_v42  ;;  %v2525_v58 = vand.u32 2147483648, %v4527_v55 }
 0x2cb   : > { %v1810_v47 = vadd.f32 %v1754_v61, %v1616_v2  ;;  %v2122_v5 = vmul.f32 1.442695, %v2071_v49  ;;  %v3265_v26 = vpop.eup %3264  ;;  %v2499_v60 = vsel %vm2496_vm15, %v2498_v24, %v2494_v23  ;;  %v2502_v56 = vsub.f32 1.0, %v2501_v30 }
 0x2cc   : > { %v2166_v15 = vadd.f32 2.0, %v3265_v26  ;;  %v2739_v33 = vmul.f32 %v2499_v60, %v2227_v40  ;;  %v1422_v62 = vadd.f32 %v1368_v9, %v4100_v25  ;;  %v2523_v9 = vand.u32 2147483647, %v4527_v55 }
 0x2cd   : > { %3268 = vpow2.f32 %v2122_v5  ;;  %v2004_v39 = vadd.f32 %v1948_v7, %v1810_v47  ;;  %v2503_v54 = vmul.f32 %v3263_v18, %v2502_v56  ;;  %vm2519_vm6 = vweird.f32 %v4527_v55 }
 0x2ce   : > { %v4538_v6 = vmul.f32 %v3265_v26, %v2166_v15  ;;  %v2803_v12 = vsel %vm2771_vm14, %v4437_v16, %v2739_v33  ;;  %v2229_v23 = vmul.f32 %v4522_v35, %v4477_v37  ;;  %v2526_v60 = vor.u32 1.1754944e-38, %v2525_v58 }
 0x2cf   : > { %v4541_v46 = vadd.f32 %v4411_v43, %v2004_v39  ;;  %2835 = vst [vmem:[%s3399_s23 + $0x78] sm:$0xff] %v2803_v12  ;;  %v2504_v25 = vadd.f32 %v3263_v18, %v2503_v54  ;;  %vm2524_vm8 = vcmp.eq.f32.partialorder %v2523_v9, 8.507059e+37  ;;  %vm2774_vm13 = vcmp.gt.f32.partialorder %v4500_v19, 20.0 }
 0x2d0   : > { %v1563_v52 = vpop.f32.mrf.mxu2  ;;  %v3267_v36 = vpop.eup %3266  ;;  %v4549_v63 = vadd.f32 2.0, %v4538_v6  ;;  %v2230_v58 = vmul.f32 %v4538_v6, %v4500_v19 }
 0x2d1   : > { %v1951_v1 = vpop.f32.mrf.mxu0  ;;  %v2072_v11 = vmin.f32 %v4541_v46, 20.0  ;;  %v1617_v17 = vadd.f32 %v1563_v52, %v1422_v62  ;;  %v2515_v16 = vmul.f32 %v3267_v36, %v4527_v55  ;;  %v2508_v0 = vsel %vm2507_vm2, %v3263_v18, %v2504_v25 }
 0x2d2   : > { %v1371_v44 = vpop.f32.mrf.mxu1  ;;  %v1757_v21 = vpop.f32.mrf.mxu3  ;;  %3270 = vrcp.f32 %v4549_v63  ;;  %v2513_v20 = vsel %vm2510_vm4, %v2512_v27, %v2508_v0  ;;  %vm2520_vm5 = vweird.f32 %v3267_v36  ;;  %v2537_v35 = vand.u32 2147483647, %v4549_v63 }
 0x2d3   : > { %v3269_v32 = vpop.eup %3268  ;;  %v2516_v38 = vsub.f32 1.0, %v2515_v16  ;;  %v2740_v4 = vmul.f32 %v2513_v20, %v2228_v57  ;;  %v2124_v2 = vmul.f32 1.442695, %v2072_v11  ;;  %v1423_v51 = vadd.f32 %v1371_v44, %v4103_v45  ;;  %vm2521_vm7 = vmor %vm2519_vm6, %vm2520_vm5 }
 0x2d4   : > { %v2167_v7 = vadd.f32 2.0, %v3269_v32  ;;  %v1811_v13 = vadd.f32 %v1757_v21, %v1617_v17  ;;  %v2539_v52 = vand.u32 2147483648, %v4549_v63  ;;  %vm2533_vm11 = vweird.f32 %v4549_v63 }
 0x2d5   : > { %v2517_v49 = vmul.f32 %v3267_v36, %v2516_v38  ;;  %v2804_v18 = vsel %vm2772_vm3, %v4461_v42, %v2740_v4  ;;  %3272 = vpow2.f32 %v2124_v2  ;;  %vm2538_vm14 = vcmp.eq.f32.partialorder %v2537_v35, 8.507059e+37 }
 0x2d6   : > { %v4560_v31 = vmul.f32 %v3269_v32, %v2167_v7  ;;  %v2005_v3 = vadd.f32 %v1951_v1, %v1811_v13  ;;  %2836 = vst [vmem:[%s3399_s23 + $0x80] sm:$0xff] %v2804_v18  ;;  %vm2775_vm3 = vcmp.gt.f32.partialorder %v4518_v28, 20.0 }
 0x2d7   : > { %v2518_v24 = vadd.f32 %v3267_v36, %v2517_v49 }
 0x2d8   : > { %v1566_v61 = vpop.f32.mrf.mxu2  ;;  %v4568_v45 = vadd.f32 2.0, %v4560_v31  ;;  %v3271_v40 = vpop.eup %3270  ;;  %v4574_v42 = vadd.f32 %v4411_v43, %v2005_v3 }
 0x2d9   : > { %v1954_v47 = vpop.f32.mrf.mxu0  ;;  %v1618_v5 = vadd.f32 %v1566_v61, %v1423_v51  ;;  %v2522_v15 = vsel %vm2521_vm7, %v3267_v36, %v2518_v24  ;;  %v2529_v55 = vmul.f32 %v3271_v40, %v4549_v63  ;;  %vm2534_vm10 = vweird.f32 %v3271_v40 }
 0x2da   : > { %v1374_v30 = vpop.f32.mrf.mxu1  ;;  %v1760_v26 = vpop.f32.mrf.mxu3  ;;  %3274 = vrcp.f32 %v4568_v45  ;;  %v2527_v39 = vsel %vm2524_vm8, %v2526_v60, %v2522_v15  ;;  %v2073_v41 = vmin.f32 %v4574_v42, 20.0  ;;  %vm2535_vm12 = vmor %vm2533_vm11, %vm2534_vm10  ;;  %v2551_v9 = vand.u32 2147483647, %v4568_v45 }
 0x2db   : > { %v1812_v56 = vadd.f32 %v1760_v26, %v1618_v5  ;;  %v2741_v33 = vmul.f32 %v2527_v39, %v2229_v23  ;;  %v2530_v34 = vsub.f32 1.0, %v2529_v55  ;;  %v3273_v62 = vpop.eup %3272  ;;  %v1424_v1 = vadd.f32 %v1374_v30, %v4106_v10 }
 0x2dc   : > { %v2168_v21 = vadd.f32 2.0, %v3273_v62  ;;  %v2126_v36 = vmul.f32 1.442695, %v2073_v41  ;;  %v2553_v61 = vand.u32 2147483648, %v4568_v45  ;;  %vm2547_vm0 = vweird.f32 %v4568_v45 }
 0x2dd   : > { %v2006_v54 = vadd.f32 %v1954_v47, %v1812_v56  ;;  %v2805_v12 = vsel %vm2773_vm9, %v4477_v37, %v2741_v33  ;;  %v2531_v44 = vmul.f32 %v3271_v40, %v2530_v34  ;;  %v2540_v37 = vor.u32 1.1754944e-38, %v2539_v52 }
 0x2de   : > { %2837 = vst [vmem:[%s3399_s23 + $0x88] sm:$0xff] %v2805_v12  ;;  %v4589_v57 = vmul.f32 %v3273_v62, %v2168_v21  ;;  %3276 = vpow2.f32 %v2126_v36  ;;  %v2231_v60 = vmul.f32 %v4560_v31, %v4518_v28  ;;  %v2554_v56 = vor.u32 1.1754944e-38, %v2553_v61 }
 0x2df   : > { %v4586_v17 = vadd.f32 %v4411_v43, %v2006_v54  ;;  %v2532_v16 = vadd.f32 %v3271_v40, %v2531_v44  ;;  %vm2552_vm2 = vcmp.eq.f32.partialorder %v2551_v9, 8.507059e+37  ;;  %vm2776_vm8 = vcmp.gt.f32.partialorder %v4541_v46, 20.0 }
 0x2e0   : > { %v1569_v25 = vpop.f32.mrf.mxu2  ;;  %v3275_v27 = vpop.eup %3274  ;;  %v4598_v63 = vadd.f32 2.0, %v4589_v57 }
 0x2e1   : > { %v1957_v11 = vpop.f32.mrf.mxu0  ;;  %v1619_v32 = vadd.f32 %v1569_v25, %v1424_v1  ;;  %v2543_v20 = vmul.f32 %v3275_v27, %v4568_v45  ;;  %v2074_v38 = vmin.f32 %v4586_v17, 20.0  ;;  %v2536_v7 = vsel %vm2535_vm12, %v3271_v40, %v2532_v16 }
 0x2e2   : > { %v1377_v10 = vpop.f32.mrf.mxu1  ;;  %v1763_v0 = vpop.f32.mrf.mxu3  ;;  %v2541_v4 = vsel %vm2538_vm14, %v2540_v37, %v2536_v7  ;;  %3278 = vrcp.f32 %v4598_v63  ;;  %vm2548_vm15 = vweird.f32 %v3275_v27  ;;  %v2565_v36 = vand.u32 2147483647, %v4598_v63 }
 0x2e3   : > { %v2544_v2 = vsub.f32 1.0, %v2543_v20  ;;  %v2128_v51 = vmul.f32 1.442695, %v2074_v38  ;;  %v1813_v13 = vadd.f32 %v1763_v0, %v1619_v32  ;;  %v2742_v49 = vmul.f32 %v2541_v4, %v2230_v58  ;;  %vm2549_vm1 = vmor %vm2547_vm0, %vm2548_vm15 }
 0x2e4   : > { %v3277_v18 = vpop.eup %3276  ;;  %v1425_v5 = vadd.f32 %v1377_v10, %v4109_v29  ;;  %v2567_v25 = vand.u32 2147483648, %v4598_v63  ;;  %vm2561_vm5 = vweird.f32 %v4598_v63  ;;  %vm2566_vm7 = vcmp.eq.f32.partialorder %v2565_v36, 8.507059e+37 }
 0x2e5   : > { %v2545_v47 = vmul.f32 %v3275_v27, %v2544_v2  ;;  %3280 = vpow2.f32 %v2128_v51  ;;  %v2007_v6 = vadd.f32 %v1957_v11, %v1813_v13  ;;  %v2806_v3 = vsel %vm2774_vm13, %v4500_v19, %v2742_v49 }
 0x2e6   : > { %2838 = vst [vmem:[%s3399_s23 + $0x90] sm:$0xff] %v2806_v3  ;;  %v2169_v40 = vadd.f32 2.0, %v3277_v18  ;;  %v2568_v7 = vor.u32 1.1754944e-38, %v2567_v25  ;;  %v2232_v2 = vmul.f32 %v4589_v57, %v4541_v46  ;;  %vm2777_vm14 = vcmp.gt.f32.partialorder %v4574_v42, 20.0 }
 0x2e7   : > { %v2546_v26 = vadd.f32 %v3275_v27, %v2545_v47  ;;  %v4610_v23 = vadd.f32 %v4411_v43, %v2007_v6 }
 0x2e8   : > { %v1572_v24 = vpop.f32.mrf.mxu2  ;;  %v4614_v29 = vmul.f32 %v3277_v18, %v2169_v40  ;;  %v3279_v45 = vpop.eup %3278 }
 0x2e9   : > { %v1960_v30 = vpop.f32.mrf.mxu0  ;;  %v1620_v15 = vadd.f32 %v1572_v24, %v1425_v5  ;;  %v2550_v39 = vsel %vm2549_vm1, %v3275_v27, %v2546_v26  ;;  %v2075_v33 = vmin.f32 %v4610_v23, 20.0  ;;  %v2557_v31 = vmul.f32 %v3279_v45, %v4598_v63 }
 0x2ea   : > { %v1380_v55 = vpop.f32.mrf.mxu1  ;;  %v1766_v19 = vpop.f32.mrf.mxu3  ;;  %v2555_v34 = vsel %vm2552_vm2, %v2554_v56, %v2550_v39  ;;  %v4620_v52 = vadd.f32 2.0, %v4614_v29  ;;  %vm2562_vm4 = vweird.f32 %v3279_v45  ;;  %vm2778_vm2 = vcmp.gt.f32.partialorder %v4586_v17, 20.0 }
 0x2eb   : > { %v1814_v35 = vadd.f32 %v1766_v19, %v1620_v15  ;;  %v3281_v41 = vpop.eup %3280  ;;  %v2743_v62 = vmul.f32 %v2555_v34, %v2231_v60  ;;  %v2130_v54 = vmul.f32 1.442695, %v2075_v33  ;;  %v2558_v21 = vsub.f32 1.0, %v2557_v31  ;;  %vm2563_vm6 = vmor %vm2561_vm5, %vm2562_vm4 }
 0x2ec   : > { %v2170_v1 = vadd.f32 2.0, %v3281_v41  ;;  %3282 = vrcp.f32 %v4620_v52  ;;  %v1426_v11 = vadd.f32 %v1380_v55, %v4112_v53  ;;  %v2579_v3 = vand.u32 2147483647, %v4620_v52 }
 0x2ed   : > { %v2008_v12 = vadd.f32 %v1960_v30, %v1814_v35  ;;  %v2807_v44 = vsel %vm2775_vm3, %v4518_v28, %v2743_v62  ;;  %v2559_v16 = vmul.f32 %v3279_v45, %v2558_v21  ;;  %3284 = vpow2.f32 %v2130_v54 }
 0x2ee   : > { %2839 = vst [vmem:[%s3399_s23 + $0x98] sm:$0xff] %v2807_v44  ;;  %v4628_v10 = vmul.f32 %v3281_v41, %v2170_v1  ;;  %v2581_v60 = vand.u32 2147483648, %v4620_v52  ;;  %v2233_v33 = vmul.f32 %v4614_v29, %v4574_v42  ;;  %vm2575_vm10 = vweird.f32 %v4620_v52 }
 0x2ef   : > { %v4631_v0 = vadd.f32 %v4411_v43, %v2008_v12  ;;  %v2560_v38 = vadd.f32 %v3279_v45, %v2559_v16  ;;  %vm4658_vm11 = vcmp.eq.f32.partialorder %v2579_v3, 8.507059e+37 }
 0x2f0   : > { %v1575_v32 = vpop.f32.mrf.mxu2  ;;  %v4635_v58 = vadd.f32 2.0, %v4628_v10  ;;  %v2582_v31 = vor.u32 1.1754944e-38, %v2581_v60 }
 0x2f1   : > { %v1963_v27 = vpop.f32.mrf.mxu0  ;;  %v1621_v28 = vadd.f32 %v1575_v32, %v1426_v11  ;;  %v2076_v53 = vmin.f32 %v4631_v0, 20.0  ;;  %v2564_v51 = vsel %vm2563_vm6, %v3279_v45, %v2560_v38  ;;  %vm2779_vm6 = vcmp.gt.f32.partialorder %v4610_v23, 20.0 }
 0x2f2   : > { %v1383_v37 = vpop.f32.mrf.mxu1  ;;  %v1769_v20 = vpop.f32.mrf.mxu3  ;;  %3286 = vrcp.f32 %v4635_v58  ;;  %v2569_v49 = vsel %vm2566_vm7, %v2568_v7, %v2564_v51  ;;  %v2593_v44 = vand.u32 2147483647, %v4635_v58  ;;  %vm2589_vm15 = vweird.f32 %v4635_v58 }
 0x2f3   : > { %v1815_v4 = vadd.f32 %v1769_v20, %v1621_v28  ;;  %v3283_v13 = vpop.eup %3282  ;;  %v2132_v9 = vmul.f32 1.442695, %v2076_v53  ;;  %v2744_v47 = vmul.f32 %v2569_v49, %v2232_v2  ;;  %v1427_v18 = vadd.f32 %v1383_v37, %v4115_v22 }
 0x2f4   : > { %v3285_v61 = vpop.eup %3284  ;;  %v2571_v6 = vmul.f32 %v3283_v13, %v4620_v52  ;;  %vm2576_vm9 = vweird.f32 %v3283_v13  ;;  %v2595_v52 = vand.u32 2147483648, %v4635_v58  ;;  %v2234_v51 = vmul.f32 %v4628_v10, %v4586_v17 }
 0x2f5   : > { %v2009_v63 = vadd.f32 %v1963_v27, %v1815_v4  ;;  %v2171_v57 = vadd.f32 2.0, %v3285_v61  ;;  %3288 = vpow2.f32 %v2132_v9  ;;  %v2808_v26 = vsel %vm2776_vm8, %v4541_v46, %v2744_v47  ;;  %vm2577_vm12 = vmor %vm2575_vm10, %vm2576_vm9 }
 0x2f6   : > { %v2572_v40 = vsub.f32 1.0, %v2571_v6  ;;  %2840 = vst [vmem:[%s3399_s23 + $0xa0] sm:$0xff] %v2808_v26  ;;  %vm2594_vm1 = vcmp.eq.f32.partialorder %v2593_v44, 8.507059e+37 }
 0x2f7   : > { %v4647_v5 = vadd.f32 %v4411_v43, %v2009_v63  ;;  %v4652_v15 = vmul.f32 %v3285_v61, %v2171_v57 }
 0x2f8   : > { %v1578_v24 = vpop.f32.mrf.mxu2  ;;  %v3287_v39 = vpop.eup %3286  ;;  %v2573_v45 = vmul.f32 %v3283_v13, %v2572_v40 }
 0x2f9   : > { %v1966_v30 = vpop.f32.mrf.mxu0  ;;  %v1622_v56 = vadd.f32 %v1578_v24, %v1427_v18  ;;  %v2077_v22 = vmin.f32 %v4647_v5, 20.0  ;;  %v2585_v35 = vmul.f32 %v3287_v39, %v4635_v58  ;;  %v4664_v41 = vadd.f32 2.0, %v4652_v15 }
 0x2fa   : > { %v1386_v55 = vpop.f32.mrf.mxu1  ;;  %v1772_v19 = vpop.f32.mrf.mxu3  ;;  %v2574_v62 = vadd.f32 %v3283_v13, %v2573_v45  ;;  %vm2590_vm13 = vweird.f32 %v3287_v39 }
 0x2fb   : > { %v1816_v34 = vadd.f32 %v1772_v19, %v1622_v56  ;;  %v2134_v1 = vmul.f32 1.442695, %v2077_v22  ;;  %v3289_v12 = vpop.eup %3288  ;;  %v2586_v29 = vsub.f32 1.0, %v2585_v35  ;;  %3290 = vrcp.f32 %v4664_v41  ;;  %vm2591_vm0 = vmor %vm2589_vm15, %vm2590_vm13 }
 0x2fc   : > { %v2578_v21 = vsel %vm2577_vm12, %v3283_v13, %v2574_v62  ;;  %v2172_v36 = vadd.f32 2.0, %v3289_v12  ;;  %v1428_v25 = vadd.f32 %v1386_v55, %v4118_v8  ;;  %v2596_v13 = vor.u32 1.1754944e-38, %v2595_v52 }
 0x2fd   : > { %v2010_v54 = vadd.f32 %v1966_v30, %v1816_v34  ;;  %3292 = vpow2.f32 %v2134_v1  ;;  %v2583_v11 = vsel %vm4658_vm11, %v2582_v31, %v2578_v21  ;;  %v2587_v32 = vmul.f32 %v3287_v39, %v2586_v29 }
 0x2fe   : > { %v2745_v37 = vmul.f32 %v2583_v11, %v2233_v33  ;;  %v4675_v20 = vmul.f32 %v3289_v12, %v2172_v36  ;;  %v2607_v30 = vand.u32 2147483647, %v4664_v41  ;;  %v2609_v26 = vand.u32 2147483648, %v4664_v41 }
 0x2ff   : > { %v4673_v27 = vadd.f32 %v4411_v43, %v2010_v54  ;;  %v2588_v53 = vadd.f32 %v3287_v39, %v2587_v32  ;;  %vm2603_vm4 = vweird.f32 %v4664_v41  ;;  %vm2780_vm12 = vcmp.gt.f32.partialorder %v4631_v0, 20.0 }
 0x300   : > { %v1581_v16 = vpop.f32.mrf.mxu2  ;;  %v2809_v2 = vsel %vm2777_vm14, %v4574_v42, %v2745_v37  ;;  %v4685_v49 = vadd.f32 2.0, %v4675_v20  ;;  %v2610_v35 = vor.u32 1.1754944e-38, %v2609_v26  ;;  %vm2608_vm7 = vcmp.eq.f32.partialorder %v2607_v30, 8.507059e+37 }
 0x301   : > { %v1969_v28 = vpop.f32.mrf.mxu0  ;;  %v1623_v38 = vadd.f32 %v1581_v16, %v1428_v25  ;;  %v2078_v8 = vmin.f32 %v4673_v27, 20.0  ;;  %v3291_v9 = vpop.eup %3290  ;;  %2841 = vst [vmem:[%s3399_s23 + $0xa8] sm:$0xff] %v2809_v2  ;;  %v2592_v63 = vsel %vm2591_vm0, %v3287_v39, %v2588_v53  ;;  %vm2781_vm0 = vcmp.gt.f32.partialorder %v4647_v5, 20.0 }
 0x302   : > { %v1389_v7 = vpop.f32.mrf.mxu1  ;;  %v1775_v4 = vpop.f32.mrf.mxu3  ;;  %v2597_v6 = vsel %vm2594_vm1, %v2596_v13, %v2592_v63  ;;  %v2599_v42 = vmul.f32 %v3291_v9, %v4664_v41  ;;  %3294 = vrcp.f32 %v4685_v49  ;;  %vm2604_vm3 = vweird.f32 %v3291_v9 }
 0x303   : > { %v2136_v58 = vmul.f32 1.442695, %v2078_v8  ;;  %v1817_v61 = vadd.f32 %v1775_v4, %v1623_v38  ;;  %v3293_v47 = vpop.eup %3292  ;;  %v2746_v10 = vmul.f32 %v2597_v6, %v2234_v51  ;;  %v1429_v40 = vadd.f32 %v1389_v7, %v4121_v48  ;;  %vm2605_vm5 = vmor %vm2603_vm4, %vm2604_vm3 }
 0x304   : > { %v2600_v18 = vsub.f32 1.0, %v2599_v42  ;;  %v2173_v3 = vadd.f32 2.0, %v3293_v47  ;;  %v2235_v41 = vmul.f32 %v4652_v15, %v4610_v23  ;;  %v2623_v12 = vand.u32 2147483648, %v4685_v49 }
 0x305   : > { %3296 = vpow2.f32 %v2136_v58  ;;  %v2011_v57 = vadd.f32 %v1969_v28, %v1817_v61  ;;  %v2810_v24 = vsel %vm2778_vm2, %v4586_v17, %v2746_v10  ;;  %v2621_v11 = vand.u32 2147483647, %v4685_v49 }
 0x306   : > { %2842 = vst [vmem:[%s3399_s23 + $0xb0] sm:$0xff] %v2810_v24  ;;  %v2601_v22 = vmul.f32 %v3291_v9, %v2600_v18  ;;  %v4696_v55 = vmul.f32 %v3293_v47, %v2173_v3  ;;  %vm2617_vm9 = vweird.f32 %v4685_v49  ;;  %v2236_v4 = vmul.f32 %v4675_v20, %v4631_v0 }
 0x307   : > { %v4699_v19 = vadd.f32 %v4411_v43, %v2011_v57  ;;  %v2624_v2 = vor.u32 1.1754944e-38, %v2623_v12  ;;  %vm2622_vm11 = vcmp.eq.f32.partialorder %v2621_v11, 8.507059e+37 }
 0x308   : > { %v1584_v60 = vpop.f32.mrf.mxu2  ;;  %v3295_v33 = vpop.eup %3294  ;;  %v2602_v45 = vadd.f32 %v3291_v9, %v2601_v22  ;;  %v4703_v34 = vadd.f32 2.0, %v4696_v55 }
 0x309   : > { %v1972_v56 = vpop.f32.mrf.mxu0  ;;  %v2079_v48 = vmin.f32 %v4699_v19, 20.0  ;;  %v1624_v46 = vadd.f32 %v1584_v60, %v1429_v40  ;;  %v2613_v62 = vmul.f32 %v3295_v33, %v4685_v49  ;;  %vm2618_vm8 = vweird.f32 %v3295_v33 }
 0x30a   : > { %v1392_v39 = vpop.f32.mrf.mxu1  ;;  %v1778_v17 = vpop.f32.mrf.mxu3  ;;  %v2606_v31 = vsel %vm2605_vm5, %v3291_v9, %v2602_v45  ;;  %3298 = vrcp.f32 %v4703_v34  ;;  %vm2619_vm10 = vmor %vm2617_vm9, %vm2618_vm8  ;;  %v2635_v47 = vand.u32 2147483647, %v4703_v34  ;;  %v2637_v10 = vand.u32 2147483648, %v4703_v34 }
 0x30b   : > { %v3297_v43 = vpop.eup %3296  ;;  %v2611_v1 = vsel %vm2608_vm7, %v2610_v35, %v2606_v31  ;;  %v2614_v54 = vsub.f32 1.0, %v2613_v62  ;;  %v2138_v52 = vmul.f32 1.442695, %v2079_v48  ;;  %v1430_v21 = vadd.f32 %v1392_v39, %v4124_v14 }
 0x30c   : > { %v2174_v29 = vadd.f32 2.0, %v3297_v43  ;;  %v2747_v44 = vmul.f32 %v2611_v1, %v2235_v41  ;;  %v1818_v36 = vadd.f32 %v1778_v17, %v1624_v46  ;;  %vm2631_vm14 = vweird.f32 %v4703_v34 }
 0x30d   : > { %v2615_v25 = vmul.f32 %v3295_v33, %v2614_v54  ;;  %3300 = vpow2.f32 %v2138_v52  ;;  %v2237_v46 = vmul.f32 %v4696_v55, %v4647_v5  ;;  %vm2636_vm1 = vcmp.eq.f32.partialorder %v2635_v47, 8.507059e+37 }
 0x30e   : > { %v4714_v15 = vmul.f32 %v3297_v43, %v2174_v29  ;;  %v2811_v28 = vsel %vm2779_vm6, %v4610_v23, %v2747_v44  ;;  %v2012_v37 = vadd.f32 %v1972_v56, %v1818_v36  ;;  %v4730_v23 = vld [vmem:[%s4817_s2] ss:$0 sm:$0xff]  ;;  %vm2782_vm6 = vcmp.gt.f32.partialorder %v4673_v27, 20.0 }
 0x30f   : > { %2843 = vst [vmem:[%s3399_s23 + $0xb8] sm:$0xff] %v2811_v28  ;;  %v2616_v53 = vadd.f32 %v3295_v33, %v2615_v25 }
 0x310   : > { %v1587_v32 = vpop.f32.mrf.mxu2  ;;  %v4722_v14 = vadd.f32 2.0, %v4714_v15  ;;  %v3299_v7 = vpop.eup %3298  ;;  %v4733_v51 = vadd.f32 %v4730_v23, %v2012_v37  ;;  %v2238_v28 = vmul.f32 %v4714_v15, %v4673_v27 }
 0x311   : > { %v1975_v16 = vpop.f32.mrf.mxu0  ;;  %v1625_v38 = vadd.f32 %v1587_v32, %v1430_v21  ;;  %v2620_v9 = vsel %vm2619_vm10, %v3295_v33, %v2616_v53  ;;  %v2627_v63 = vmul.f32 %v3299_v7, %v4703_v34  ;;  %vm2632_vm13 = vweird.f32 %v3299_v7 }
 0x312   : > { %v1781_v8 = vpop.f32.mrf.mxu3  ;;  %v1395_v13 = vpop.f32.mrf.mxu1  ;;  %3302 = vrcp.f32 %v4722_v14  ;;  %v2625_v20 = vsel %vm2622_vm11, %v2624_v2, %v2620_v9  ;;  %v2080_v6 = vmin.f32 %v4733_v51, 20.0  ;;  %vm2633_vm15 = vmor %vm2631_vm14, %vm2632_vm13  ;;  %v2649_v12 = vand.u32 2147483647, %v4722_v14 }
 0x313   : > { %v1819_v49 = vadd.f32 %v1781_v8, %v1625_v38  ;;  %v2748_v58 = vmul.f32 %v2625_v20, %v2236_v4  ;;  %v2628_v61 = vsub.f32 1.0, %v2627_v63  ;;  %v3301_v42 = vpop.eup %3300  ;;  %v1431_v18 = vadd.f32 %v1395_v13, %v4127_v50 }
 0x314   : > { %v2175_v30 = vadd.f32 2.0, %v3301_v42  ;;  %v2140_v26 = vmul.f32 1.442695, %v2080_v6  ;;  %v2651_v29 = vand.u32 2147483648, %v4722_v14  ;;  %vm2645_vm3 = vweird.f32 %v4722_v14 }
 0x315   : > { %v2013_v3 = vadd.f32 %v1975_v16, %v1819_v49  ;;  %v2812_v57 = vsel %vm2780_vm12, %v4631_v0, %v2748_v58  ;;  %v2629_v24 = vmul.f32 %v3299_v7, %v2628_v61  ;;  %v2638_v0 = vor.u32 1.1754944e-38, %v2637_v10 }
 0x316   : > { %2844 = vst [vmem:[%s3399_s23 + $0xc0] sm:$0xff] %v2812_v57  ;;  %v4748_v33 = vmul.f32 %v3301_v42, %v2175_v30  ;;  %3304 = vpow2.f32 %v2140_v26  ;;  %v2652_v37 = vor.u32 1.1754944e-38, %v2651_v29  ;;  %vm2650_vm5 = vcmp.eq.f32.partialorder %v2649_v12, 8.507059e+37 }
 0x317   : > { %v4745_v60 = vadd.f32 %v4730_v23, %v2013_v3  ;;  %v2630_v17 = vadd.f32 %v3299_v7, %v2629_v24  ;;  %vm2783_vm11 = vcmp.gt.f32.partialorder %v4699_v19, 20.0 }
 0x318   : > { %v1590_v40 = vpop.f32.mrf.mxu2  ;;  %v3303_v39 = vpop.eup %3302  ;;  %v4757_v34 = vadd.f32 2.0, %v4748_v33  ;;  %v2239_v26 = vmul.f32 %v4748_v33, %v4699_v19 }
 0x319   : > { %v1626_v56 = vadd.f32 %v1590_v40, %v1431_v18  ;;  %v1978_v22 = vpop.f32.mrf.mxu0  ;;  %v2641_v45 = vmul.f32 %v3303_v39, %v4722_v14  ;;  %v2081_v48 = vmin.f32 %v4745_v60, 20.0  ;;  %v2634_v35 = vsel %vm2633_vm15, %v3299_v7, %v2630_v17 }
 0x31a   : > { %v1784_v50 = vpop.f32.mrf.mxu3  ;;  %v2639_v62 = vsel %vm2636_vm1, %v2638_v0, %v2634_v35  ;;  %v1398_v31 = vpop.f32.mrf.mxu1  ;;  %3306 = vrcp.f32 %v4757_v34  ;;  %vm2646_vm2 = vweird.f32 %v3303_v39  ;;  %v2663_v6 = vand.u32 2147483647, %v4757_v34 }
 0x31b   : > { %v2642_v43 = vsub.f32 1.0, %v2641_v45  ;;  %v2142_v41 = vmul.f32 1.442695, %v2081_v48  ;;  %v1820_v1 = vadd.f32 %v1784_v50, %v1626_v56  ;;  %v2749_v54 = vmul.f32 %v2639_v62, %v2237_v46  ;;  %vm2647_vm4 = vmor %vm2645_vm3, %vm2646_vm2 }
 0x31c   : > { %v3305_v52 = vpop.eup %3304  ;;  %v1432_v36 = vadd.f32 %v1398_v31, %v4130_v59  ;;  %v2665_v42 = vand.u32 2147483648, %v4757_v34  ;;  %vm2659_vm8 = vweird.f32 %v4757_v34  ;;  %vm2664_vm10 = vcmp.eq.f32.partialorder %v2663_v6, 8.507059e+37 }
 0x31d   : > { %v2643_v44 = vmul.f32 %v3303_v39, %v2642_v43  ;;  %3308 = vpow2.f32 %v2142_v41  ;;  %v2014_v55 = vadd.f32 %v1978_v22, %v1820_v1  ;;  %v2813_v21 = vsel %vm2781_vm0, %v4647_v5, %v2749_v54 }
 0x31e   : > { %2845 = vst [vmem:[%s3399_s23 + $0xc8] sm:$0xff] %v2813_v21  ;;  %v2176_v32 = vadd.f32 2.0, %v3305_v52  ;;  %v2666_v30 = vor.u32 1.1754944e-38, %v2665_v42  ;;  %vm2784_vm1 = vcmp.gt.f32.partialorder %v4733_v51, 20.0 }
 0x31f   : > { %v2644_v11 = vadd.f32 %v3303_v39, %v2643_v44  ;;  %v4769_v16 = vadd.f32 %v4730_v23, %v2014_v55 }
 0x320   : > { %v1593_v25 = vpop.f32.mrf.mxu2  ;;  %v2208_v5 = vmul.f32 %v3305_v52, %v2176_v32  ;;  %v3307_v4 = vpop.eup %3306 }
 0x321   : > { %v1627_v38 = vadd.f32 %v1593_v25, %v1432_v36  ;;  %v2648_v8 = vsel %vm2647_vm4, %v3303_v39, %v2644_v11  ;;  %v2082_v59 = vmin.f32 %v4769_v16, 20.0  ;;  %v1981_v7 = vpop.f32.mrf.mxu0  ;;  %v2655_v15 = vmul.f32 %v3307_v4, %v4757_v34 }
 0x322   : > { %v1787_v53 = vpop.f32.mrf.mxu3  ;;  %v2653_v14 = vsel %vm2650_vm5, %v2652_v37, %v2648_v8  ;;  %v2272_v9 = vadd.f32 2.0, %v2208_v5  ;;  %vm2660_vm7 = vweird.f32 %v3307_v4  ;;  %v2240_v54 = vmul.f32 %v2208_v5, %v4733_v51 }
 0x323   : > { %v1821_v2 = vadd.f32 %v1787_v53, %v1627_v38  ;;  %v3309_v13 = vpop.eup %3308  ;;  %v2750_v49 = vmul.f32 %v2653_v14, %v2238_v28  ;;  %v2144_v20 = vmul.f32 1.442695, %v2082_v59  ;;  %v2656_v47 = vsub.f32 1.0, %v2655_v15  ;;  %vm2661_vm9 = vmor %vm2659_vm8, %vm2660_vm7 }
 0x324   : > { %v2177_v63 = vadd.f32 2.0, %v3309_v13  ;;  %3310 = vrcp.f32 %v2272_v9  ;;  %v2679_v46 = vand.u32 2147483648, %v2272_v9  ;;  %v2677_v62 = vand.u32 2147483647, %v2272_v9 }
 0x325   : > { %v2015_v58 = vadd.f32 %v1981_v7, %v1821_v2  ;;  %v2814_v61 = vsel %vm2782_vm6, %v4673_v27, %v2750_v49  ;;  %v2657_v10 = vmul.f32 %v3307_v4, %v2656_v47  ;;  %3312 = vpow2.f32 %v2144_v20 }
 0x326   : > { %2846 = vst [vmem:[%s3399_s23 + $0xd0] sm:$0xff] %v2814_v61  ;;  %v2209_v18 = vmul.f32 %v3309_v13, %v2177_v63  ;;  %vm2673_vm13 = vweird.f32 %v2272_v9  ;;  %v2680_v12 = vor.u32 1.1754944e-38, %v2679_v46  ;;  %vm2678_vm15 = vcmp.eq.f32.partialorder %v2677_v62, 8.507059e+37 }
 0x327   : > { %v4781_v3 = vadd.f32 %v4730_v23, %v2015_v58  ;;  %v2658_v57 = vadd.f32 %v3307_v4, %v2657_v10  ;;  %vm2785_vm5 = vcmp.gt.f32.partialorder %v4745_v60, 20.0 }
 0x328   : > { %v2273_v24 = vadd.f32 2.0, %v2209_v18  ;;  %v2241_v8 = vmul.f32 %v2209_v18, %v4745_v60 }
 0x329   : > { %v2083_v27 = vmin.f32 %v4781_v3, 20.0  ;;  %v2662_v40 = vsel %vm2661_vm9, %v3307_v4, %v2658_v57 }
 0x32a   : > { %3314 = vrcp.f32 %v2273_v24  ;;  %v3311_v56 = vpop.eup %3310  ;;  %v2667_v22 = vsel %vm2664_vm10, %v2666_v30, %v2662_v40  ;;  %v2693_v44 = vand.u32 2147483648, %v2273_v24  ;;  %v2691_v36 = vand.u32 2147483647, %v2273_v24 }
 0x32b   : > { %v2146_v39 = vmul.f32 1.442695, %v2083_v27  ;;  %v3313_v23 = vpop.eup %3312  ;;  %v2751_v17 = vmul.f32 %v2667_v22, %v2239_v26  ;;  %v2669_v50 = vmul.f32 %v3311_v56, %v2272_v9  ;;  %vm2674_vm12 = vweird.f32 %v3311_v56 }
 0x32c   : > { %v2178_v0 = vadd.f32 2.0, %v3313_v23  ;;  %vm2675_vm14 = vmor %vm2673_vm13, %vm2674_vm12  ;;  %vm2687_vm2 = vweird.f32 %v2273_v24  ;;  %v2694_v37 = vor.u32 1.1754944e-38, %v2693_v44  ;;  %vm2692_vm4 = vcmp.eq.f32.partialorder %v2691_v36, 8.507059e+37 }
 0x32d   : > { %3316 = vpow2.f32 %v2146_v39  ;;  %v2815_v45 = vsel %vm2783_vm11, %v4699_v19, %v2751_v17  ;;  %v2670_v48 = vsub.f32 1.0, %v2669_v50  ;;  %vm2786_vm10 = vcmp.gt.f32.partialorder %v4769_v16, 20.0 }
 0x32e   : > { %2847 = vst [vmem:[%s3399_s23 + $0xd8] sm:$0xff] %v2815_v45  ;;  %v2210_v35 = vmul.f32 %v3313_v23, %v2178_v0 }
 0x32f   : > { %v2671_v34 = vmul.f32 %v3311_v56, %v2670_v48 }
 0x330   : > { %v3315_v33 = vpop.eup %3314  ;;  %v2274_v41 = vadd.f32 2.0, %v2210_v35  ;;  %v2242_v58 = vmul.f32 %v2210_v35, %v4769_v16 }
 0x331   : > { %v2683_v43 = vmul.f32 %v3315_v33, %v2273_v24  ;;  %v2672_v31 = vadd.f32 %v3311_v56, %v2671_v34  ;;  %vm2688_vm0 = vweird.f32 %v3315_v33 }
 0x332   : > { %3318 = vrcp.f32 %v2274_v41  ;;  %vm2689_vm3 = vmor %vm2687_vm2, %vm2688_vm0  ;;  %v2705_v49 = vand.u32 2147483647, %v2274_v41  ;;  %vm2701_vm7 = vweird.f32 %v2274_v41 }
 0x333   : > { %v3317_v1 = vpop.eup %3316  ;;  %v2684_v29 = vsub.f32 1.0, %v2683_v43  ;;  %v2676_v19 = vsel %vm2675_vm14, %v3311_v56, %v2672_v31 }
 0x334   : > { %v2179_v55 = vadd.f32 2.0, %v3317_v1  ;;  %v2681_v52 = vsel %vm2678_vm15, %v2680_v12, %v2676_v19  ;;  %vm2706_vm9 = vcmp.eq.f32.partialorder %v2705_v49, 8.507059e+37  ;;  %vm2787_vm15 = vcmp.gt.f32.partialorder %v4781_v3, 20.0 }
 0x335   : > { %v2685_v21 = vmul.f32 %v3315_v33, %v2684_v29  ;;  %v2752_v25 = vmul.f32 %v2681_v52, %v2240_v54 }
 0x336   : > { %v2211_v11 = vmul.f32 %v3317_v1, %v2179_v55 }
 0x337   : > { %v2686_v32 = vadd.f32 %v3315_v33, %v2685_v21  ;;  %v2816_v28 = vsel %vm2784_vm1, %v4733_v51, %v2752_v25  ;;  %v2707_v51 = vand.u32 2147483648, %v2274_v41 }
 0x338   : > { %v2275_v38 = vadd.f32 2.0, %v2211_v11  ;;  %v3319_v53 = vpop.eup %3318  ;;  %2848 = vst [vmem:[%s3399_s23 + $0xe0] sm:$0xff] %v2816_v28  ;;  %v2243_v30 = vmul.f32 %v2211_v11, %v4781_v3 }
 0x339   : > { %v2690_v5 = vsel %vm2689_vm3, %v3315_v33, %v2686_v32  ;;  %v2697_v7 = vmul.f32 %v3319_v53, %v2274_v41  ;;  %vm2702_vm6 = vweird.f32 %v3319_v53  ;;  %v2708_v63 = vor.u32 1.1754944e-38, %v2707_v51 }
 0x33a   : > { %v2695_v59 = vsel %vm2692_vm4, %v2694_v37, %v2690_v5  ;;  %3320 = vrcp.f32 %v2275_v38  ;;  %vm2703_vm8 = vmor %vm2701_vm7, %vm2702_vm6  ;;  %v2719_v18 = vand.u32 2147483647, %v2275_v38  ;;  %vm2715_vm12 = vweird.f32 %v2275_v38 }
 0x33b   : > { %v2753_v4 = vmul.f32 %v2695_v59, %v2241_v8  ;;  %v2698_v14 = vsub.f32 1.0, %v2697_v7 }
 0x33c   : > { %vm2720_vm14 = vcmp.eq.f32.partialorder %v2719_v18, 8.507059e+37 }
 0x33d   : > { %v2817_v2 = vsel %vm2785_vm5, %v4745_v60, %v2753_v4  ;;  %v2699_v13 = vmul.f32 %v3319_v53, %v2698_v14  ;;  %v2721_v60 = vand.u32 2147483648, %v2275_v38 }
 0x33e   : > { %2849 = vst [vmem:[%s3399_s23 + $0xe8] sm:$0xff] %v2817_v2 }
 0x33f   : > { %v2700_v9 = vadd.f32 %v3319_v53, %v2699_v13  ;;  %v2722_v27 = vor.u32 1.1754944e-38, %v2721_v60 }
 0x340   : > { %v3321_v15 = vpop.eup %3320 }
 0x341   : > { %v2711_v20 = vmul.f32 %v3321_v15, %v2275_v38  ;;  %v2704_v61 = vsel %vm2703_vm8, %v3319_v53, %v2700_v9  ;;  %vm2716_vm11 = vweird.f32 %v3321_v15 }
 0x342   : > { %v2709_v47 = vsel %vm2706_vm9, %v2708_v63, %v2704_v61  ;;  %vm2717_vm13 = vmor %vm2715_vm12, %vm2716_vm11 }
 0x343   : > { %v2712_v6 = vsub.f32 1.0, %v2711_v20  ;;  %v2754_v42 = vmul.f32 %v2709_v47, %v2242_v58 }
 0x345   : > { %v2713_v10 = vmul.f32 %v3321_v15, %v2712_v6  ;;  %v2818_v57 = vsel %vm2786_vm10, %v4769_v16, %v2754_v42 }
 0x346   : > { %2850 = vst [vmem:[%s3399_s23 + $0xf0] sm:$0xff] %v2818_v57 }
 0x347   : > { %v2714_v24 = vadd.f32 %v3321_v15, %v2713_v10 }
 0x349   : > { %v2718_v26 = vsel %vm2717_vm13, %v3321_v15, %v2714_v24 }
 0x34a   : > { %v2723_v40 = vsel %vm2720_vm14, %v2722_v27, %v2718_v26 }
 0x34b   : > { %v2755_v56 = vmul.f32 %v2723_v40, %v2243_v30 }
 0x34d   : > { %v2819_v22 = vsel %vm2787_vm15, %v4781_v3, %v2755_v56 }
 0x34e   : > { %2851 = vst [vmem:[%s3399_s23 + $0xf8] sm:$0xff] %v2819_v22 }
 0x34f PF: > { %s13_s14 = sadd.s32 1, %s3348_s14   ;;  %s4821_s12 = smov %s3344_s13 }
 0x350   : > { %p10_p5 = scmp.ge.s32.totalorder %s13_s14, 4   ;;  %s4822_s13 = smov %s4824_s15 }
 0x352   :  { %12 = sbr.rel (!%p10_p5) target bundleno = 2 (0x2), region = 99 }
 0x357   :  { %2890 = vsyncmov [#allocation3] }
 0x35a   :  { %s2891_s18 = vpop.sfrf %2890 }
 0x35b   :  { %p3119_p6 = scmp.ne.s32.totalorder %s2891_s18, 0 }
 0x35d   :  { %2895 = shalt.err (%p3119_p6)  }

</bundles_post_ra>
